<compile_context>
chip_gen: v7x
topology: tpu7x:2x2x1
jax: 0.10.0
libtpu: 0.0.40
codegen_flags: <defaults>
</compile_context>

<pallas_src>
import numpy as np
import jax
import jax.numpy as jnp
from jax import lax
from jax.experimental import pallas as pl
from jax.experimental.pallas import tpu as pltpu

KH = KW = 5
CONV_PAD = 2
POOL_K = 3
POOL_S = 2
LRN_SIZE = 5
LRN_ALPHA = 1e-4
LRN_BETA = 0.75
LRN_K = 1.0


def conv_block(x, weight, bias):
    """x: (N, Cin, H, W) f32, weight: (Cout, Cin, 5, 5), bias: (Cout,) -> NCHW f32."""
    N, Cin, H, W = x.shape
    Cout = weight.shape[0]
    assert weight.shape == (Cout, Cin, KH, KW)
    # Pool / subsample arithmetic below assumes the standard even spatial dims.
    assert H % 2 == 0 and W % 2 == 0

    Hp = (H - POOL_K) // POOL_S + 1          # pooled output height
    Wp = (W - POOL_K) // POOL_S + 1          # pooled output width
    half = LRN_SIZE // 2

    # Channel padding to a full 128-lane tile (also gives zero channels for LRN edges).
    CP = 128 * (-(-(Cout + half) // 128))
    assert Cout + half <= CP

    KWC = KW * Cin                            # folded contraction depth
    Wr = 8 * (-(-(W + 2 * CONV_PAD) // 8))    # sublane-aligned padded width
    LX = (H + 2 * CONV_PAD) * Wr              # streamed input rows (mult of 8)
    LY = H * Wr                               # conv output rows    (mult of 8)
    Hh = H // 2
    Wh = Wr // 2

    # Pool windows only ever touch valid conv rows/cols.
    assert 2 * Hp + 1 <= H and 2 * Wp + 1 <= W
    assert Hp + 1 <= Hh and Wp + 1 <= Wh

    # ---- glue: NHWC, zero-pad for conv + alignment + KW shifts ----
    xn = x.transpose(0, 2, 3, 1)                           # (N, H, W, Cin)
    padw_total = Wr + KW - 1                               # width needed for w+kw reads
    xp = jnp.pad(xn, ((0, 0), (CONV_PAD, CONV_PAD),
                      (CONV_PAD, padw_total - W - CONV_PAD), (0, 0)))
    # KW-fold: xf[n, h, w, kw*Cin + c] = xp[n, h, w + kw, c]
    xf = jnp.concatenate([xp[:, :, kw:kw + Wr, :] for kw in range(KW)], axis=3)
    xf = xf.reshape(N, LX, KWC).astype(jnp.bfloat16)

    # ---- glue: weights (KH, KW*Cin, CP) bf16, bias (1, CP) f32, zero-padded ----
    wk = weight.astype(jnp.float32).transpose(2, 3, 1, 0).reshape(KH, KWC, Cout)
    wk = jnp.pad(wk, ((0, 0), (0, 0), (0, CP - Cout))).astype(jnp.bfloat16)
    b2 = jnp.pad(bias.astype(jnp.float32).reshape(1, Cout), ((0, 0), (0, CP - Cout)))

    def kernel(x_ref, w_ref, b_ref, o_ref):
        xs = x_ref[0]                                            # (LX, KWC) bf16

        # ---- Conv2d: KH row-shifted matmuls, K = KW*Cin, f32 accumulation ----
        # kh*Wr is a multiple of 8, so each slice is an aligned view.
        acc = jnp.dot(xs[0:LY, :], w_ref[0], preferred_element_type=jnp.float32)
        for kh in range(1, KH):
            s = kh * Wr
            acc = acc + jnp.dot(xs[s:s + LY, :], w_ref[kh],
                                preferred_element_type=jnp.float32)
        y = jnp.maximum(acc + b_ref[...], 0.0)                   # bias + ReLU (LY, CP)

        # ---- MaxPool 3x3 stride 2: separable, subsampled in-kernel ----
        # H direction: split rows into even/odd pairs (leading-dim view).
        y4 = y.reshape(Hh, 2, Wr, CP)                            # y4[i, j] = row 2i+j
        hsub = jnp.maximum(jnp.maximum(y4[0:Hp, 0], y4[0:Hp, 1]),
                           y4[1:Hp + 1, 0])                      # (Hp, Wr, CP)
        # W direction: split columns into even/odd pairs.
        hr = hsub.reshape(Hp, Wh, 2, CP)                         # hr[:, k, j] = col 2k+j
        even = hr[:, :, 0, :]                                    # (Hp, Wh, CP)
        odd = hr[:, :, 1, :]
        pooled = jnp.maximum(jnp.maximum(even[:, 0:Wp], odd[:, 0:Wp]),
                             even[:, 1:Wp + 1])                  # (Hp, Wp, CP)

        # ---- LocalResponseNorm(5) over channels via lane rolls ----
        # Padded channels (>= Cout) are exactly zero, so wrap-around reproduces
        # PyTorch's zero padding of the channel window.
        sq = pooled * pooled
        ssum = sq
        for d in range(1, half + 1):
            ssum = ssum + pltpu.roll(sq, d, axis=2) + pltpu.roll(sq, CP - d, axis=2)
        base = LRN_K + (LRN_ALPHA / LRN_SIZE) * ssum             # >= 1
        inv = lax.rsqrt(base)                                    # base^-0.5 (EUP)
        # base^-0.75 = inv * sqrt(inv)  (exact only for beta = 0.75)
        o_ref[0] = (pooled * (inv * jnp.sqrt(inv))).astype(o_ref.dtype)

    out = pl.pallas_call(
        kernel,
        out_shape=jax.ShapeDtypeStruct((N, Hp, Wp, CP), jnp.bfloat16),
        grid_spec=pltpu.PrefetchScalarGridSpec(
            num_scalar_prefetch=0,
            grid=(N,),
            in_specs=[
                pl.BlockSpec((1, LX, KWC), lambda n: (n, 0, 0)),
                pl.BlockSpec((KH, KWC, CP), lambda n: (0, 0, 0)),
                pl.BlockSpec((1, CP), lambda n: (0, 0)),
            ],
            out_specs=pl.BlockSpec((1, Hp, Wp, CP), lambda n: (n, 0, 0, 0)),
        ),
        compiler_params=pltpu.CompilerParams(dimension_semantics=("parallel",)),
    )(xf, wk, b2)

    # ---- glue: strip channel padding, back to NCHW f32 ----
    return out[..., :Cout].transpose(0, 3, 1, 2).astype(jnp.float32)


def reference(x, weight, bias):
    """Plain-JAX reference matching the PyTorch ConvBlock forward (f32)."""
    y = lax.conv_general_dilated(
        x, weight, window_strides=(1, 1),
        padding=((CONV_PAD, CONV_PAD), (CONV_PAD, CONV_PAD)),
        dimension_numbers=('NCHW', 'OIHW', 'NCHW'))
    y = jnp.maximum(y + bias[None, :, None, None], 0.0)
    y = lax.reduce_window(y, -jnp.inf, lax.max,
                          (1, 1, POOL_K, POOL_K), (1, 1, POOL_S, POOL_S), 'VALID')
    C = y.shape[1]
    sq = y * y
    pad_sq = jnp.pad(sq, ((0, 0), (LRN_SIZE // 2, LRN_SIZE // 2), (0, 0), (0, 0)))
    ssum = sum(pad_sq[:, d:d + C] for d in range(LRN_SIZE))
    denom = (LRN_K + (LRN_ALPHA / LRN_SIZE) * ssum) ** LRN_BETA
    return y / denom


if __name__ == "__main__":
    key = jax.random.PRNGKey(0)
    k1, k2, k3 = jax.random.split(key, 3)
    N, Cin, H, W, Cout = 2, 4, 16, 16, 8

    x = jax.random.normal(k1, (N, Cin, H, W), jnp.float32)
    fan_in = Cin * KH * KW
    bound = 1.0 / np.sqrt(fan_in)
    weight = jax.random.uniform(k2, (Cout, Cin, KH, KW), jnp.float32, -bound, bound)
    bias = jax.random.uniform(k3, (Cout,), jnp.float32, -bound, bound)

    out = jax.block_until_ready(conv_block(x, weight, bias))
    ref = jax.block_until_ready(reference(x, weight, bias))

    Hp = (H - POOL_K) // POOL_S + 1
    Wp = (W - POOL_K) // POOL_S + 1
    assert out.shape == (N, Cout, Hp, Wp), out.shape
    # bf16 streamed operands + bf16 output store with f32 accumulation -> loose tolerance
    if not jnp.allclose(out, ref, rtol=2e-2, atol=2e-2):
        raise AssertionError(
            f"mismatch vs reference, max abs diff = {float(jnp.max(jnp.abs(out - ref)))}")
    print("KERNEL_OK")
</pallas_src>

<mosaic_0001>
module attributes {stable_mosaic.version = 11 : i64} {
  func.func @kernel(%arg0: i32, %arg1: memref<1x480x20xbf16, #tpu.memory_space<vmem>>, %arg2: memref<5x20x128xbf16, #tpu.memory_space<vmem>>, %arg3: memref<1x128xf32, #tpu.memory_space<vmem>>, %arg4: memref<1x7x7x128xbf16, #tpu.memory_space<vmem>>) attributes {dimension_semantics = [#tpu.dimension_semantics<parallel>], iteration_bounds = array<i64: 2>, scalar_prefetch = 0 : i64, scratch_operands = 0 : i64, tpu.core_type = #tpu.core_type<tc>, window_params = [{transform_indices = @transform_0, window_bounds = array<i64: 1, 480, 20>}, {pipeline_mode = #tpu.pipeline_mode<synchronous>, transform_indices = @transform_1, window_bounds = array<i64: 5, 20, 128>}, {pipeline_mode = #tpu.pipeline_mode<synchronous>, transform_indices = @transform_2, window_bounds = array<i64: 1, 128>}, {transform_indices = @transform_3, window_bounds = array<i64: 1, 7, 7, 128>}]} {
    %c0 = arith.constant 0 : index
    %c0_0 = arith.constant 0 : index
    %c0_1 = arith.constant 0 : index
    %0 = vector.load %arg1[%c0, %c0_0, %c0_1] : memref<1x480x20xbf16, #tpu.memory_space<vmem>>, vector<1x480x20xbf16>
    %1 = vector.shape_cast %0 : vector<1x480x20xbf16> to vector<480x20xbf16>
    %2 = vector.extract_strided_slice %1 {offsets = [0, 0], sizes = [384, 20], strides = [1, 1]} : vector<480x20xbf16> to vector<384x20xbf16>
    %c0_2 = arith.constant 0 : index
    %c0_3 = arith.constant 0 : index
    %c0_4 = arith.constant 0 : index
    %3 = vector.load %arg2[%c0_2, %c0_3, %c0_4] : memref<5x20x128xbf16, #tpu.memory_space<vmem>>, vector<1x20x128xbf16>
    %4 = vector.shape_cast %3 : vector<1x20x128xbf16> to vector<20x128xbf16>
    %cst = arith.constant dense<0.000000e+00> : vector<384x128xf32>
    %5 = tpu.matmul %2, %4, %cst {dimension_numbers = #tpu.dot_dimension_numbers<[1], [0], [0], [1], [0, 0, 1, 1], [], []>} : vector<384x20xbf16>, vector<20x128xbf16>, vector<384x128xf32> -> vector<384x128xf32>
    %6 = vector.extract_strided_slice %1 {offsets = [24, 0], sizes = [384, 20], strides = [1, 1]} : vector<480x20xbf16> to vector<384x20xbf16>
    %c1 = arith.constant 1 : index
    %c0_5 = arith.constant 0 : index
    %c0_6 = arith.constant 0 : index
    %7 = vector.load %arg2[%c1, %c0_5, %c0_6] : memref<5x20x128xbf16, #tpu.memory_space<vmem>>, vector<1x20x128xbf16>
    %8 = vector.shape_cast %7 : vector<1x20x128xbf16> to vector<20x128xbf16>
    %cst_7 = arith.constant dense<0.000000e+00> : vector<384x128xf32>
    %9 = tpu.matmul %6, %8, %cst_7 {dimension_numbers = #tpu.dot_dimension_numbers<[1], [0], [0], [1], [0, 0, 1, 1], [], []>} : vector<384x20xbf16>, vector<20x128xbf16>, vector<384x128xf32> -> vector<384x128xf32>
    %10 = arith.addf %5, %9 : vector<384x128xf32>
    %11 = vector.extract_strided_slice %1 {offsets = [48, 0], sizes = [384, 20], strides = [1, 1]} : vector<480x20xbf16> to vector<384x20xbf16>
    %c2 = arith.constant 2 : index
    %c0_8 = arith.constant 0 : index
    %c0_9 = arith.constant 0 : index
    %12 = vector.load %arg2[%c2, %c0_8, %c0_9] : memref<5x20x128xbf16, #tpu.memory_space<vmem>>, vector<1x20x128xbf16>
    %13 = vector.shape_cast %12 : vector<1x20x128xbf16> to vector<20x128xbf16>
    %cst_10 = arith.constant dense<0.000000e+00> : vector<384x128xf32>
    %14 = tpu.matmul %11, %13, %cst_10 {dimension_numbers = #tpu.dot_dimension_numbers<[1], [0], [0], [1], [0, 0, 1, 1], [], []>} : vector<384x20xbf16>, vector<20x128xbf16>, vector<384x128xf32> -> vector<384x128xf32>
    %15 = arith.addf %10, %14 : vector<384x128xf32>
    %16 = vector.extract_strided_slice %1 {offsets = [72, 0], sizes = [384, 20], strides = [1, 1]} : vector<480x20xbf16> to vector<384x20xbf16>
    %c3 = arith.constant 3 : index
    %c0_11 = arith.constant 0 : index
    %c0_12 = arith.constant 0 : index
    %17 = vector.load %arg2[%c3, %c0_11, %c0_12] : memref<5x20x128xbf16, #tpu.memory_space<vmem>>, vector<1x20x128xbf16>
    %18 = vector.shape_cast %17 : vector<1x20x128xbf16> to vector<20x128xbf16>
    %cst_13 = arith.constant dense<0.000000e+00> : vector<384x128xf32>
    %19 = tpu.matmul %16, %18, %cst_13 {dimension_numbers = #tpu.dot_dimension_numbers<[1], [0], [0], [1], [0, 0, 1, 1], [], []>} : vector<384x20xbf16>, vector<20x128xbf16>, vector<384x128xf32> -> vector<384x128xf32>
    %20 = arith.addf %15, %19 : vector<384x128xf32>
    %21 = vector.extract_strided_slice %1 {offsets = [96, 0], sizes = [384, 20], strides = [1, 1]} : vector<480x20xbf16> to vector<384x20xbf16>
    %c4 = arith.constant 4 : index
    %c0_14 = arith.constant 0 : index
    %c0_15 = arith.constant 0 : index
    %22 = vector.load %arg2[%c4, %c0_14, %c0_15] : memref<5x20x128xbf16, #tpu.memory_space<vmem>>, vector<1x20x128xbf16>
    %23 = vector.shape_cast %22 : vector<1x20x128xbf16> to vector<20x128xbf16>
    %cst_16 = arith.constant dense<0.000000e+00> : vector<384x128xf32>
    %24 = tpu.matmul %21, %23, %cst_16 {dimension_numbers = #tpu.dot_dimension_numbers<[1], [0], [0], [1], [0, 0, 1, 1], [], []>} : vector<384x20xbf16>, vector<20x128xbf16>, vector<384x128xf32> -> vector<384x128xf32>
    %25 = arith.addf %20, %24 : vector<384x128xf32>
    %c0_17 = arith.constant 0 : index
    %c0_18 = arith.constant 0 : index
    %26 = vector.load %arg3[%c0_17, %c0_18] : memref<1x128xf32, #tpu.memory_space<vmem>>, vector<1x128xf32>
    %27 = vector.broadcast %26 : vector<1x128xf32> to vector<384x128xf32>
    %28 = arith.addf %25, %27 : vector<384x128xf32>
    %cst_19 = arith.constant 0.000000e+00 : f32
    %29 = vector.broadcast %cst_19 : f32 to vector<384x128xf32>
    %30 = arith.maximumf %28, %29 : vector<384x128xf32>
    %31 = vector.shape_cast %30 : vector<384x128xf32> to vector<8x2x24x128xf32>
    %32 = vector.extract_strided_slice %31 {offsets = [0, 0, 0, 0], sizes = [7, 1, 24, 128], strides = [1, 1, 1, 1]} : vector<8x2x24x128xf32> to vector<7x1x24x128xf32>
    %33 = vector.shape_cast %32 : vector<7x1x24x128xf32> to vector<7x24x128xf32>
    %34 = vector.extract_strided_slice %31 {offsets = [0, 1, 0, 0], sizes = [7, 1, 24, 128], strides = [1, 1, 1, 1]} : vector<8x2x24x128xf32> to vector<7x1x24x128xf32>
    %35 = vector.shape_cast %34 : vector<7x1x24x128xf32> to vector<7x24x128xf32>
    %36 = arith.maximumf %33, %35 : vector<7x24x128xf32>
    %37 = vector.extract_strided_slice %31 {offsets = [1, 0, 0, 0], sizes = [7, 1, 24, 128], strides = [1, 1, 1, 1]} : vector<8x2x24x128xf32> to vector<7x1x24x128xf32>
    %38 = vector.shape_cast %37 : vector<7x1x24x128xf32> to vector<7x24x128xf32>
    %39 = arith.maximumf %36, %38 : vector<7x24x128xf32>
    %40 = vector.shape_cast %39 : vector<7x24x128xf32> to vector<7x12x2x128xf32>
    %41 = vector.extract_strided_slice %40 {offsets = [0, 0, 0, 0], sizes = [7, 12, 1, 128], strides = [1, 1, 1, 1]} : vector<7x12x2x128xf32> to vector<7x12x1x128xf32>
    %42 = vector.shape_cast %41 : vector<7x12x1x128xf32> to vector<7x12x128xf32>
    %43 = vector.extract_strided_slice %40 {offsets = [0, 0, 1, 0], sizes = [7, 12, 1, 128], strides = [1, 1, 1, 1]} : vector<7x12x2x128xf32> to vector<7x12x1x128xf32>
    %44 = vector.shape_cast %43 : vector<7x12x1x128xf32> to vector<7x12x128xf32>
    %45 = vector.extract_strided_slice %42 {offsets = [0, 0, 0], sizes = [7, 7, 128], strides = [1, 1, 1]} : vector<7x12x128xf32> to vector<7x7x128xf32>
    %46 = vector.extract_strided_slice %44 {offsets = [0, 0, 0], sizes = [7, 7, 128], strides = [1, 1, 1]} : vector<7x12x128xf32> to vector<7x7x128xf32>
    %47 = arith.maximumf %45, %46 : vector<7x7x128xf32>
    %48 = vector.extract_strided_slice %42 {offsets = [0, 1, 0], sizes = [7, 7, 128], strides = [1, 1, 1]} : vector<7x12x128xf32> to vector<7x7x128xf32>
    %49 = arith.maximumf %47, %48 : vector<7x7x128xf32>
    %50 = arith.mulf %49, %49 : vector<7x7x128xf32>
    %c1_i32 = arith.constant 1 : i32
    %51 = tpu.dynamic_rotate %50 by %c1_i32 dim 2 : vector<7x7x128xf32>, i32 -> vector<7x7x128xf32>
    %52 = arith.addf %50, %51 : vector<7x7x128xf32>
    %c127_i32 = arith.constant 127 : i32
    %53 = tpu.dynamic_rotate %50 by %c127_i32 dim 2 : vector<7x7x128xf32>, i32 -> vector<7x7x128xf32>
    %54 = arith.addf %52, %53 : vector<7x7x128xf32>
    %c2_i32 = arith.constant 2 : i32
    %55 = tpu.dynamic_rotate %50 by %c2_i32 dim 2 : vector<7x7x128xf32>, i32 -> vector<7x7x128xf32>
    %56 = arith.addf %54, %55 : vector<7x7x128xf32>
    %c126_i32 = arith.constant 126 : i32
    %57 = tpu.dynamic_rotate %50 by %c126_i32 dim 2 : vector<7x7x128xf32>, i32 -> vector<7x7x128xf32>
    %58 = arith.addf %56, %57 : vector<7x7x128xf32>
    %cst_20 = arith.constant 2.000000e-05 : f32
    %59 = vector.broadcast %cst_20 : f32 to vector<7x7x128xf32>
    %60 = arith.mulf %59, %58 : vector<7x7x128xf32>
    %cst_21 = arith.constant 1.000000e+00 : f32
    %61 = vector.broadcast %cst_21 : f32 to vector<7x7x128xf32>
    %62 = arith.addf %61, %60 : vector<7x7x128xf32>
    %63 = math.rsqrt %62 : vector<7x7x128xf32>
    %64 = math.sqrt %63 : vector<7x7x128xf32>
    %65 = arith.mulf %63, %64 : vector<7x7x128xf32>
    %66 = arith.mulf %49, %65 : vector<7x7x128xf32>
    %67 = arith.truncf %66 : vector<7x7x128xf32> to vector<7x7x128xbf16>
    %c0_22 = arith.constant 0 : index
    %c0_23 = arith.constant 0 : index
    %c0_24 = arith.constant 0 : index
    %c0_25 = arith.constant 0 : index
    %68 = vector.load %arg4[%c0_22, %c0_23, %c0_24, %c0_25] : memref<1x7x7x128xbf16, #tpu.memory_space<vmem>>, vector<1x7x7x128xbf16>
    %69 = vector.shape_cast %68 : vector<1x7x7x128xbf16> to vector<7x7x128xbf16>
    %70 = vector.shape_cast %67 : vector<7x7x128xbf16> to vector<1x7x7x128xbf16>
    tpu.vector_store %arg4[%c0_22, %c0_23, %c0_24, %c0_25], %70 {strides = array<i32>} : memref<1x7x7x128xbf16, #tpu.memory_space<vmem>>, vector<1x7x7x128xbf16>,
    return
  }
  func.func @transform_0(%arg0: i32) -> (i32, i32, i32) {
    %c0_i32 = arith.constant 0 : i32
    %c0_i32_0 = arith.constant 0 : i32
    %c0_i32_1 = arith.constant 0 : i32
    return %arg0, %c0_i32, %c0_i32_0 : i32, i32, i32
  }
  func.func @transform_1(%arg0: i32) -> (i32, i32, i32) {
    %c0_i32 = arith.constant 0 : i32
    %c0_i32_0 = arith.constant 0 : i32
    %c0_i32_1 = arith.constant 0 : i32
    %c0_i32_2 = arith.constant 0 : i32
    return %c0_i32, %c0_i32_0, %c0_i32_1 : i32, i32, i32
  }
  func.func @transform_2(%arg0: i32) -> (i32, i32) {
    %c0_i32 = arith.constant 0 : i32
    %c0_i32_0 = arith.constant 0 : i32
    %c0_i32_1 = arith.constant 0 : i32
    return %c0_i32, %c0_i32_0 : i32, i32
  }
  func.func @transform_3(%arg0: i32) -> (i32, i32, i32, i32) {
    %c0_i32 = arith.constant 0 : i32
    %c0_i32_0 = arith.constant 0 : i32
    %c0_i32_1 = arith.constant 0 : i32
    %c0_i32_2 = arith.constant 0 : i32
    return %arg0, %c0_i32, %c0_i32_0, %c0_i32_1 : i32, i32, i32, i32
  }
}

</mosaic_0001>

<bundles_post_ra>
// kernel: tpu_custom_call.1
= control target key start
LH: loop header
LB: loop body
LE: loop exit
PB: predicated region body
PF: predicated region fallthrough
CT: control target
= control target key end

     0   :  { %s5897_s12 = smov 0   ;;  %s8418_s0 = inlined_call_operand.vmem [shape: bf16[2,480,20], index: 0, kind: input, shape index: {}]   ;;  %s8419_s1 = inlined_call_operand.vmem [shape: bf16[5,20,128], index: 1, kind: input, shape index: {}]   ;;  %s8420_s2 = inlined_call_operand.vmem [shape: f32[1,128], index: 2, kind: input, shape index: {}]   ;;  %s8421_s3 = inlined_call_operand.vmem [shape: bf16[2,7,7,128], index: 3, kind: output, shape index: {}]  }
   0x1 LB: > { %s4829_s13 = sadd.s32 4294967295, %s5870_s12   ;;  %p4833_p0 = scmp.ge.s32.totalorder %s5870_s12, 1  ;;  %s5870_s12 = sphi %s5897_s12, %s13_s12  }
   0x2   : > { %p137_p1 = scmp.lt.s32.totalorder %s5870_s12, 3 }
   0x4   : > { %p138_p2 = pnand %p4833_p0, %p137_p1 }
   0x6   : > { %141 = sbr.rel (%p138_p2) target bundleno = 889 (0x379), region = 32 }
   0xd   : > { %v5600_v0 = vld [vmem:[%s8419_s1 + $0xc] sm:$0xff]   ;;  %vm441_vm0 = vcmask 1041408   ;;  %v5601_v1 = vld [vmem:[%s8419_s1 + $0x14] ss:$0 sps:$4 sm:$0x33]   ;;  %p161_p3 = scmp.lt.s32.totalorder %s4829_s13, 1 }
   0xe   : > { %5315 = vmatprep.subr.bf16.mxu0 %v5600_v0  ;;  %5575 = vmatprep.subr.bf16.mxu1 %v5600_v0  ;;  %v443_v2 = vsel %vm441_vm0, %v5601_v1, 0  ;;  %v5611_v3 = vld [vmem:[%s8419_s1] sm:$0xff]   ;;  %v5612_v4 = vld [vmem:[%s8419_s1 + $0x18] sm:$0xff]   ;;  %vm368_vm1 = vcmask 162816   ;;  %v6001_v33 = vld [vmem:[%s8419_s1 + $0x30] sm:$0xff]   ;;  %vm2728_vm2 = vcmask 1041409  }
   0xf   : > { %5316 = vmatpush3.bf16.msra.mxu0 %v5600_v0  ;;  %5577 = vmatpush3.bf16.msra.mxu1 %v5600_v0  ;;  %s8730_s13 = smov (!%p161_p3, %s4829_s13), 1  ;;  %v5627_v7 = vld [vmem:[%s8419_s1 + $0x20] ss:$0 sps:$4 sm:$0x33]   ;;  %v6021_v41 = vld [vmem:[%s8419_s1 + $0x24] sm:$0xff]   ;;  %vm8510_vm3 = vcmask 1042434  }
  0x10   : > { %5579 = vmatprep.subr.msk.bf16.mxu0 %vm441_vm0, %v5601_v1  ;;  %5580 = vmatprep.subr.msk.bf16.mxu1 %vm441_vm0, %v5601_v1  ;;  %s5585_s22 = smul.u32 240, %s8730_s13  ;;  %v5626_v14 = vld [vmem:[%s8419_s1 + $0x8] ss:$0 sps:$4 sm:$0x33]   ;;  %v1005_v32 = vsel %vm441_vm0, %v5627_v7, 0  ;;  %vm8505_vm4 = vcmask 1043459  }
  0x11   : > { %v764_v40 = vsel %vm441_vm0, %v5626_v14, 0  ;;  %vm8504_vm5 = vcmask 1044484   ;;  %vm8503_vm6 = vcmask 1045509   ;;  %vm8502_vm7 = vcmask 1046534   ;;  %s5873_s15 = smov 127   ;;  %s5874_s16 = smov 1  }
  0x12   : > { %s5926_s25 = scalar_lea.vmem %s8418_s0, %s5585_s22  ;;  %s5875_s17 = smov 126  }
  0x13   : > { %5318 = vmatpush3.bf16.msra.mxu0 %v443_v2  ;;  %5578 = vmatpush3.bf16.msra.mxu1 %v443_v2  ;;  %v5929_v5 = vld [vmem:[%s5926_s25 + $0xc] sm:$0xf]  ;;  %v5932_v6 = vld [vmem:[%s5926_s25 + $0x10] sm:$0xf]  ;;  %v5938_v8 = vld [vmem:[%s5926_s25 + $0x14] sm:$0xf] }
  0x14   : > { %5367 = vmatprep.subr.bf16.mxu1 %v5611_v3  ;;  %5419 = vmatprep.subr.bf16.mxu0 %v5612_v4  ;;  %v5941_v9 = vld [vmem:[%s5926_s25 + $0x18] sm:$0xf]  ;;  %v4839_v10 = vcombine.low %v5929_v5, %v5932_v6  ;;  %v5948_v12 = vld [vmem:[%s5926_s25 + $0x6c] sm:$0xf]  ;;  %v200_v13 = vld [vmem:[%s5926_s25 + $0x70] sm:$0xf] }
  0x15   : > { %v4840_v11 = vcombine.low %v5938_v8, %v5941_v9  ;;  %v201_v15 = vld [vmem:[%s5926_s25 + $0x74] sm:$0xf]  ;;  %v202_v16 = vld [vmem:[%s5926_s25 + $0x78] sm:$0xf]  ;;  %v5958_v17 = vcombine.low %v5948_v12, %v200_v13  ;;  %v5961_v18 = vld [vmem:[%s5926_s25 + $0x1c] sm:$0xf] }
  0x16   : > { %5319 = vmatprep.mubr.msk.bf16.mxu0 %vm368_vm1, %v4839_v10  ;;  %v5963_v19 = vcombine.low %v201_v15, %v202_v16  ;;  %v5965_v20 = vcombine.low %v200_v13, %v201_v15  ;;  %v5969_v21 = vld [vmem:[%s5926_s25 + $0x20] sm:$0xf]  ;;  %v203_v22 = vld [vmem:[%s5926_s25 + $0x7c] sm:$0xf]  ;;  %v5980_v26 = vld [vmem:[%s5926_s25 + $0x24] sm:$0xf] }
  0x17   : > { %5320 = vmatmul.mubr.msk.bf16.vlgmr.msra.gmra.mrb[0].mxu0 %vm368_vm1, %v4840_v11  ;;  %v204_v23 = vld [vmem:[%s5926_s25 + $0x80] sm:$0xf]  ;;  %5343 = vmatprep.mubr.msk.bf16.mxu1 %vm368_vm1, %v5958_v17  ;;  %v4841_v24 = vcombine.low %v5961_v18, %v5969_v21  ;;  %v5983_v27 = vld [vmem:[%s5926_s25 + $0x28] sm:$0xf]  ;;  %v205_v28 = vld [vmem:[%s5926_s25 + $0x84] sm:$0xf]  ;;  %v5986_v29 = vcombine.low %v202_v16, %v203_v22 }
  0x18   : > { %5420 = vmatpush3.bf16.msra.mxu0 %v5612_v4  ;;  %v5977_v25 = vcombine.low %v203_v22, %v204_v23  ;;  %5344 = vmatmul.mubr.msk.bf16.vlgmr.msra.gmra.mrb[0].mxu1 %vm368_vm1, %v5963_v19  ;;  %v5991_v30 = vld [vmem:[%s5926_s25 + $0x2c] sm:$0xf]  ;;  %v5994_v31 = vld [vmem:[%s5926_s25 + $0x30] sm:$0xf]  ;;  %v6003_v34 = vcombine.low %v204_v23, %v205_v28  ;;  %v206_v35 = vld [vmem:[%s5926_s25 + $0x88] sm:$0xf]  ;;  %v6012_v37 = vcombine.low %v5980_v26, %v5983_v27 }
  0x19   : > { %5582 = vmatprep.subr.msk.bf16.mxu0 %vm441_vm0, %v5627_v7  ;;  %5368 = vmatpush3.bf16.msra.mxu1 %v5611_v3  ;;  %v207_v36 = vld [vmem:[%s5926_s25 + $0x8c] sm:$0xf]  ;;  %v208_v38 = vld [vmem:[%s5926_s25 + $0x90] sm:$0xf]  ;;  %v209_v39 = vld [vmem:[%s5926_s25 + $0x94] sm:$0xf]  ;;  %v6027_v43 = vcombine.low %v5991_v30, %v5994_v31  ;;  %v6033_v47 = vcombine.low %v205_v28, %v206_v35 }
  0x1a   : > { %5323 = vmatprep.mubr.msk.bf16.mxu0 %vm368_vm1, %v4841_v24  ;;  %5347 = vmatprep.mubr.msk.bf16.mxu1 %vm368_vm1, %v5977_v25  ;;  %v6023_v42 = vcombine.low %v206_v35, %v207_v36  ;;  %v210_v44 = vld [vmem:[%s5926_s25 + $0x98] sm:$0xf]  ;;  %v211_v45 = vld [vmem:[%s5926_s25 + $0x9c] sm:$0xf]  ;;  %v6031_v46 = vcombine.low %v208_v38, %v209_v39  ;;  %v6038_v49 = vcombine.low %v207_v36, %v208_v38  ;;  %v212_v50 = vld [vmem:[%s5926_s25 + $0xa0] sm:$0xf] }
  0x1b   : > { %5581 = vmatprep.subr.msk.bf16.mxu1 %vm441_vm0, %v5626_v14  ;;  %v6036_v48 = vcombine.low %v210_v44, %v211_v45  ;;  %v213_v51 = vld [vmem:[%s5926_s25 + $0xa4] sm:$0xf]  ;;  %v6045_v52 = vld [vmem:[%s5926_s25 + $0x34] sm:$0xf]  ;;  %v214_v53 = vld [vmem:[%s5926_s25 + $0xa8] sm:$0xf]  ;;  %v6089_v11 = vcombine.low %v209_v39, %v210_v44  ;;  %v6091_v13 = vcombine.low %v211_v45, %v212_v50 }
  0x1c   : > { %5422 = vmatpush3.bf16.msra.mxu0 %v1005_v32  ;;  %v215_v54 = vld [vmem:[%s5926_s25 + $0xac] sm:$0xf]  ;;  %v6050_v55 = vcombine.low %v212_v50, %v213_v51  ;;  %v6055_v56 = vld [vmem:[%s5926_s25 + $0x38] sm:$0xf]  ;;  %v216_v57 = vld [vmem:[%s5926_s25 + $0xb0] sm:$0xf]  ;;  %v6112_v28 = vcombine.low %v213_v51, %v214_v53 }
  0x1d   : > { %5523 = vmatprep.subr.bf16.mxu0 %v6001_v33  ;;  %5370 = vmatpush3.bf16.msra.mxu1 %v764_v40  ;;  %v217_v58 = vld [vmem:[%s5926_s25 + $0xb4] sm:$0xf]  ;;  %v6059_v59 = vcombine.low %v214_v53, %v215_v54  ;;  %v6064_v60 = vld [vmem:[%s5926_s25 + $0x3c] sm:$0xf]  ;;  %v6067_v61 = vld [vmem:[%s5926_s25 + $0x40] sm:$0xf]  ;;  %v6079_v3 = vcombine.low %v6045_v52, %v6055_v56  ;;  %v6114_v32 = vcombine.low %v215_v54, %v216_v57 }
  0x1e   : > { %5471 = vmatprep.subr.bf16.mxu1 %v6021_v41  ;;  %v218_v62 = vld [vmem:[%s5926_s25 + $0xb8] sm:$0xf]  ;;  %v6070_v63 = vcombine.low %v216_v57, %v217_v58  ;;  %v219_v0 = vld [vmem:[%s5926_s25 + $0xbc] sm:$0xf]  ;;  %v220_v1 = vld [vmem:[%s5926_s25 + $0xc0] sm:$0xf]  ;;  %v6087_v10 = vcombine.low %v6064_v60, %v6067_v61 }
  0x1f   : > { %5324 = vmatmul.mubr.msk.bf16.gmra.mrb[4].mxu0 %vm368_vm1, %v6012_v37  ;;  %v221_v2 = vld [vmem:[%s5926_s25 + $0xc4] sm:$0xf]  ;;  %v6081_v4 = vcombine.low %v218_v62, %v219_v0  ;;  %v190_v15 = vld [vmem:[%s5926_s25 + $0x48] sm:$0xf]  ;;  %v191_v16 = vld [vmem:[%s5926_s25 + $0x4c] sm:$0xf]  ;;  %v6132_v45 = vcombine.low %v217_v58, %v218_v62  ;;  %v6134_v50 = vcombine.low %v219_v0, %v220_v1  ;;  %v4892_v58 = vcombine.low %v5941_v9, %v5961_v18 }
  0x20   : > { %5327 = vmatprep.mubr.msk.bf16.mxu0 %vm368_vm1, %v6027_v43  ;;  %5348 = vmatmul.mubr.msk.bf16.gmra.mrb[4].mxu1 %vm368_vm1, %v6033_v47  ;;  %v6083_v7 = vcombine.low %v220_v1, %v221_v2  ;;  %v189_v14 = vld [vmem:[%s5926_s25 + $0x44] sm:$0xf]  ;;  %v6103_v22 = vld [vmem:[%s5926_s25 + $0x50] sm:$0xf]  ;;  %v193_v35 = vld [vmem:[%s5926_s25 + $0x54] sm:$0xf]  ;;  %v4894_v9 = vcombine.low %v5983_v27, %v5991_v30  ;;  %v4898_v27 = vcombine.low %v190_v15, %v191_v16 }
  0x21   : > { %5351 = vmatprep.mubr.msk.bf16.mxu1 %vm368_vm1, %v6038_v49  ;;  %v6107_v23 = vcombine.low %v189_v14, %v190_v15  ;;  %v6110_v24 = vcombine.low %v191_v16, %v6103_v22  ;;  %v194_v36 = vld [vmem:[%s5926_s25 + $0x58] sm:$0xf]  ;;  %v195_v38 = vld [vmem:[%s5926_s25 + $0x5c] sm:$0xf]  ;;  %v196_v39 = vld [vmem:[%s5926_s25 + $0x60] sm:$0xf]  ;;  %v4899_v30 = vcombine.low %v6103_v22, %v193_v35 }
  0x22   : > { %v6128_v40 = vcombine.low %v193_v35, %v194_v36  ;;  %v6130_v44 = vcombine.low %v195_v38, %v196_v39  ;;  %8511 = vst [vmem:[#allocation2_spill] sm:$0xff] %v6132_v45  ;;  %8512 = vst [vmem:[#allocation3_spill] sm:$0xff] %v6134_v50  ;;  %v197_v51 = vld [vmem:[%s5926_s25 + $0x64] sm:$0xf]  ;;  %v198_v53 = vld [vmem:[%s5926_s25 + $0x68] sm:$0xf] }
  0x23   : > { %v6147_v54 = vld [vmem:[%s5926_s25 + $0xc8] sm:$0xf]  ;;  %v6149_v57 = vcombine.low %v197_v51, %v198_v53  ;;  %v5635_v0 = vld [vmem:[%s5926_s25] sm:$0xff]   ;;  %s5876_s18 = smov 2   ;;  %s5586_s21 = smul.u32 28, %s8730_s13 }
  0x24   : > { %v6154_v62 = vcombine.low %v221_v2, %v6147_v54  ;;  %v174_v1 = vld [vmem:[%s5926_s25 + $0x8] sm:$0xf]  ;;  %v5650_v2 = vld [vmem:[%s8419_s1 + $0x38] ss:$0 sps:$4 sm:$0x33]  }
  0x25   : > { %v4890_v18 = vcombine.low %v174_v1, %v5929_v5  ;;  %v1547_v5 = vsel %vm441_vm0, %v5650_v2, 0  ;;  %s7489_s23 = scalar_lea.vmem %s8421_s3, %s5586_s21 }
  0x27   : > { %5328 = vmatmul.mubr.msk.bf16.gmra.mrb[8].mxu0 %vm368_vm1, %v6079_v3 }
  0x28   : > { %5331 = vmatprep.mubr.msk.bf16.mxu0 %vm368_vm1, %v6087_v10  ;;  %5352 = vmatmul.mubr.msk.bf16.gmra.mrb[8].mxu1 %vm368_vm1, %v6089_v11 }
  0x29   : > { %5355 = vmatprep.mubr.msk.bf16.mxu1 %vm368_vm1, %v6091_v13 }
  0x2f   : > { %5332 = vmatmul.mubr.msk.bf16.gmra.mrb[12].mxu0 %vm368_vm1, %v6107_v23 }
  0x30   : > { %5335 = vmatprep.mubr.msk.bf16.mxu0 %vm368_vm1, %v6110_v24  ;;  %5356 = vmatmul.mubr.msk.bf16.gmra.mrb[12].mxu1 %vm368_vm1, %v6112_v28 }
  0x31   : > { %5359 = vmatprep.mubr.msk.bf16.mxu1 %vm368_vm1, %v6114_v32 }
  0x37   : > { %5336 = vmatmul.mubr.msk.bf16.gmra.mrb[16].mxu0 %vm368_vm1, %v6128_v40 }
  0x38   : > { %5339 = vmatprep.mubr.msk.bf16.mxu0 %vm368_vm1, %v6130_v44  ;;  %5360 = vmatmul.mubr.msk.bf16.gmra.mrb[16].mxu1 %vm368_vm1, %v6132_v45  ;;  %v4891_v45 = vcombine.low %v5932_v6, %v5938_v8  ;;  %v4895_v6 = vcombine.low %v5994_v31, %v6045_v52  ;;  %v4900_v31 = vcombine.low %v194_v36, %v195_v38 }
  0x39   : > { %5363 = vmatprep.mubr.msk.bf16.mxu1 %vm368_vm1, %v6134_v50  ;;  %v4893_v50 = vcombine.low %v5969_v21, %v5980_v26  ;;  %v4896_v21 = vcombine.low %v6055_v56, %v6064_v60  ;;  %v4897_v26 = vcombine.low %v6067_v61, %v189_v14  ;;  %v6256_v56 = vld [vmem:[%s5926_s25 + $0xd0] sm:$0xf]  ;;  %v6259_v60 = vld [vmem:[%s5926_s25 + $0xd4] sm:$0xf] }
  0x3a   : > { %v4944_v61 = vcombine.low %v6256_v56, %v6259_v60 }
  0x3f   : > { %5340 = vmatmul.mubr.msk.bf16.gmra.mrb[20].mxu0 %vm368_vm1, %v6149_v57 }
  0x40   : > { %5423 = vmatprep.mubr.msk.bf16.mxu0 %vm368_vm1, %v4892_v58  ;;  %5364 = vmatmul.mubr.msk.bf16.gmra.mrb[20].mxu1 %vm368_vm1, %v6154_v62 }
  0x41   : > { %5371 = vmatprep.mubr.msk.bf16.mxu1 %vm368_vm1, %v5635_v0  ;;  %v5649_v0 = vld [vmem:[%s8419_s1 + $0x2c] ss:$0 sps:$4 sm:$0x33]  }
  0x42   : > { %v1276_v8 = vsel %vm441_vm0, %v5649_v0, 0 }
  0x47   : > { %5424 = vmatmul.mubr.msk.bf16.vlgmr.msra.gmra.mrb[24].mxu0 %vm368_vm1, %v4893_v50 }
  0x48   : > { %5524 = vmatpush3.bf16.msra.mxu0 %v6001_v33  ;;  %5427 = vmatprep.mubr.msk.bf16.mxu0 %vm368_vm1, %v4894_v9  ;;  %v4901_v33 = vcombine.low %v196_v39, %v197_v51 }
  0x49   : > { %5372 = vmatmul.mubr.msk.bf16.vlgmr.msra.gmra.mrb[24].mxu1 %vm368_vm1, %v4890_v18  ;;  %5584 = vmatprep.subr.msk.bf16.mxu0 %vm441_vm0, %v5650_v2 }
  0x4a   : > { %5472 = vmatpush3.bf16.msra.mxu1 %v6021_v41  ;;  %5375 = vmatprep.mubr.msk.bf16.mxu1 %vm368_vm1, %v4891_v45  ;;  %v4902_v41 = vcombine.low %v198_v53, %v5948_v12  ;;  %v6246_v12 = vld [vmem:[%s5926_s25 + $0xcc] sm:$0xf] }
  0x4b   : > { %5583 = vmatprep.subr.msk.bf16.mxu1 %vm441_vm0, %v5649_v0  ;;  %v4943_v52 = vcombine.low %v6147_v54, %v6246_v12 }
  0x4c   : > { %5526 = vmatpush3.bf16.msra.mxu0 %v1547_v5 }
  0x4e   : > { %5474 = vmatpush3.bf16.msra.mxu1 %v1276_v8 }
  0x4f   : > { %5428 = vmatmul.mubr.msk.bf16.gmra.mrb[28].mxu0 %vm368_vm1, %v4895_v6 }
  0x50   : > { %5431 = vmatprep.mubr.msk.bf16.mxu0 %vm368_vm1, %v4896_v21 }
  0x51   : > { %5376 = vmatmul.mubr.msk.bf16.gmra.mrb[28].mxu1 %vm368_vm1, %v4892_v58 }
  0x52   : > { %5379 = vmatprep.mubr.msk.bf16.mxu1 %vm368_vm1, %v4893_v50 }
  0x57   : > { %5432 = vmatmul.mubr.msk.bf16.gmra.mrb[32].mxu0 %vm368_vm1, %v4897_v26 }
  0x58   : > { %5435 = vmatprep.mubr.msk.bf16.mxu0 %vm368_vm1, %v4898_v27 }
  0x59   : > { %5380 = vmatmul.mubr.msk.bf16.gmra.mrb[32].mxu1 %vm368_vm1, %v4894_v9 }
  0x5a   : > { %5383 = vmatprep.mubr.msk.bf16.mxu1 %vm368_vm1, %v4895_v6 }
  0x5f   : > { %5436 = vmatmul.mubr.msk.bf16.gmra.mrb[36].mxu0 %vm368_vm1, %v4899_v30 }
  0x60   : > { %5439 = vmatprep.mubr.msk.bf16.mxu0 %vm368_vm1, %v4900_v31 }
  0x61   : > { %5384 = vmatmul.mubr.msk.bf16.gmra.mrb[36].mxu1 %vm368_vm1, %v4896_v21 }
  0x62   : > { %5387 = vmatprep.mubr.msk.bf16.mxu1 %vm368_vm1, %v4897_v26 }
  0x67   : > { %5440 = vmatmul.mubr.msk.bf16.gmra.mrb[40].mxu0 %vm368_vm1, %v4901_v33 }
  0x68   : > { %5443 = vmatprep.mubr.msk.bf16.mxu0 %vm368_vm1, %v4902_v41 }
  0x69   : > { %5388 = vmatmul.mubr.msk.bf16.gmra.mrb[40].mxu1 %vm368_vm1, %v4898_v27 }
  0x6a   : > { %5391 = vmatprep.mubr.msk.bf16.mxu1 %vm368_vm1, %v4899_v30 }
  0x6f   : > { %5444 = vmatmul.mubr.msk.bf16.gmra.mrb[44].mxu0 %vm368_vm1, %v5965_v20 }
  0x70   : > { %5447 = vmatprep.mubr.msk.bf16.mxu0 %vm368_vm1, %v5986_v29 }
  0x71   : > { %5392 = vmatmul.mubr.msk.bf16.gmra.mrb[44].mxu1 %vm368_vm1, %v4900_v31 }
  0x72   : > { %5395 = vmatprep.mubr.msk.bf16.mxu1 %vm368_vm1, %v4901_v33 }
  0x77   : > { %5448 = vmatmul.mubr.msk.bf16.gmra.mrb[48].mxu0 %vm368_vm1, %v6003_v34 }
  0x78   : > { %5451 = vmatprep.mubr.msk.bf16.mxu0 %vm368_vm1, %v6023_v42 }
  0x79   : > { %5396 = vmatmul.mubr.msk.bf16.gmra.mrb[48].mxu1 %vm368_vm1, %v4902_v41 }
  0x7a   : > { %5399 = vmatprep.mubr.msk.bf16.mxu1 %vm368_vm1, %v5965_v20 }
  0x7f   : > { %5452 = vmatmul.mubr.msk.bf16.gmra.mrb[52].mxu0 %vm368_vm1, %v6031_v46 }
  0x80   : > { %5455 = vmatprep.mubr.msk.bf16.mxu0 %vm368_vm1, %v6036_v48 }
  0x81   : > { %5400 = vmatmul.mubr.msk.bf16.gmra.mrb[52].mxu1 %vm368_vm1, %v5986_v29 }
  0x82   : > { %5403 = vmatprep.mubr.msk.bf16.mxu1 %vm368_vm1, %v6003_v34 }
  0x87   : > { %5456 = vmatmul.mubr.msk.bf16.gmra.mrb[56].mxu0 %vm368_vm1, %v6050_v55 }
  0x88   : > { %5459 = vmatprep.mubr.msk.bf16.mxu0 %vm368_vm1, %v6059_v59 }
  0x89   : > { %5404 = vmatmul.mubr.msk.bf16.gmra.mrb[56].mxu1 %vm368_vm1, %v6023_v42 }
  0x8a   : > { %5407 = vmatprep.mubr.msk.bf16.mxu1 %vm368_vm1, %v6031_v46 }
  0x8f   : > { %5460 = vmatmul.mubr.msk.bf16.gmra.mrb[60].mxu0 %vm368_vm1, %v6070_v63 }
  0x90   : > { %5463 = vmatprep.mubr.msk.bf16.mxu0 %vm368_vm1, %v6081_v4 }
  0x91   : > { %5408 = vmatmul.mubr.msk.bf16.gmra.mrb[60].mxu1 %vm368_vm1, %v6036_v48 }
  0x92   : > { %5411 = vmatprep.mubr.msk.bf16.mxu1 %vm368_vm1, %v6050_v55 }
  0x97   : > { %5464 = vmatmul.mubr.msk.bf16.gmra.mrb[64].mxu0 %vm368_vm1, %v6083_v7 }
  0x98   : > { %5467 = vmatprep.mubr.msk.bf16.mxu0 %vm368_vm1, %v4943_v52 }
  0x99   : > { %5412 = vmatmul.mubr.msk.bf16.gmra.mrb[64].mxu1 %vm368_vm1, %v6059_v59 }
  0x9a   : > { %5415 = vmatprep.mubr.msk.bf16.mxu1 %vm368_vm1, %v6070_v63 }
  0x9f   : > { %5468 = vmatmul.mubr.msk.bf16.gmra.mrb[68].mxu0 %vm368_vm1, %v4944_v61 }
  0xa0   : > { %5527 = vmatprep.mubr.msk.bf16.mxu0 %vm368_vm1, %v4895_v6 }
  0xa1   : > { %5416 = vmatmul.mubr.msk.bf16.gmra.mrb[68].mxu1 %vm368_vm1, %v6081_v4 }
  0xa2   : > { %5475 = vmatprep.mubr.msk.bf16.mxu1 %vm368_vm1, %v6012_v37 }
  0xa7   : > { %5528 = vmatmul.mubr.msk.bf16.vlgmr.msra.gmra.mrb[72].mxu0 %vm368_vm1, %v4896_v21 }
  0xa8   : > { %5531 = vmatprep.mubr.msk.bf16.mxu0 %vm368_vm1, %v4897_v26 }
  0xa9   : > { %5476 = vmatmul.mubr.msk.bf16.vlgmr.msra.gmra.mrb[72].mxu1 %vm368_vm1, %v6027_v43 }
  0xaa   : > { %5479 = vmatprep.mubr.msk.bf16.mxu1 %vm368_vm1, %v6079_v3 }
  0xaf   : > { %5532 = vmatmul.mubr.msk.bf16.gmra.mrb[76].mxu0 %vm368_vm1, %v4898_v27 }
  0xb0   : > { %5535 = vmatprep.mubr.msk.bf16.mxu0 %vm368_vm1, %v4899_v30 }
  0xb1   : > { %5480 = vmatmul.mubr.msk.bf16.gmra.mrb[76].mxu1 %vm368_vm1, %v6087_v10  ;;  %v4974_v10 = vcombine.low %v6246_v12, %v6256_v56 }
  0xb2   : > { %5483 = vmatprep.mubr.msk.bf16.mxu1 %vm368_vm1, %v6107_v23 }
  0xb7   : > { %5536 = vmatmul.mubr.msk.bf16.gmra.mrb[80].mxu0 %vm368_vm1, %v4900_v31 }
  0xb8   : > { %5539 = vmatprep.mubr.msk.bf16.mxu0 %vm368_vm1, %v4901_v33 }
  0xb9   : > { %5484 = vmatmul.mubr.msk.bf16.gmra.mrb[80].mxu1 %vm368_vm1, %v6110_v24 }
  0xba   : > { %5487 = vmatprep.mubr.msk.bf16.mxu1 %vm368_vm1, %v6128_v40 }
  0xbf   : > { %5540 = vmatmul.mubr.msk.bf16.gmra.mrb[84].mxu0 %vm368_vm1, %v4902_v41 }
  0xc0   : > { %5543 = vmatprep.mubr.msk.bf16.mxu0 %vm368_vm1, %v5965_v20 }
  0xc1   : > { %5488 = vmatmul.mubr.msk.bf16.gmra.mrb[84].mxu1 %vm368_vm1, %v6130_v44 }
  0xc2   : > { %5491 = vmatprep.mubr.msk.bf16.mxu1 %vm368_vm1, %v6149_v57 }
  0xc7   : > { %5544 = vmatmul.mubr.msk.bf16.gmra.mrb[88].mxu0 %vm368_vm1, %v5986_v29 }
  0xc8   : > { %5547 = vmatprep.mubr.msk.bf16.mxu0 %vm368_vm1, %v6003_v34 }
  0xc9   : > { %5492 = vmatmul.mubr.msk.bf16.gmra.mrb[88].mxu1 %vm368_vm1, %v5958_v17 }
  0xca   : > { %5495 = vmatprep.mubr.msk.bf16.mxu1 %vm368_vm1, %v5963_v19  ;;  %v8513_v19 = vld [vmem:[#allocation2_spill] sm:$0xff] }
  0xcf   : > { %5548 = vmatmul.mubr.msk.bf16.gmra.mrb[92].mxu0 %vm368_vm1, %v6023_v42 }
  0xd0   : > { %5551 = vmatprep.mubr.msk.bf16.mxu0 %vm368_vm1, %v6031_v46  ;;  %v6353_v46 = vld [vmem:[%s5926_s25 + $0xd8] sm:$0xf] }
  0xd1   : > { %5496 = vmatmul.mubr.msk.bf16.gmra.mrb[92].mxu1 %vm368_vm1, %v5977_v25 }
  0xd2   : > { %5499 = vmatprep.mubr.msk.bf16.mxu1 %vm368_vm1, %v6033_v47  ;;  %v6356_v47 = vld [vmem:[%s5926_s25 + $0xdc] sm:$0xf] }
  0xd7   : > { %5552 = vmatmul.mubr.msk.bf16.gmra.mrb[96].mxu0 %vm368_vm1, %v6036_v48  ;;  %v8514_v48 = vld [vmem:[#allocation3_spill] sm:$0xff] }
  0xd8   : > { %5555 = vmatprep.mubr.msk.bf16.mxu0 %vm368_vm1, %v6050_v55 }
  0xd9   : > { %5500 = vmatmul.mubr.msk.bf16.gmra.mrb[96].mxu1 %vm368_vm1, %v6038_v49 }
  0xda   : > { %5503 = vmatprep.mubr.msk.bf16.mxu1 %vm368_vm1, %v6089_v11 }
  0xdf   : > { %5556 = vmatmul.mubr.msk.bf16.gmra.mrb[100].mxu0 %vm368_vm1, %v6059_v59  ;;  %v5006_v59 = vcombine.low %v6353_v46, %v6356_v47 }
  0xe0   : > { %5559 = vmatprep.mubr.msk.bf16.mxu0 %vm368_vm1, %v6070_v63 }
  0xe1   : > { %5504 = vmatmul.mubr.msk.bf16.gmra.mrb[100].mxu1 %vm368_vm1, %v6091_v13 }
  0xe2   : > { %5507 = vmatprep.mubr.msk.bf16.mxu1 %vm368_vm1, %v6112_v28 }
  0xe7   : > { %5560 = vmatmul.mubr.msk.bf16.gmra.mrb[104].mxu0 %vm368_vm1, %v6081_v4 }
  0xe8   : > { %5563 = vmatprep.mubr.msk.bf16.mxu0 %vm368_vm1, %v6083_v7 }
  0xe9   : > { %5508 = vmatmul.mubr.msk.bf16.gmra.mrb[104].mxu1 %vm368_vm1, %v6114_v32 }
  0xea   : > { %v5321_v17 = vpop.f32.mrb[0].mxu0  ;;  %5511 = vmatprep.mubr.msk.bf16.mxu1 %vm368_vm1, %v8513_v19 }
  0xeb   : > { %v6338_v20 = vpop.f32.mrb[1].mxu0  ;;  %v5345_v25 = vpop.f32.mrb[0].mxu1 }
  0xec   : > { %v6340_v29 = vpop.f32.mrb[2].mxu0  ;;  %v6342_v34 = vpop.f32.mrb[1].mxu1 }
  0xed   : > { %v6344_v37 = vpop.f32.mrb[3].mxu0  ;;  %v6346_v42 = vpop.f32.mrb[2].mxu1 }
  0xee   : > { %v6348_v43 = vpop.f32.mrb[3].mxu1 }
  0xef   : > { %5564 = vmatmul.mubr.msk.bf16.gmra.mrb[108].mxu0 %vm368_vm1, %v4943_v52 }
  0xf0   : > { %5567 = vmatprep.mubr.msk.bf16.mxu0 %vm368_vm1, %v4944_v61 }
  0xf1   : > { %5512 = vmatmul.mubr.msk.bf16.gmra.mrb[108].mxu1 %vm368_vm1, %v8514_v48 }
  0xf2   : > { %v6360_v49 = vpop.f32.mrb[4].mxu0  ;;  %5515 = vmatprep.mubr.msk.bf16.mxu1 %vm368_vm1, %v6154_v62 }
  0xf3   : > { %v6364_v55 = vpop.f32.mrb[5].mxu0  ;;  %v6368_v63 = vpop.f32.mrb[4].mxu1 }
  0xf4   : > { %v6370_v3 = vpop.f32.mrb[6].mxu0  ;;  %v6372_v4 = vpop.f32.mrb[5].mxu1 }
  0xf5   : > { %v497_v7 = vpop.f32.mrb[7].mxu0  ;;  %v6376_v11 = vpop.f32.mrb[6].mxu1 }
  0xf6   : > { %v585_v13 = vpop.f32.mrb[7].mxu1 }
  0xf7   : > { %5568 = vmatmul.mubr.msk.bf16.gmra.mrb[112].mxu0 %vm368_vm1, %v5006_v59 }
  0xf9   : > { %5516 = vmatmul.mubr.msk.bf16.gmra.mrb[112].mxu1 %vm368_vm1, %v4974_v10 }
  0xfa   : > { %v6380_v14 = vpop.f32.mrb[8].mxu0 }
  0xfb   : > { %v509_v15 = vpop.f32.mrb[9].mxu0  ;;  %v6382_v16 = vpop.f32.mrb[8].mxu1 }
  0xfc   : > { %v5330_v22 = vpop.f32.mrb[10].mxu0  ;;  %v597_v23 = vpop.f32.mrb[9].mxu1 }
  0xfd   : > { %v6384_v24 = vpop.f32.mrb[11].mxu0  ;;  %v5354_v28 = vpop.f32.mrb[10].mxu1 }
  0xfe   : > { %v6386_v32 = vpop.f32.mrb[11].mxu1 }
 0x102   : > { %v5333_v35 = vpop.f32.mrb[12].mxu0 }
 0x103   : > { %v6388_v36 = vpop.f32.mrb[13].mxu0  ;;  %v5357_v38 = vpop.f32.mrb[12].mxu1 }
 0x104   : > { %v6390_v39 = vpop.f32.mrb[14].mxu0  ;;  %v6392_v40 = vpop.f32.mrb[13].mxu1 }
 0x105   : > { %v6394_v44 = vpop.f32.mrb[15].mxu0  ;;  %v6396_v45 = vpop.f32.mrb[14].mxu1 }
 0x106   : > { %v6398_v50 = vpop.f32.mrb[15].mxu1 }
 0x10a   : > { %v6400_v51 = vpop.f32.mrb[16].mxu0 }
 0x10b   : > { %v6402_v53 = vpop.f32.mrb[17].mxu0  ;;  %v6404_v54 = vpop.f32.mrb[16].mxu1 }
 0x10c   : > { %v6406_v57 = vpop.f32.mrb[18].mxu0  ;;  %v6408_v58 = vpop.f32.mrb[17].mxu1 }
 0x10d   : > { %v541_v62 = vpop.f32.mrb[19].mxu0  ;;  %v6410_v1 = vpop.f32.mrb[18].mxu1 }
 0x10e   : > { %v629_v9 = vpop.f32.mrb[19].mxu1 }
 0x112   : > { %v6412_v18 = vpop.f32.mrb[20].mxu0 }
 0x113   : > { %v553_v2 = vpop.f32.mrb[21].mxu0  ;;  %v5365_v0 = vpop.f32.mrb[20].mxu1 }
 0x114   : > { %v5342_v5 = vpop.f32.mrb[22].mxu0  ;;  %v641_v6 = vpop.f32.mrb[21].mxu1 }
 0x115   : > { %v6414_v8 = vpop.f32.mrb[23].mxu0  ;;  %v5366_v21 = vpop.f32.mrb[22].mxu1 }
 0x116   : > { %v643_v26 = vpop.f32.mrb[23].mxu1 }
 0x11a   : > { %v5425_v27 = vpop.f32.mrb[24].mxu0 }
 0x11b   : > { %v1041_v30 = vpop.f32.mrb[25].mxu0 }
 0x11c   : > { %v5373_v31 = vpop.f32.mrb[24].mxu1  ;;  %v5426_v33 = vpop.f32.mrb[26].mxu0 }
 0x11d   : > { %v800_v41 = vpop.f32.mrb[25].mxu1  ;;  %v1044_v12 = vpop.f32.mrb[27].mxu0 }
 0x11e   : > { %v801_v52 = vadd.f32 %v800_v41, %v6338_v20  ;;  %v5374_v56 = vpop.f32.mrb[26].mxu1 }
 0x11f   : > { %v811_v61 = vadd.f32 %v5374_v56, %v6340_v29  ;;  %v803_v17 = vpop.f32.mrb[27].mxu1 }
 0x120   : > { %v6418_v19 = vadd.f32 %v1041_v30, %v801_v52  ;;  %v804_v25 = vadd.f32 %v803_v17, %v6344_v37 }
 0x121   : > { %v6421_v48 = vadd.f32 %v5426_v33, %v811_v61 }
 0x122   : > { %v6423_v59 = vadd.f32 %v1044_v12, %v804_v25  ;;  %v5429_v7 = vpop.f32.mrb[28].mxu0 }
 0x123   : > { %v1056_v10 = vpop.f32.mrb[29].mxu0 }
 0x124   : > { %v5377_v13 = vpop.f32.mrb[28].mxu1  ;;  %v5430_v15 = vpop.f32.mrb[30].mxu0 }
 0x125   : > { %v823_v22 = vadd.f32 %v5377_v13, %v6360_v49  ;;  %v815_v23 = vpop.f32.mrb[29].mxu1  ;;  %v1059_v20 = vpop.f32.mrb[31].mxu0 }
 0x126   : > { %v816_v28 = vadd.f32 %v815_v23, %v6364_v55  ;;  %v5378_v29 = vpop.f32.mrb[30].mxu1 }
 0x127   : > { %v6427_v35 = vadd.f32 %v5429_v7, %v823_v22  ;;  %v826_v38 = vadd.f32 %v5378_v29, %v6370_v3  ;;  %v818_v37 = vpop.f32.mrb[31].mxu1 }
 0x128   : > { %v6430_v62 = vadd.f32 %v1056_v10, %v816_v28 }
 0x129   : > { %v6432_v9 = vadd.f32 %v5430_v15, %v826_v38 }
 0x12a   : > { %v5433_v2 = vpop.f32.mrb[32].mxu0 }
 0x12b   : > { %v1071_v0 = vpop.f32.mrb[33].mxu0 }
 0x12c   : > { %v5381_v5 = vpop.f32.mrb[32].mxu1  ;;  %v5434_v6 = vpop.f32.mrb[34].mxu0 }
 0x12d   : > { %v838_v49 = vadd.f32 %v5381_v5, %v6380_v14  ;;  %v830_v21 = vpop.f32.mrb[33].mxu1  ;;  %v1073_v26 = vpop.f32.mrb[35].mxu0 }
 0x12e   : > { %v5382_v27 = vpop.f32.mrb[34].mxu1 }
 0x12f   : > { %v6435_v55 = vadd.f32 %v5433_v2, %v838_v49  ;;  %v832_v30 = vpop.f32.mrb[35].mxu1 }
 0x130   : > { %v833_v31 = vadd.f32 %v832_v30, %v6384_v24 }
 0x132   : > { %v6438_v3 = vadd.f32 %v1073_v26, %v833_v31  ;;  %v5437_v33 = vpop.f32.mrb[36].mxu0 }
 0x133   : > { %v1085_v41 = vpop.f32.mrb[37].mxu0 }
 0x134   : > { %v5385_v12 = vpop.f32.mrb[36].mxu1  ;;  %v5438_v52 = vpop.f32.mrb[38].mxu0 }
 0x135   : > { %v844_v56 = vpop.f32.mrb[37].mxu1  ;;  %v1088_v61 = vpop.f32.mrb[39].mxu0 }
 0x136   : > { %v845_v17 = vadd.f32 %v844_v56, %v6388_v36  ;;  %v5386_v25 = vpop.f32.mrb[38].mxu1 }
 0x137   : > { %v855_v14 = vadd.f32 %v5386_v25, %v6390_v39  ;;  %v847_v7 = vpop.f32.mrb[39].mxu1 }
 0x138   : > { %v6442_v10 = vadd.f32 %v1085_v41, %v845_v17  ;;  %v848_v13 = vadd.f32 %v847_v7, %v6394_v44 }
 0x139   : > { %v6445_v15 = vadd.f32 %v5438_v52, %v855_v14 }
 0x13a   : > { %v6447_v24 = vadd.f32 %v1088_v61, %v848_v13  ;;  %v5441_v22 = vpop.f32.mrb[40].mxu0 }
 0x13b   : > { %v1100_v23 = vpop.f32.mrb[41].mxu0 }
 0x13c   : > { %v5389_v20 = vpop.f32.mrb[40].mxu1  ;;  %v5442_v28 = vpop.f32.mrb[42].mxu0 }
 0x13d   : > { %v867_v29 = vadd.f32 %v5389_v20, %v6400_v51  ;;  %v859_v38 = vpop.f32.mrb[41].mxu1  ;;  %v1103_v36 = vpop.f32.mrb[43].mxu0 }
 0x13e   : > { %v860_v37 = vadd.f32 %v859_v38, %v6402_v53  ;;  %v5390_v39 = vpop.f32.mrb[42].mxu1 }
 0x13f   : > { %v6451_v2 = vadd.f32 %v5441_v22, %v867_v29  ;;  %v870_v0 = vadd.f32 %v5390_v39, %v6406_v57  ;;  %v862_v44 = vpop.f32.mrb[43].mxu1 }
 0x140   : > { %v6454_v5 = vadd.f32 %v1100_v23, %v860_v37 }
 0x141   : > { %v6456_v6 = vadd.f32 %v5442_v28, %v870_v0 }
 0x142   : > { %v5445_v49 = vpop.f32.mrb[44].mxu0 }
 0x143   : > { %v1115_v21 = vpop.f32.mrb[45].mxu0 }
 0x144   : > { %v5393_v26 = vpop.f32.mrb[44].mxu1  ;;  %v5446_v27 = vpop.f32.mrb[46].mxu0 }
 0x145   : > { %v882_v51 = vadd.f32 %v5393_v26, %v6412_v18  ;;  %v874_v30 = vpop.f32.mrb[45].mxu1  ;;  %v1117_v31 = vpop.f32.mrb[47].mxu0 }
 0x146   : > { %v5394_v33 = vpop.f32.mrb[46].mxu1 }
 0x147   : > { %v6459_v53 = vadd.f32 %v5445_v49, %v882_v51  ;;  %v876_v41 = vpop.f32.mrb[47].mxu1 }
 0x148   : > { %v877_v12 = vadd.f32 %v876_v41, %v6414_v8 }
 0x14a   : > { %v6462_v57 = vadd.f32 %v1117_v31, %v877_v12  ;;  %v5449_v52 = vpop.f32.mrb[48].mxu0 }
 0x14b   : > { %v1129_v56 = vpop.f32.mrb[49].mxu0 }
 0x14c   : > { %v5397_v61 = vpop.f32.mrb[48].mxu1  ;;  %v5450_v17 = vpop.f32.mrb[50].mxu0 }
 0x14d   : > { %v888_v25 = vpop.f32.mrb[49].mxu1  ;;  %v1132_v14 = vpop.f32.mrb[51].mxu0  ;;  %v228_v61 = vld [vmem:[%s5926_s25 + $0xe0] sm:$0xf] }
 0x14e   : > { %v889_v7 = vadd.f32 %v888_v25, %v6342_v34  ;;  %v5398_v13 = vpop.f32.mrb[50].mxu1  ;;  %v4975_v25 = vcombine.low %v6259_v60, %v6353_v46 }
 0x14f   : > { %v899_v18 = vadd.f32 %v5398_v13, %v6346_v42  ;;  %v891_v22 = vpop.f32.mrb[51].mxu1  ;;  %v5666_v13 = vld [vmem:[%s5926_s25 + $0xe8] sm:$0xff]  }
 0x150   : > { %v6466_v23 = vadd.f32 %v1129_v56, %v889_v7  ;;  %v892_v20 = vadd.f32 %v891_v22, %v6348_v43  ;;  %v4976_v7 = vcombine.low %v6356_v47, %v228_v61  ;;  %5519 = vmatprep.mubr.msk.bf16.mxu1 %vm368_vm1, %v4975_v25 }
 0x151   : > { %v6469_v28 = vadd.f32 %v5450_v17, %v899_v18 }
 0x152   : > { %v6471_v8 = vadd.f32 %v1132_v14, %v892_v20  ;;  %v5453_v29 = vpop.f32.mrb[52].mxu0  ;;  %5520 = vmatmul.mubr.msk.bf16.gmra.mrb[116].mxu1 %vm368_vm1, %v4976_v7 }
 0x153   : > { %v1144_v38 = vpop.f32.mrb[53].mxu0 }
 0x154   : > { %v5401_v36 = vpop.f32.mrb[52].mxu1  ;;  %v5454_v37 = vpop.f32.mrb[54].mxu0 }
 0x155   : > { %v911_v39 = vadd.f32 %v5401_v36, %v6368_v63  ;;  %v903_v0 = vpop.f32.mrb[53].mxu1  ;;  %v1147_v34 = vpop.f32.mrb[55].mxu0 }
 0x156   : > { %v904_v44 = vadd.f32 %v903_v0, %v6372_v4  ;;  %v5402_v42 = vpop.f32.mrb[54].mxu1 }
 0x157   : > { %v6475_v49 = vadd.f32 %v5453_v29, %v911_v39  ;;  %v914_v43 = vadd.f32 %v5402_v42, %v6376_v11  ;;  %v906_v21 = vpop.f32.mrb[55].mxu1  ;;  %v229_v11 = vld [vmem:[%s5926_s25 + $0xe4] sm:$0xf] }
 0x158   : > { %v6478_v26 = vadd.f32 %v1144_v38, %v904_v44  ;;  %v5007_v14 = vcombine.low %v228_v61, %v229_v11 }
 0x159   : > { %v6480_v27 = vadd.f32 %v5454_v37, %v914_v43 }
 0x15a   : > { %v5457_v51 = vpop.f32.mrb[56].mxu0  ;;  %5571 = vmatprep.mubr.msk.bf16.mxu0 %vm368_vm1, %v5007_v14 }
 0x15b   : > { %v1159_v30 = vpop.f32.mrb[57].mxu0  ;;  %5572 = vmatmul.mubr.msk.bf16.gmra.mrb[116].mxu0 %vm368_vm1, %v5666_v13 }
 0x15c   : > { %v5405_v63 = vpop.f32.mrb[56].mxu1  ;;  %v5458_v31 = vpop.f32.mrb[58].mxu0 }
 0x15d   : > { %v926_v33 = vadd.f32 %v5405_v63, %v6382_v16  ;;  %v918_v4 = vpop.f32.mrb[57].mxu1  ;;  %v1161_v41 = vpop.f32.mrb[59].mxu0 }
 0x15e   : > { %v5406_v12 = vpop.f32.mrb[58].mxu1 }
 0x15f   : > { %v6483_v52 = vadd.f32 %v5457_v51, %v926_v33  ;;  %v920_v56 = vpop.f32.mrb[59].mxu1 }
 0x160   : > { %v921_v17 = vadd.f32 %v920_v56, %v6386_v32 }
 0x162   : > { %v6492_v18 = vadd.f32 %v1161_v41, %v921_v17  ;;  %v5461_v16 = vpop.f32.mrb[60].mxu0 }
 0x163   : > { %v1173_v22 = vpop.f32.mrb[61].mxu0 }
 0x164   : > { %v5409_v32 = vpop.f32.mrb[60].mxu1  ;;  %v5462_v20 = vpop.f32.mrb[62].mxu0 }
 0x165   : > { %v932_v29 = vpop.f32.mrb[61].mxu1  ;;  %v1176_v60 = vpop.f32.mrb[63].mxu0 }
 0x166   : > { %v933_v46 = vadd.f32 %v932_v29, %v6392_v40  ;;  %v5410_v47 = vpop.f32.mrb[62].mxu1  ;;  %v6520_v29 = vld [vmem:[%s8420_s2] ss:$0 sm:$0xff] }
 0x167   : > { %v943_v38 = vadd.f32 %v5410_v47, %v6396_v45  ;;  %v935_v36 = vpop.f32.mrb[63].mxu1 }
 0x168   : > { %v6500_v37 = vadd.f32 %v1173_v22, %v933_v46  ;;  %v936_v39 = vadd.f32 %v935_v36, %v6398_v50 }
 0x169   : > { %v6503_v0 = vadd.f32 %v5462_v20, %v943_v38 }
 0x16a   : > { %v6505_v34 = vadd.f32 %v1176_v60, %v936_v39  ;;  %v5465_v44 = vpop.f32.mrb[64].mxu0 }
 0x16b   : > { %v1188_v42 = vpop.f32.mrb[65].mxu0 }
 0x16c   : > { %v5413_v43 = vpop.f32.mrb[64].mxu1  ;;  %v5466_v21 = vpop.f32.mrb[66].mxu0 }
 0x16d   : > { %v955_v51 = vadd.f32 %v5413_v43, %v6404_v54  ;;  %v947_v30 = vpop.f32.mrb[65].mxu1  ;;  %v1191_v40 = vpop.f32.mrb[67].mxu0  ;;  %v5872_v43 = vmov 1983009808  }
 0x16e   : > { %v948_v63 = vadd.f32 %v947_v30, %v6408_v58  ;;  %v5414_v45 = vpop.f32.mrb[66].mxu1 }
 0x16f   : > { %v6509_v31 = vadd.f32 %v5465_v44, %v955_v51  ;;  %v958_v33 = vadd.f32 %v5414_v45, %v6410_v1  ;;  %v950_v50 = vpop.f32.mrb[67].mxu1  ;;  %v1899_v51 = vlaneseq }
 0x170   : > { %v6512_v4 = vadd.f32 %v1188_v42, %v948_v63 }
 0x171   : > { %v6514_v41 = vadd.f32 %v5466_v21, %v958_v33  ;;  %v1897_v21 = vunpack.c.l.s4 %v5872_v43 }
 0x172   : > { %8515 = vst [vmem:[#allocation2_spill] sm:$0xff] %v6512_v4  ;;  %v5469_v12 = vpop.f32.mrb[68].mxu0 }
 0x173   : > { %8516 = vst [vmem:[#allocation3_spill] sm:$0xff] %v6514_v41  ;;  %v1203_v56 = vpop.f32.mrb[69].mxu0 }
 0x174   : > { %v5417_v61 = vpop.f32.mrb[68].mxu1  ;;  %v5470_v11 = vpop.f32.mrb[70].mxu0 }
 0x175   : > { %v962_v17 = vpop.f32.mrb[69].mxu1  ;;  %v1205_v54 = vpop.f32.mrb[71].mxu0 }
 0x176   : > { %v5418_v25 = vpop.f32.mrb[70].mxu1  ;;  %v1900_v54 = vshrl.u32 %v1899_v51, 7 }
 0x177   : > { %v964_v14 = vpop.f32.mrb[71].mxu1 }
 0x17a   : > { %v5529_v7 = vpop.f32.mrb[72].mxu0 }
 0x17b   : > { %v1583_v58 = vpop.f32.mrb[73].mxu0 }
 0x17c   : > { %v5477_v13 = vpop.f32.mrb[72].mxu1  ;;  %v5530_v16 = vpop.f32.mrb[74].mxu0 }
 0x17d   : > { %v1312_v22 = vpop.f32.mrb[73].mxu1  ;;  %v1586_v32 = vpop.f32.mrb[75].mxu0 }
 0x17e   : > { %v1485_v1 = vadd.f32 %v1312_v22, %v6418_v19  ;;  %v5478_v20 = vpop.f32.mrb[74].mxu1 }
 0x17f   : > { %v1487_v60 = vadd.f32 %v5478_v20, %v6421_v48  ;;  %v1315_v46 = vpop.f32.mrb[75].mxu1 }
 0x180   : > { %v1756_v47 = vadd.f32 %v1583_v58, %v1485_v1  ;;  %v1486_v38 = vadd.f32 %v1315_v46, %v6423_v59  ;;  %v1898_v59 = vunpack.c.0.s8 %v1897_v21 }
 0x181   : > { %v1758_v36 = vadd.f32 %v5530_v16, %v1487_v60 }
 0x182   : > { %v1793_v39 = vadd.f32 %v6520_v29, %v1756_v47  ;;  %v1757_v44 = vadd.f32 %v1586_v32, %v1486_v38  ;;  %v5533_v42 = vpop.f32.mrb[76].mxu0 }
 0x183   : > { %v1795_v19 = vadd.f32 %v6520_v29, %v1758_v36  ;;  %v1598_v30 = vpop.f32.mrb[77].mxu0 }
 0x184   : > { %v1823_v40 = vmax.f32 %v1793_v39, 0.0  ;;  %v5481_v63 = vpop.f32.mrb[76].mxu1  ;;  %v5534_v45 = vpop.f32.mrb[78].mxu0  ;;  %v1794_v7 = vadd.f32 %v6520_v29, %v1757_v44 }
 0x185   : > { %v1825_v33 = vmax.f32 %v1795_v19, 0.0  ;;  %v1489_v48 = vadd.f32 %v5481_v63, %v6427_v35  ;;  %v1327_v50 = vpop.f32.mrb[77].mxu1  ;;  %v1601_v12 = vpop.f32.mrb[79].mxu0 }
 0x186   : > { %v1488_v56 = vadd.f32 %v1327_v50, %v6430_v62  ;;  %v5482_v61 = vpop.f32.mrb[78].mxu1  ;;  %v6535_v62 = vsub.s32 %v1898_v59, %v1900_v54  ;;  %v1824_v60 = vmax.f32 %v1794_v7, 0.0  ;;  %v6545_v59 = vsub.s32 0, %v1900_v54 }
 0x187   : > { %v1853_v11 = vmax.f32 %v1823_v40, %v1825_v33  ;;  %v1760_v17 = vadd.f32 %v5533_v42, %v1489_v48  ;;  %v1490_v25 = vadd.f32 %v5482_v61, %v6432_v9  ;;  %v1330_v14 = vpop.f32.mrb[79].mxu1 }
 0x188   : > { %v1759_v58 = vadd.f32 %v1598_v30, %v1488_v56 }
 0x189   : > { %v6531_v13 = vadd.f32 %v6520_v29, %v1760_v17  ;;  %v1761_v16 = vadd.f32 %v5534_v45, %v1490_v25 }
 0x18a   : > { %v1796_v35 = vadd.f32 %v6520_v29, %v1759_v58  ;;  %v5537_v22 = vpop.f32.mrb[80].mxu0 }
 0x18b   : > { %v1827_v32 = vmax.f32 %v6531_v13, 0.0  ;;  %v1798_v1 = vadd.f32 %v6520_v29, %v1761_v16  ;;  %v1613_v20 = vpop.f32.mrb[81].mxu0 }
 0x18c   : > { %v1826_v9 = vmax.f32 %v1796_v35, 0.0  ;;  %v5485_v46 = vpop.f32.mrb[80].mxu1  ;;  %v5538_v47 = vpop.f32.mrb[82].mxu0 }
 0x18d   : > { %v1867_v38 = vmax.f32 %v1853_v11, %v1827_v32  ;;  %v1828_v36 = vmax.f32 %v1798_v1, 0.0  ;;  %v1492_v39 = vadd.f32 %v5485_v46, %v6435_v55  ;;  %v1342_v44 = vpop.f32.mrb[81].mxu1  ;;  %v1615_v42 = vpop.f32.mrb[83].mxu0 }
 0x18e   : > { %v1854_v43 = vmax.f32 %v1824_v60, %v1826_v9  ;;  %v5486_v21 = vpop.f32.mrb[82].mxu1 }
 0x18f   : > { %v1895_v19 = vcombine.high %v1867_v38, %v1867_v38  ;;  %v1902_v51 = vrot.slane %v1867_v38, %v6535_v62  ;;  %v1763_v30 = vadd.f32 %v5537_v22, %v1492_v39  ;;  %v1344_v40 = vpop.f32.mrb[83].mxu1 }
 0x190   : > { %v1868_v63 = vmax.f32 %v1854_v43, %v1828_v36  ;;  %v1491_v45 = vadd.f32 %v1344_v40, %v6438_v3 }
 0x191   : > { %v1909_v33 = vrot.slane %v1895_v19, %v6535_v62  ;;  %v1910_v48 = vcombine.high %v1902_v51, %v1902_v51  ;;  %v5036_v50 = vrot.slane %v1902_v51, 9  ;;  %v1800_v12 = vadd.f32 %v6520_v29, %v1763_v30 }
 0x192   : > { %v1912_v55 = vcombine.high %v1868_v63, %v1868_v63  ;;  %v1919_v56 = vrot.slane %v1868_v63, %v6535_v62  ;;  %v1762_v61 = vadd.f32 %v1615_v42, %v1491_v45  ;;  %v5541_v11 = vpop.f32.mrb[84].mxu0 }
 0x193   : > { %v1911_v17 = vcombine.high %v1909_v33, %v1909_v33  ;;  %v5037_v25 = vrot.slane %v1910_v48, 9  ;;  %v5038_v14 = vrot.slane %v1909_v33, 9  ;;  %v2336_v7 = vmax.f32 %v1902_v51, %v5036_v50  ;;  %v1627_v58 = vpop.f32.mrb[85].mxu0 }
 0x194   : > { %v1926_v3 = vrot.slane %v1912_v55, %v6535_v62  ;;  %v1927_v16 = vcombine.high %v1919_v56, %v1919_v56  ;;  %v5040_v35 = vrot.slane %v1919_v56, 9  ;;  %v1830_v22 = vmax.f32 %v1800_v12, 0.0  ;;  %v5489_v1 = vpop.f32.mrb[84].mxu1  ;;  %v5542_v20 = vpop.f32.mrb[86].mxu0 }
 0x195   : > { %v2337_v60 = vmax.f32 %v1910_v48, %v5037_v25  ;;  %v2338_v54 = vmax.f32 %v1909_v33, %v5038_v14  ;;  %v6549_v9 = vmax.f32 %v2336_v7, %v1910_v48  ;;  %v5039_v46 = vrot.slane %v1911_v17, 9  ;;  %v1356_v47 = vpop.f32.mrb[85].mxu1  ;;  %v1630_v38 = vpop.f32.mrb[87].mxu0 }
 0x196   : > { %v2340_v39 = vmax.f32 %v1919_v56, %v5040_v35  ;;  %v1856_v44 = vmax.f32 %v1828_v36, %v1830_v22  ;;  %v1799_v42 = vadd.f32 %v6520_v29, %v1762_v61  ;;  %v1493_v43 = vadd.f32 %v1356_v47, %v6442_v10  ;;  %v5490_v21 = vpop.f32.mrb[86].mxu1 }
 0x197   : > { %8517 = vst [vmem:[#allocation4_spill] sm:$0xff] %v6549_v9  ;;  %v6553_v19 = vmax.f32 %v2337_v60, %v1909_v33  ;;  %v6555_v51 = vmax.f32 %v2338_v54, %v1911_v17  ;;  %v6559_v30 = vmul.f32 %v6549_v9, %v6549_v9  ;;  %v2339_v40 = vmax.f32 %v1911_v17, %v5039_v46  ;;  %v1359_v63 = vpop.f32.mrb[87].mxu1 }
 0x198   : > { %v1829_v45 = vmax.f32 %v1799_v42, 0.0  ;;  %v1764_v48 = vadd.f32 %v1627_v58, %v1493_v43  ;;  %v1495_v50 = vadd.f32 %v5490_v21, %v6445_v15  ;;  %v1494_v36 = vadd.f32 %v1359_v63, %v6447_v24 }
 0x199   : > { %8518 = vst [vmem:[#allocation5_spill] sm:$0xff] %v6553_v19  ;;  %8519 = vst [vmem:[#allocation6_spill] sm:$0xff] %v6555_v51  ;;  %v6565_v10 = vmul.f32 %v6553_v19, %v6553_v19  ;;  %v6569_v12 = vmax.f32 %v2339_v40, %v1919_v56  ;;  %v1928_v55 = vcombine.high %v1926_v3, %v1926_v3  ;;  %v5041_v24 = vrot.slane %v1927_v16, 9 }
 0x19a   : > { %8520 = vst [vmem:[#allocation7_spill] sm:$0xff] %v6559_v30  ;;  %v1855_v61 = vmax.f32 %v1827_v32, %v1829_v45  ;;  %v1801_v11 = vadd.f32 %v6520_v29, %v1764_v48  ;;  %v1766_v17 = vadd.f32 %v5542_v20, %v1495_v50  ;;  %v1765_v25 = vadd.f32 %v1630_v38, %v1494_v36  ;;  %v5545_v15 = vpop.f32.mrb[88].mxu0 }
 0x19b   : > { %8521 = vst [vmem:[#allocation8_spill] sm:$0xff] %v6565_v10  ;;  %8522 = vst [vmem:[#allocation9_spill] sm:$0xff] %v6569_v12  ;;  %v1642_v14 = vpop.f32.mrb[89].mxu0  ;;  %v5042_v7 = vrot.slane %v1926_v3, 9  ;;  %v6574_v58 = vmax.f32 %v2340_v39, %v1927_v16  ;;  %v6578_v35 = vmul.f32 %v6555_v51, %v6555_v51  ;;  %v6586_v20 = vmul.f32 %v6569_v12, %v6569_v12 }
 0x19c   : > { %v1831_v56 = vmax.f32 %v1801_v11, 0.0  ;;  %v1803_v22 = vadd.f32 %v6520_v29, %v1766_v17  ;;  %v6582_v13 = vadd.f32 %v6520_v29, %v1765_v25  ;;  %v5493_v32 = vpop.f32.mrb[88].mxu1  ;;  %v5546_v1 = vpop.f32.mrb[90].mxu0  ;;  %v2341_v47 = vmax.f32 %v1927_v16, %v5041_v24 }
 0x19d   : > { %8523 = vst [vmem:[#allocation10_spill] sm:$0xff] %v6574_v58  ;;  %8524 = vst [vmem:[#allocation11_spill] sm:$0xff] %v6578_v35  ;;  %v1497_v60 = vadd.f32 %v5493_v32, %v6451_v2  ;;  %v1371_v54 = vpop.f32.mrb[89].mxu1  ;;  %v1645_v46 = vpop.f32.mrb[91].mxu0  ;;  %v2342_v38 = vmax.f32 %v1926_v3, %v5042_v7  ;;  %v6591_v39 = vmul.f32 %v6574_v58, %v6574_v58 }
 0x19e   : > { %8525 = vst [vmem:[#allocation12_spill] sm:$0xff] %v6586_v20  ;;  %v1869_v42 = vmax.f32 %v1855_v61, %v1831_v56  ;;  %v1833_v43 = vmax.f32 %v1803_v22, 0.0  ;;  %v1832_v21 = vmax.f32 %v6582_v13, 0.0  ;;  %v1496_v40 = vadd.f32 %v1371_v54, %v6454_v5  ;;  %v5494_v63 = vpop.f32.mrb[90].mxu1 }
 0x19f   : > { %8526 = vst [vmem:[#allocation13_spill] sm:$0xff] %v6591_v39  ;;  %v1768_v45 = vadd.f32 %v5545_v15, %v1497_v60  ;;  %v1498_v48 = vadd.f32 %v5494_v63, %v6456_v6  ;;  %v1374_v50 = vpop.f32.mrb[91].mxu1  ;;  %v6596_v2 = vmax.f32 %v2341_v47, %v1926_v3  ;;  %v6598_v36 = vmax.f32 %v2342_v38, %v1928_v55 }
 0x1a0   : > { %v1929_v16 = vcombine.high %v1869_v42, %v1869_v42  ;;  %v1936_v11 = vrot.slane %v1869_v42, %v6535_v62  ;;  %v1857_v17 = vmax.f32 %v1831_v56, %v1833_v43  ;;  %v1870_v25 = vmax.f32 %v1856_v44, %v1832_v21 }
 0x1a1   : > { %8527 = vst [vmem:[#allocation14_spill] sm:$0xff] %v6596_v2  ;;  %8528 = vst [vmem:[#allocation15_spill] sm:$0xff] %v6598_v36  ;;  %v6602_v61 = vadd.f32 %v6520_v29, %v1768_v45  ;;  %v1767_v24 = vadd.f32 %v1642_v14, %v1496_v40  ;;  %v1769_v7 = vadd.f32 %v5546_v1, %v1498_v48 }
 0x1a2   : > { %v6606_v5 = vmul.f32 %v6596_v2, %v6596_v2  ;;  %v1943_v6 = vrot.slane %v1929_v16, %v6535_v62  ;;  %v1944_v3 = vcombine.high %v1936_v11, %v1936_v11  ;;  %v5043_v15 = vrot.slane %v1936_v11, 9  ;;  %v6609_v22 = vpop.f32.mrb[92].mxu0 }
 0x1a3   : > { %v1946_v55 = vcombine.high %v1870_v25, %v1870_v25  ;;  %v1953_v13 = vrot.slane %v1870_v25, %v6535_v62  ;;  %v8424_v44 = vmax.f32 %v6602_v61, 0.0  ;;  %v1804_v56 = vadd.f32 %v6520_v29, %v1767_v24  ;;  %v1657_v32 = vpop.f32.mrb[93].mxu0 }
 0x1a4   : > { %8529 = vst [vmem:[#allocation16_spill] sm:$0xff] %v6606_v5  ;;  %v6615_v14 = vadd.f32 %v6520_v29, %v1769_v7  ;;  %v1945_v1 = vcombine.high %v1943_v6, %v1943_v6  ;;  %v5044_v60 = vrot.slane %v1944_v3, 9  ;;  %v5045_v54 = vrot.slane %v1943_v6, 9  ;;  %v6617_v47 = vpop.f32.mrb[92].mxu1  ;;  %v5550_v38 = vpop.f32.mrb[94].mxu0 }
 0x1a5   : > { %v2343_v46 = vmax.f32 %v1936_v11, %v5043_v15  ;;  %v6620_v42 = vrot.slane %v1946_v55, %v6535_v62  ;;  %v6622_v43 = vcombine.high %v1953_v13, %v1953_v13  ;;  %v5047_v40 = vrot.slane %v1953_v13, 9  ;;  %v1386_v45 = vpop.f32.mrb[93].mxu1  ;;  %v6626_v48 = vpop.f32.mrb[95].mxu0 }
 0x1a6   : > { %v1871_v63 = vmax.f32 %v1857_v17, %v8424_v44  ;;  %v2344_v50 = vmax.f32 %v1944_v3, %v5044_v60  ;;  %v2345_v16 = vmax.f32 %v1943_v6, %v5045_v54  ;;  %v5046_v11 = vrot.slane %v1945_v1, 9  ;;  %v5498_v24 = vpop.f32.mrb[94].mxu1 }
 0x1a7   : > { %v6628_v25 = vmax.f32 %v2343_v46, %v1944_v3  ;;  %v6630_v7 = vmax.f32 %v1953_v13, %v5047_v40  ;;  %v1834_v32 = vmax.f32 %v1804_v56, 0.0  ;;  %v1388_v38 = vpop.f32.mrb[95].mxu1  ;;  %v6655_v44 = vmul.f32 %v6598_v36, %v6598_v36 }
 0x1a8   : > { %v1963_v15 = vcombine.high %v1871_v63, %v1871_v63  ;;  %v1970_v55 = vrot.slane %v1871_v63, %v6535_v62  ;;  %v6633_v33 = vmax.f32 %v2344_v50, %v1943_v6  ;;  %v6635_v17 = vmax.f32 %v2345_v16, %v1945_v1 }
 0x1a9   : > { %8530 = vst [vmem:[#allocation17_spill] sm:$0xff] %v6628_v25  ;;  %v6639_v60 = vmul.f32 %v6628_v25, %v6628_v25  ;;  %v2346_v3 = vmax.f32 %v1945_v1, %v5046_v11  ;;  %v1858_v45 = vmax.f32 %v1832_v21, %v1834_v32  ;;  %v8428_v50 = vmax.f32 %v6615_v14, 0.0  ;;  %8534 = vst [vmem:[#allocation21_spill] sm:$0xff] %v6655_v44 }
 0x1aa   : > { %8531 = vst [vmem:[#allocation18_spill] sm:$0xff] %v6633_v33  ;;  %8532 = vst [vmem:[#allocation19_spill] sm:$0xff] %v6635_v17  ;;  %v1977_v54 = vrot.slane %v1963_v15, %v6535_v62  ;;  %v1978_v46 = vcombine.high %v1970_v55, %v1970_v55  ;;  %v5050_v40 = vrot.slane %v1970_v55, 9  ;;  %v6644_v56 = vmul.f32 %v6633_v33, %v6633_v33  ;;  %v5553_v1 = vpop.f32.mrb[96].mxu0 }
 0x1ab   : > { %v6648_v63 = vmax.f32 %v2346_v3, %v1953_v13  ;;  %v1671_v21 = vpop.f32.mrb[97].mxu0  ;;  %v1872_v32 = vmax.f32 %v1858_v45, %v8428_v50  ;;  %v2539_v13 = vrot.slane %v6565_v10, %v6545_v59  ;;  %v2543_v3 = vrot.slane %v6578_v35, %v6545_v59 }
 0x1ac   : > { %v1979_v16 = vcombine.high %v1977_v54, %v1977_v54  ;;  %v5051_v11 = vrot.slane %v1978_v46, 9  ;;  %v5052_v24 = vrot.slane %v1977_v54, 9  ;;  %v2350_v15 = vmax.f32 %v1970_v55, %v5050_v40  ;;  %v5501_v1 = vpop.f32.mrb[96].mxu1  ;;  %v5554_v6 = vpop.f32.mrb[98].mxu0 }
 0x1ad   : > { %8533 = vst [vmem:[#allocation20_spill] sm:$0xff] %v6648_v63  ;;  %v1400_v2 = vpop.f32.mrb[97].mxu1  ;;  %v1674_v45 = vpop.f32.mrb[99].mxu0  ;;  %v1980_v50 = vcombine.high %v1872_v32, %v1872_v32  ;;  %v1987_v36 = vrot.slane %v1872_v32, %v6535_v62  ;;  %v2547_v12 = vrot.slane %v6586_v20, %v6545_v59  ;;  %v2551_v58 = vrot.slane %v6591_v39, %v6545_v59 }
 0x1ae   : > { %v2351_v33 = vmax.f32 %v1978_v46, %v5051_v11  ;;  %v2352_v55 = vmax.f32 %v1977_v54, %v5052_v24  ;;  %v6661_v40 = vmax.f32 %v2350_v15, %v1978_v46  ;;  %v5053_v25 = vrot.slane %v1979_v16, 9  ;;  %v5502_v51 = vpop.f32.mrb[98].mxu1 }
 0x1af   : > { %v1403_v24 = vpop.f32.mrb[99].mxu1  ;;  %v6677_v15 = vrot.slane %v1980_v50, %v6535_v62  ;;  %v6679_v32 = vcombine.high %v1987_v36, %v1987_v36  ;;  %v5054_v9 = vrot.slane %v1987_v36, 9  ;;  %v2555_v20 = vrot.slane %v6606_v5, %v6545_v59 }
 0x1b0   : > { %8535 = vst [vmem:[#allocation22_spill] sm:$0xff] %v6661_v40  ;;  %v6668_v19 = vmax.f32 %v2351_v33, %v1977_v54  ;;  %v6670_v1 = vmax.f32 %v2352_v55, %v1979_v16  ;;  %v6674_v46 = vmul.f32 %v6661_v40, %v6661_v40  ;;  %v2353_v11 = vmax.f32 %v1979_v16, %v5053_v25 }
 0x1b1   : > { %v2559_v25 = vrot.slane %v6655_v44, %v6545_v59  ;;  %v6693_v50 = vmax.f32 %v1987_v36, %v5054_v9  ;;  %v8537_v16 = vrot.slane %v6559_v30, %v6545_v59  ;;  %v1500_v5 = vadd.f32 %v6617_v47, %v6459_v53 }
 0x1b2   : > { %8536 = vst [vmem:[#allocation23_spill] sm:$0xff] %v6668_v19  ;;  %v6685_v33 = vmul.f32 %v6668_v19, %v6668_v19  ;;  %v6689_v55 = vmax.f32 %v2353_v11, %v1987_v36  ;;  %v1499_v19 = vadd.f32 %v1388_v38, %v6462_v57  ;;  %v5557_v35 = vpop.f32.mrb[100].mxu0  ;;  %v1501_v11 = vadd.f32 %v1400_v2, %v6466_v23 }
 0x1b3   : > { %v2729_v40 = vsel %vm2728_vm2, %v2539_v13, %v8537_v16  ;;  %v1503_v10 = vadd.f32 %v5502_v51, %v6469_v28  ;;  %v1502_v9 = vadd.f32 %v1403_v24, %v6471_v8  ;;  %v6706_v36 = vpop.f32.mrb[101].mxu0  ;;  %v1771_v13 = vadd.f32 %v6609_v22, %v1500_v5 }
 0x1b4   : > { %v2731_v54 = vsel %vm8510_vm3, %v2543_v3, %v2729_v40  ;;  %v1770_v16 = vadd.f32 %v6626_v48, %v1499_v19  ;;  %v5505_v53 = vpop.f32.mrb[100].mxu1  ;;  %v1962_v57 = vcombine.high %v6620_v42, %v6620_v42  ;;  %v6713_v47 = vpop.f32.mrb[102].mxu0  ;;  %v1772_v2 = vadd.f32 %v1671_v21, %v1501_v11 }
 0x1b5   : > { %v2733_v44 = vsel %vm8505_vm4, %v2547_v12, %v2731_v54  ;;  %v1774_v28 = vadd.f32 %v5554_v6, %v1503_v10  ;;  %v1773_v51 = vadd.f32 %v1674_v45, %v1502_v9  ;;  %v6716_v8 = vpop.f32.mrb[101].mxu1  ;;  %v1689_v38 = vpop.f32.mrb[103].mxu0  ;;  %v1808_v5 = vadd.f32 %v6520_v29, %v1771_v13 }
 0x1b6   : > { %v2735_v23 = vsel %vm8504_vm5, %v2551_v58, %v2733_v44  ;;  %v1807_v19 = vadd.f32 %v6520_v29, %v1770_v16  ;;  %v1505_v22 = vadd.f32 %v5505_v53, %v6475_v49  ;;  %v6722_v48 = vpop.f32.mrb[102].mxu1  ;;  %v1809_v58 = vadd.f32 %v6520_v29, %v1772_v2 }
 0x1b7   : > { %v2737_v12 = vsel %vm8503_vm6, %v2555_v20, %v2735_v23  ;;  %v1811_v10 = vadd.f32 %v6520_v29, %v1774_v28  ;;  %v6728_v44 = vadd.f32 %v6520_v29, %v1773_v51  ;;  %v1418_v6 = vpop.f32.mrb[103].mxu1  ;;  %v1838_v20 = vmax.f32 %v1808_v5, 0.0 }
 0x1b8   : > { %v2739_v3 = vsel %vm8502_vm7, %v2559_v25, %v2737_v12  ;;  %v1837_v49 = vmax.f32 %v1807_v19, 0.0  ;;  %v1776_v21 = vadd.f32 %v5557_v35, %v1505_v22  ;;  %v5048_v40 = vrot.slane %v6622_v43, 9 }
 0x1b9   : > { %3042 = vrot.lane.b32.xlu1 %v2739_v3, %s5873_s15  ;;  %2783 = vrot.lane.b32.xlu0 %v2739_v3, %s5874_s16  ;;  %v1839_v45 = vmax.f32 %v1809_v58, 0.0  ;;  %v1841_v24 = vmax.f32 %v1811_v10, 0.0  ;;  %v8443_v54 = vmax.f32 %v6728_v44, 0.0  ;;  %v5049_v25 = vrot.slane %v6620_v42, 9 }
 0x1ba   : > { %v8538_v11 = vmax.f32 %v6615_v14, 0.0  ;;  %v8539_v13 = vmax.f32 %v6602_v61, 0.0  ;;  %v6740_v53 = vadd.f32 %v6520_v29, %v1776_v21  ;;  %v2348_v23 = vmax.f32 %v6622_v43, %v5048_v40  ;;  %v6743_v35 = vpop.f32.mrb[104].mxu0 }
 0x1bb   : > { %v1861_v2 = vmax.f32 %v1839_v45, %v1841_v24  ;;  %v2349_v28 = vmax.f32 %v6620_v42, %v5049_v25  ;;  %v6748_v51 = vmax.f32 %v6630_v7, %v6622_v43  ;;  %v6752_v14 = vmul.f32 %v6635_v17, %v6635_v17  ;;  %v1701_v61 = vpop.f32.mrb[105].mxu0 }
 0x1bc   : > { %v1860_v9 = vmax.f32 %v8538_v11, %v1838_v20  ;;  %v1859_v16 = vmax.f32 %v8539_v13, %v1837_v49  ;;  %v8442_v5 = vmax.f32 %v6740_v53, 0.0  ;;  %v6760_v43 = vmax.f32 %v2348_v23, %v6620_v42  ;;  %v6762_v7 = vpop.f32.mrb[104].mxu1  ;;  %v5562_v19 = vpop.f32.mrb[106].mxu0 }
 0x1bd   : > { %8540 = vst [vmem:[#allocation24_spill] sm:$0xff] %v6748_v51  ;;  %8541 = vst [vmem:[#allocation25_spill] sm:$0xff] %v6752_v14  ;;  %3560 = vrot.lane.b32.xlu1 %v2739_v3, %s5875_s17  ;;  %3301 = vrot.lane.b32.xlu0 %v2739_v3, %s5876_s18  ;;  %v6764_v22 = vmax.f32 %v2349_v28, %v1962_v57  ;;  %v6768_v58 = vmul.f32 %v6648_v63, %v6648_v63  ;;  %v1430_v6 = vpop.f32.mrb[105].mxu1  ;;  %v6776_v20 = vpop.f32.mrb[107].mxu0 }
 0x1be   : > { %v1873_v38 = vmax.f32 %v1859_v16, %v1839_v45  ;;  %v1874_v12 = vmax.f32 %v1860_v9, %v8443_v54  ;;  %8542 = vst [vmem:[#allocation26_spill] sm:$0xff] %v6760_v43  ;;  %v6772_v3 = vmul.f32 %v6748_v51, %v6748_v51  ;;  %v5510_v40 = vpop.f32.mrb[106].mxu1  ;;  %v1875_v45 = vmax.f32 %v1861_v2, %v8442_v5 }
 0x1bf   : > { %8543 = vst [vmem:[#allocation27_spill] sm:$0xff] %v6764_v22  ;;  %8544 = vst [vmem:[#allocation28_spill] sm:$0xff] %v6768_v58  ;;  %v6784_v24 = vmul.f32 %v6760_v43, %v6760_v43  ;;  %v6788_v25 = vmul.f32 %v6764_v22, %v6764_v22  ;;  %v2571_v11 = vrot.slane %v6752_v14, %v6545_v59  ;;  %v6792_v9 = vpop.f32.mrb[107].mxu1 }
 0x1c0   : > { %v1997_v42 = vcombine.high %v1873_v38, %v1873_v38  ;;  %v2004_v49 = vrot.slane %v1873_v38, %v6535_v62  ;;  %v2014_v21 = vcombine.high %v1874_v12, %v1874_v12  ;;  %v2021_v57 = vrot.slane %v1874_v12, %v6535_v62 }
 0x1c1   : > { %8545 = vst [vmem:[#allocation29_spill] sm:$0xff] %v6784_v24  ;;  %8546 = vst [vmem:[#allocation30_spill] sm:$0xff] %v6788_v25  ;;  %v2031_v38 = vcombine.high %v1875_v45, %v1875_v45  ;;  %v2038_v12 = vrot.slane %v1875_v45, %v6535_v62 }
 0x1c2   : > { %v2011_v13 = vrot.slane %v1997_v42, %v6535_v62  ;;  %v2012_v16 = vcombine.high %v2004_v49, %v2004_v49  ;;  %v5057_v23 = vrot.slane %v2004_v49, 9  ;;  %v6796_v28 = vrot.slane %v2014_v21, %v6535_v62  ;;  %v5565_v54 = vpop.f32.mrb[108].mxu0 }
 0x1c3   : > { %v6798_v2 = vcombine.high %v2021_v57, %v2021_v57  ;;  %v5061_v61 = vrot.slane %v2021_v57, 9  ;;  %v2045_v42 = vrot.slane %v2031_v38, %v6535_v62  ;;  %v2046_v22 = vcombine.high %v2038_v12, %v2038_v12  ;;  %v6804_v51 = vpop.f32.mrb[109].mxu0 }
 0x1c4   : > { %v2013_v19 = vcombine.high %v2011_v13, %v2011_v13  ;;  %v5058_v6 = vrot.slane %v2012_v16, 9  ;;  %v5059_v40 = vrot.slane %v2011_v13, 9  ;;  %v2357_v5 = vmax.f32 %v2004_v49, %v5057_v23  ;;  %v5513_v39 = vpop.f32.mrb[108].mxu1  ;;  %v6808_v45 = vpop.f32.mrb[110].mxu0 }
 0x1c5   : > { %v6801_v10 = vmax.f32 %v2021_v57, %v5061_v61  ;;  %v5064_v43 = vrot.slane %v2038_v12, 9  ;;  %v2047_v30 = vcombine.high %v2045_v42, %v2045_v42  ;;  %v5065_v41 = vrot.slane %v2046_v22, 9  ;;  %v6810_v23 = vpop.f32.mrb[109].mxu1  ;;  %v6812_v61 = vpop.f32.mrb[111].mxu0 }
 0x1c6   : > { %v2358_v21 = vmax.f32 %v2012_v16, %v5058_v6  ;;  %v2359_v63 = vmax.f32 %v2011_v13, %v5059_v40  ;;  %v6806_v17 = vmax.f32 %v2357_v5, %v2012_v16  ;;  %v5060_v14 = vrot.slane %v2013_v19, 9  ;;  %v6822_v39 = vpop.f32.mrb[110].mxu1 }
 0x1c7   : > { %8547 = vst [vmem:[#allocation31_spill] sm:$0xff] %v6801_v10  ;;  %v5066_v49 = vrot.slane %v2045_v42, 9  ;;  %v2364_v54 = vmax.f32 %v2038_v12, %v5064_v43  ;;  %v2365_v6 = vmax.f32 %v2046_v22, %v5065_v41  ;;  %v2575_v43 = vrot.slane %v6768_v58, %v6545_v59  ;;  %v6828_v12 = vpop.f32.mrb[111].mxu1 }
 0x1c8   : > { %8548 = vst [vmem:[#allocation32_spill] sm:$0xff] %v6806_v17  ;;  %v6814_v38 = vmax.f32 %v2358_v21, %v2011_v13  ;;  %v6816_v4 = vmax.f32 %v2359_v63, %v2013_v19  ;;  %v6820_v5 = vmul.f32 %v6806_v17, %v6806_v17  ;;  %v2360_v16 = vmax.f32 %v2013_v19, %v5060_v14 }
 0x1c9   : > { %v2366_v40 = vmax.f32 %v2045_v42, %v5066_v49  ;;  %v6824_v10 = vmax.f32 %v2364_v54, %v2046_v22  ;;  %v2579_v41 = vrot.slane %v6772_v3, %v6545_v59  ;;  %v6840_v14 = vmax.f32 %v2365_v6, %v2045_v42 }
 0x1ca   : > { %8549 = vst [vmem:[#allocation33_spill] sm:$0xff] %v6814_v38  ;;  %8550 = vst [vmem:[#allocation34_spill] sm:$0xff] %v6816_v4  ;;  %v6832_v63 = vmul.f32 %v6814_v38, %v6814_v38  ;;  %v6836_v21 = vmax.f32 %v2360_v16, %v2021_v57  ;;  %v2583_v49 = vrot.slane %v6784_v24, %v6545_v59  ;;  %v6863_v13 = vpop.f32.mrb[112].mxu0 }
 0x1cb   : > { %8551 = vst [vmem:[#allocation35_spill] sm:$0xff] %v6824_v10  ;;  %8553 = vst [vmem:[#allocation37_spill] sm:$0xff] %v6840_v14  ;;  %v6842_v22 = vmax.f32 %v2366_v40, %v2047_v30  ;;  %v6846_v19 = vmul.f32 %v6824_v10, %v6824_v10  ;;  %v2587_v54 = vrot.slane %v6788_v25, %v6545_v59  ;;  %v5067_v25 = vrot.slane %v2047_v30, 9  ;;  %v6872_v24 = vpop.f32.mrb[113].mxu0 }
 0x1cc   : > { %8552 = vst [vmem:[#allocation36_spill] sm:$0xff] %v6836_v21  ;;  %v8555_v57 = vrot.slane %v6639_v60, %v6545_v59  ;;  %v8556_v16 = vrot.slane %v6644_v56, %v6545_v59  ;;  %v1504_v6 = vadd.f32 %v6716_v8, %v6478_v26  ;;  %v1506_v40 = vadd.f32 %v6722_v48, %v6480_v27  ;;  %v6879_v48 = vpop.f32.mrb[112].mxu1 }
 0x1cd   : > { %8554 = vst [vmem:[#allocation38_spill] sm:$0xff] %v6842_v22  ;;  %v6867_v10 = vmul.f32 %v6840_v14, %v6840_v14  ;;  %v1996_v8 = vcombine.high %v6677_v15, %v6677_v15  ;;  %v2367_v14 = vmax.f32 %v2047_v30, %v5067_v25  ;;  %v6886_v58 = vpop.f32.mrb[113].mxu1 }
 0x1ce   : > { %v2740_v42 = vsel %vm2728_vm2, %v8556_v16, %v8555_v57  ;;  %v1775_v26 = vadd.f32 %v6706_v36, %v1504_v6  ;;  %v1777_v27 = vadd.f32 %v6713_v47, %v1506_v40  ;;  %v6881_v16 = vpop.f32.mrb[114].mxu0  ;;  %v6893_v6 = vmax.f32 %v6693_v50, %v6679_v32  ;;  %v6895_v40 = vpop.f32.mrb[114].mxu1 }
 0x1cf   : > { %8557 = vst [vmem:[#allocation39_spill] sm:$0xff] %v6867_v10  ;;  %v2741_v17 = vsel %vm8510_vm3, %v2571_v11, %v2740_v42  ;;  %v5055_v11 = vrot.slane %v6679_v32, 9  ;;  %v5056_v42 = vrot.slane %v6677_v15, 9 }
 0x1d0   : > { %v2742_v57 = vsel %vm8505_vm4, %v2575_v43, %v2741_v17  ;;  %v1733_v17 = vpop.f32.mrb[115].mxu0  ;;  %v1812_v47 = vadd.f32 %v6520_v29, %v1775_v26  ;;  %v1814_v43 = vadd.f32 %v6520_v29, %v1777_v27  ;;  %v6908_v26 = vmul.f32 %v6689_v55, %v6689_v55 }
 0x1d1   : > { %v2743_v38 = vsel %vm8504_vm5, %v2579_v41, %v2742_v57  ;;  %v2355_v25 = vmax.f32 %v6679_v32, %v5055_v11  ;;  %v2356_v41 = vmax.f32 %v6677_v15, %v5056_v42  ;;  %v6902_v57 = vmul.f32 %v6670_v1, %v6670_v1 }
 0x1d2   : > { %v2744_v36 = vsel %vm8503_vm6, %v2583_v49, %v2743_v38  ;;  %v1462_v38 = vpop.f32.mrb[115].mxu1  ;;  %v1842_v49 = vmax.f32 %v1812_v47, 0.0  ;;  %v1844_v50 = vmax.f32 %v1814_v43, 0.0  ;;  %v6912_v32 = vmul.f32 %v6893_v6, %v6893_v6 }
 0x1d3   : > { %v2745_v30 = vsel %vm8502_vm7, %v2587_v54, %v2744_v36  ;;  %v6915_v54 = vmax.f32 %v2355_v25, %v6677_v15  ;;  %v6917_v27 = vmax.f32 %v2356_v41, %v1996_v8  ;;  %v2595_v11 = vrot.slane %v6685_v33, %v6545_v59 }
 0x1d4   : > { %3303 = vrot.lane.b32.xlu1 %v2745_v30, %s5876_s18  ;;  %2785 = vrot.lane.b32.xlu0 %v2745_v30, %s5874_s16  ;;  %v2599_v42 = vrot.slane %v6902_v57, %v6545_v59  ;;  %v8560_v17 = vmax.f32 %v6728_v44, 0.0  ;;  %v2603_v47 = vrot.slane %v6908_v26, %v6545_v59  ;;  %v2607_v43 = vrot.slane %v6912_v32, %v6545_v59 }
 0x1d5   : > { %8558 = vst [vmem:[#allocation40_spill] sm:$0xff] %v6915_v54  ;;  %8559 = vst [vmem:[#allocation41_spill] sm:$0xff] %v6917_v27  ;;  %v1508_v15 = vadd.f32 %v6762_v7, %v6483_v52  ;;  %v6933_v8 = vmul.f32 %v6915_v54, %v6915_v54  ;;  %v6937_v25 = vmul.f32 %v6917_v27, %v6917_v27 }
 0x1d6   : > { %v1862_v36 = vmax.f32 %v8560_v17, %v1842_v49  ;;  %v8561_v44 = vrot.slane %v6674_v46, %v6545_v59  ;;  %v1507_v38 = vadd.f32 %v6792_v9, %v6492_v18  ;;  %v1509_v17 = vadd.f32 %v6810_v23, %v6500_v37 }
 0x1d7   : > { %v1779_v7 = vadd.f32 %v6743_v35, %v1508_v15  ;;  %v2611_v27 = vrot.slane %v6933_v8, %v6545_v59  ;;  %v2615_v54 = vrot.slane %v6937_v25, %v6545_v59 }
 0x1d8   : > { %v2746_v41 = vsel %vm2728_vm2, %v2595_v11, %v8561_v44  ;;  %v1876_v49 = vmax.f32 %v1862_v36, %v1844_v50  ;;  %3044 = vrot.lane.b32.xlu0 %v2745_v30, %s5873_s15  ;;  %v1778_v18 = vadd.f32 %v6776_v20, %v1507_v38  ;;  %v1780_v23 = vadd.f32 %v6804_v51, %v1509_v17 }
 0x1d9   : > { %v2747_v52 = vsel %vm8510_vm3, %v2599_v42, %v2746_v41  ;;  %v1816_v35 = vadd.f32 %v6520_v29, %v1779_v7  ;;  %v1511_v44 = vadd.f32 %v6822_v39, %v6503_v0  ;;  %v1510_v39 = vadd.f32 %v6828_v12, %v6505_v34 }
 0x1da   : > { %v2748_v11 = vsel %vm8505_vm4, %v2603_v47, %v2747_v52  ;;  %v2048_v9 = vcombine.high %v1876_v49, %v1876_v49  ;;  %v2055_v36 = vrot.slane %v1876_v49, %v6535_v62  ;;  %v1815_v37 = vadd.f32 %v6520_v29, %v1778_v18 }
 0x1db   : > { %v2749_v42 = vsel %vm8504_vm5, %v2607_v43, %v2748_v11  ;;  %v1817_v52 = vadd.f32 %v6520_v29, %v1780_v23  ;;  %v1782_v0 = vadd.f32 %v6808_v45, %v1511_v44  ;;  %v2030_v11 = vcombine.high %v6796_v28, %v6796_v28 }
 0x1dc   : > { %v2750_v15 = vsel %vm8503_vm6, %v2611_v27, %v2749_v42  ;;  %v6965_v47 = vrot.slane %v2048_v9, %v6535_v62  ;;  %v6967_v20 = vcombine.high %v2055_v36, %v2055_v36  ;;  %v5068_v41 = vrot.slane %v2055_v36, 9  ;;  %3562 = vrot.lane.b32.xlu0 %v2745_v30, %s5875_s17 }
 0x1dd   : > { %v6969_v38 = vmax.f32 %v2367_v14, %v2055_v36  ;;  %v2751_v43 = vsel %vm8502_vm7, %v2615_v54, %v2750_v15  ;;  %v1846_v27 = vmax.f32 %v1816_v35, 0.0  ;;  %v1845_v49 = vmax.f32 %v1815_v37, 0.0 }
 0x1de   : > { %v6974_v51 = vmax.f32 %v2055_v36, %v5068_v41  ;;  %2787 = vrot.lane.b32.xlu1 %v2751_v43, %s5874_s16  ;;  %v1513_v14 = vadd.f32 %v6879_v48, %v6509_v31  ;;  %v8563_v30 = vmax.f32 %v6740_v53, 0.0  ;;  %v1847_v17 = vmax.f32 %v1817_v52, 0.0  ;;  %v8564_v53 = vld [vmem:[#allocation31_spill] sm:$0xff] }
 0x1df   : > { %8562 = vst [vmem:[#allocation42_spill] sm:$0xff] %v6969_v38  ;;  %v1864_v7 = vmax.f32 %v1844_v50, %v1846_v27  ;;  %v1819_v18 = vadd.f32 %v6520_v29, %v1782_v0  ;;  %v1781_v45 = vadd.f32 %v6812_v61, %v1510_v39  ;;  %v5062_v34 = vrot.slane %v6798_v2, 9 }
 0x1e0   : > { %v1863_v54 = vmax.f32 %v8563_v30, %v1845_v49  ;;  %3305 = vrot.lane.b32.xlu0 %v2751_v43, %s5876_s18  ;;  %v1784_v9 = vadd.f32 %v6863_v13, %v1513_v14  ;;  %v5063_v31 = vrot.slane %v6796_v28, 9  ;;  %v6994_v48 = vmax.f32 %v8564_v53, %v6798_v2 }
 0x1e1   : > { %v6998_v50 = vmul.f32 %v6816_v4, %v6816_v4  ;;  %v1849_v36 = vmax.f32 %v1819_v18, 0.0  ;;  %v7002_v61 = vadd.f32 %v6520_v29, %v1781_v45  ;;  %v2362_v42 = vmax.f32 %v6798_v2, %v5062_v34 }
 0x1e2   : > { %v1877_v12 = vmax.f32 %v1863_v54, %v1847_v17  ;;  %8565 = vst [vmem:[#allocation31_spill] sm:$0xff] %v6994_v48  ;;  %3046 = vrot.lane.b32.xlu1 %v2751_v43, %s5873_s15  ;;  %v1821_v13 = vadd.f32 %v6520_v29, %v1784_v9  ;;  %v2363_v37 = vmax.f32 %v6796_v28, %v5063_v31 }
 0x1e3   : > { %v7010_v23 = vmul.f32 %v6836_v21, %v6836_v21  ;;  %v1865_v44 = vmax.f32 %v1847_v17, %v1849_v36  ;;  %v8461_v41 = vmax.f32 %v7002_v61, 0.0  ;;  %v7014_v49 = vmax.f32 %v2362_v42, %v6796_v28 }
 0x1e4   : > { %v2065_v35 = vcombine.high %v1877_v12, %v1877_v12  ;;  %v2072_v15 = vrot.slane %v1877_v12, %v6535_v62  ;;  %v1851_v27 = vmax.f32 %v1821_v13, 0.0  ;;  %v7017_v0 = vmax.f32 %v2363_v37, %v2030_v11 }
 0x1e5   : > { %8566 = vst [vmem:[#allocation43_spill] sm:$0xff] %v7014_v49  ;;  %v1878_v39 = vmax.f32 %v1864_v7, %v8461_v41  ;;  %v7024_v30 = vmul.f32 %v6994_v48, %v6994_v48  ;;  %v7028_v28 = vmul.f32 %v7014_v49, %v7014_v49  ;;  %v8578_v49 = vld [vmem:[#allocation3_spill] sm:$0xff] }
 0x1e6   : > { %v2079_v29 = vrot.slane %v2065_v35, %v6535_v62  ;;  %v2080_v52 = vcombine.high %v2072_v15, %v2072_v15  ;;  %v5071_v2 = vrot.slane %v2072_v15, 9  ;;  %8567 = vst [vmem:[#allocation44_spill] sm:$0xff] %v7017_v0  ;;  %3564 = vrot.lane.b32.xlu1 %v2751_v43, %s5875_s17  ;;  %v1879_v14 = vmax.f32 %v1865_v44, %v1851_v27 }
 0x1e7   : > { %v2082_v11 = vcombine.high %v1878_v39, %v1878_v39  ;;  %v2089_v9 = vrot.slane %v1878_v39, %v6535_v62 }
 0x1e8   : > { %v2081_v54 = vcombine.high %v2079_v29, %v2079_v29  ;;  %v5072_v17 = vrot.slane %v2080_v52, 9  ;;  %v5073_v18 = vrot.slane %v2079_v29, 9  ;;  %v2371_v45 = vmax.f32 %v2072_v15, %v5071_v2 }
 0x1e9   : > { %v2099_v43 = vcombine.high %v1879_v14, %v1879_v14  ;;  %v2106_v34 = vrot.slane %v1879_v14, %v6535_v62  ;;  %v7035_v36 = vrot.slane %v2082_v11, %v6535_v62  ;;  %v7037_v13 = vcombine.high %v2089_v9, %v2089_v9 }
 0x1ea   : > { %v2372_v7 = vmax.f32 %v2080_v52, %v5072_v17  ;;  %v2373_v12 = vmax.f32 %v2079_v29, %v5073_v18  ;;  %v7032_v31 = vmax.f32 %v2371_v45, %v2080_v52  ;;  %v5074_v53 = vrot.slane %v2081_v54, 9 }
 0x1eb   : > { %v5075_v42 = vrot.slane %v2089_v9, 9  ;;  %v2113_v35 = vrot.slane %v2099_v43, %v6535_v62  ;;  %v2114_v2 = vcombine.high %v2106_v34, %v2106_v34  ;;  %v5078_v14 = vrot.slane %v2106_v34, 9 }
 0x1ec   : > { %8568 = vst [vmem:[#allocation45_spill] sm:$0xff] %v7032_v31  ;;  %v7040_v15 = vmax.f32 %v2372_v7, %v2079_v29  ;;  %v7042_v37 = vmax.f32 %v2373_v12, %v2081_v54  ;;  %v7046_v44 = vmul.f32 %v7032_v31, %v7032_v31  ;;  %v2374_v27 = vmax.f32 %v2081_v54, %v5074_v53  ;;  %v8577_v31 = vld [vmem:[#allocation2_spill] sm:$0xff] }
 0x1ed   : > { %v7048_v52 = vmax.f32 %v2089_v9, %v5075_v42  ;;  %v2115_v39 = vcombine.high %v2113_v35, %v2113_v35  ;;  %v5080_v45 = vrot.slane %v2113_v35, 9  ;;  %v5079_v11 = vrot.slane %v2114_v2, 9 }
 0x1ee   : > { %8569 = vst [vmem:[#allocation46_spill] sm:$0xff] %v7040_v15  ;;  %8570 = vst [vmem:[#allocation47_spill] sm:$0xff] %v7042_v37  ;;  %v7052_v17 = vmul.f32 %v7040_v15, %v7040_v15  ;;  %v7056_v18 = vmax.f32 %v2374_v27, %v2089_v9  ;;  %v2378_v43 = vmax.f32 %v2106_v34, %v5078_v14 }
 0x1ef   : > { %8571 = vst [vmem:[#allocation48_spill] sm:$0xff] %v7046_v44  ;;  %v7060_v54 = vmul.f32 %v7017_v0, %v7017_v0  ;;  %v2623_v7 = vrot.slane %v6832_v63, %v6545_v59  ;;  %v2380_v12 = vmax.f32 %v2113_v35, %v5080_v45  ;;  %v2627_v53 = vrot.slane %v6998_v50, %v6545_v59 }
 0x1f0   : > { %8572 = vst [vmem:[#allocation49_spill] sm:$0xff] %v7052_v17  ;;  %8573 = vst [vmem:[#allocation50_spill] sm:$0xff] %v7056_v18  ;;  %v2631_v42 = vrot.slane %v7010_v23, %v6545_v59  ;;  %v2635_v9 = vrot.slane %v7024_v30, %v6545_v59  ;;  %v2379_v27 = vmax.f32 %v2114_v2, %v5079_v11  ;;  %v5081_v48 = vrot.slane %v2115_v39, 9 }
 0x1f1   : > { %v7070_v29 = vmax.f32 %v2378_v43, %v2114_v2  ;;  %v2639_v34 = vrot.slane %v7028_v28, %v6545_v59  ;;  %v2643_v14 = vrot.slane %v7060_v54, %v6545_v59  ;;  %v7076_v41 = vmax.f32 %v2380_v12, %v2115_v39 }
 0x1f2   : > { %v8576_v45 = vrot.slane %v6820_v5, %v6545_v59  ;;  %v1512_v0 = vadd.f32 %v6886_v58, %v8577_v31  ;;  %v1514_v2 = vadd.f32 %v6895_v40, %v8578_v49  ;;  %v7086_v11 = vmax.f32 %v2379_v27, %v2113_v35 }
 0x1f3   : > { %8574 = vst [vmem:[#allocation51_spill] sm:$0xff] %v7070_v29  ;;  %8575 = vst [vmem:[#allocation52_spill] sm:$0xff] %v7076_v41  ;;  %v7090_v43 = vmul.f32 %v7070_v29, %v7070_v29  ;;  %v2064_v58 = vcombine.high %v6965_v47, %v6965_v47  ;;  %v2381_v35 = vmax.f32 %v2115_v39, %v5081_v48  ;;  %v5070_v27 = vrot.slane %v6965_v47, 9 }
 0x1f4   : > { %v2752_v15 = vsel %vm2728_vm2, %v2623_v7, %v8576_v45  ;;  %8579 = vst [vmem:[#allocation2_spill] sm:$0xff] %v7086_v11  ;;  %v1783_v4 = vadd.f32 %v6872_v24, %v1512_v0  ;;  %v1785_v7 = vadd.f32 %v6881_v16, %v1514_v2  ;;  %v7100_v40 = vmul.f32 %v7086_v11, %v7086_v11  ;;  %v5863_v24 = vld [vmem:[%s8420_s2] ss:$0 sm:$0xff] }
 0x1f5   : > { %8580 = vst [vmem:[#allocation3_spill] sm:$0xff] %v7090_v43  ;;  %v2753_v12 = vsel %vm8510_vm3, %v2627_v53, %v2752_v15  ;;  %v5069_v53 = vrot.slane %v6967_v20, 9  ;;  %v7114_v45 = vmax.f32 %v6974_v51, %v6967_v20 }
 0x1f6   : > { %v2754_v21 = vsel %vm8505_vm4, %v2631_v42, %v2753_v12  ;;  %8581 = vst [vmem:[#allocation53_spill] sm:$0xff] %v7100_v40  ;;  %v1820_v16 = vadd.f32 %v5863_v24, %v1783_v4  ;;  %v1822_v0 = vadd.f32 %v5863_v24, %v1785_v7  ;;  %v8586_v12 = vmax.f32 %v7002_v61, 0.0 }
 0x1f7   : > { %v2755_v31 = vsel %vm8504_vm5, %v2635_v9, %v2754_v21  ;;  %8582 = vst [vmem:[#allocation54_spill] sm:$0xff] %v7114_v45  ;;  %v7118_v21 = vmul.f32 %v6842_v22, %v6842_v22  ;;  %v2369_v39 = vmax.f32 %v6967_v20, %v5069_v53  ;;  %v7125_v9 = vmul.f32 %v6969_v38, %v6969_v38  ;;  %v8613_v38 = vld [vmem:[#allocation8_spill] sm:$0xff]  ;;  %v8614_v22 = vld [vmem:[#allocation11_spill] sm:$0xff] }
 0x1f8   : > { %v2756_v15 = vsel %vm8503_vm6, %v2639_v34, %v2755_v31  ;;  %v1850_v4 = vmax.f32 %v1820_v16, 0.0  ;;  %v1852_v48 = vmax.f32 %v1822_v0, 0.0  ;;  %v2370_v34 = vmax.f32 %v6965_v47, %v5070_v27 }
 0x1f9   : > { %v2757_v42 = vsel %vm8502_vm7, %v2643_v14, %v2756_v15  ;;  %8583 = vst [vmem:[#allocation55_spill] sm:$0xff] %v7118_v21  ;;  %8584 = vst [vmem:[#allocation56_spill] sm:$0xff] %v7125_v9  ;;  %v7130_v51 = vmul.f32 %v7114_v45, %v7114_v45  ;;  %v2651_v14 = vrot.slane %v6867_v10, %v6545_v59  ;;  %v5076_v53 = vrot.slane %v7037_v13, 9 }
 0x1fa   : > { %2789 = vrot.lane.b32.xlu1 %v2757_v42, %s5874_s16  ;;  %3048 = vrot.lane.b32.xlu0 %v2757_v42, %s5873_s15  ;;  %v2655_v2 = vrot.slane %v7118_v21, %v6545_v59  ;;  %v1866_v7 = vmax.f32 %v8586_v12, %v1850_v4  ;;  %v7139_v20 = vmax.f32 %v2369_v39, %v6965_v47  ;;  %v5077_v4 = vrot.slane %v7035_v36, 9 }
 0x1fb   : > { %8585 = vst [vmem:[#allocation57_spill] sm:$0xff] %v7130_v51  ;;  %v2659_v31 = vrot.slane %v7125_v9, %v6545_v59  ;;  %v2098_v15 = vcombine.high %v7035_v36, %v7035_v36  ;;  %v7145_v24 = vmax.f32 %v2370_v34, %v2064_v58  ;;  %v2663_v16 = vrot.slane %v7130_v51, %v6545_v59 }
 0x1fc   : > { %8587 = vst [vmem:[#allocation58_spill] sm:$0xff] %v7139_v20  ;;  %v8589_v0 = vrot.slane %v6846_v19, %v6545_v59  ;;  %v1880_v47 = vmax.f32 %v1866_v7, %v1852_v48  ;;  %v7158_v27 = vmul.f32 %v7139_v20, %v7139_v20  ;;  %v2376_v48 = vmax.f32 %v7037_v13, %v5076_v53 }
 0x1fd   : > { %8588 = vst [vmem:[#allocation59_spill] sm:$0xff] %v7145_v24  ;;  %v7164_v39 = vmul.f32 %v7145_v24, %v7145_v24  ;;  %v7233_v24 = vmul.f32 %v7076_v41, %v7076_v41 }
 0x1fe   : > { %v2758_v61 = vsel %vm2728_vm2, %v2651_v14, %v8589_v0  ;;  %3307 = vrot.lane.b32.xlu1 %v2757_v42, %s5876_s18  ;;  %3566 = vrot.lane.b32.xlu0 %v2757_v42, %s5875_s17  ;;  %8590 = vst [vmem:[#allocation60_spill] sm:$0xff] %v7158_v27  ;;  %v7170_v14 = vmax.f32 %v7048_v52, %v7037_v13 }
 0x1ff   : > { %v2759_v58 = vsel %vm8510_vm3, %v2655_v2, %v2758_v61  ;;  %8591 = vst [vmem:[#allocation61_spill] sm:$0xff] %v7164_v39  ;;  %v2116_v42 = vcombine.high %v1880_v47, %v1880_v47  ;;  %v2123_v12 = vrot.slane %v1880_v47, %v6535_v62  ;;  %v2667_v2 = vrot.slane %v7158_v27, %v6545_v59 }
 0x200   : > { %v2760_v34 = vsel %vm8505_vm4, %v2659_v31, %v2759_v58  ;;  %8592 = vst [vmem:[#allocation62_spill] sm:$0xff] %v7170_v14  ;;  %v2671_v0 = vrot.slane %v7164_v39, %v6545_v59  ;;  %v2377_v61 = vmax.f32 %v7035_v36, %v5077_v4  ;;  %v7180_v31 = vmax.f32 %v2376_v48, %v7035_v36 }
 0x201   : > { %v2761_v7 = vsel %vm8504_vm5, %v2663_v16, %v2760_v34  ;;  %v7184_v13 = vmul.f32 %v7042_v37, %v7042_v37  ;;  %v2130_v52 = vrot.slane %v2116_v42, %v6535_v62  ;;  %v2131_v53 = vcombine.high %v2123_v12, %v2123_v12  ;;  %8603 = vst [vmem:[#allocation72_spill] sm:$0xff] %v7233_v24 }
 0x202   : > { %8593 = vst [vmem:[#allocation63_spill] sm:$0xff] %v7180_v31  ;;  %v5082_v47 = vrot.slane %v2123_v12, 9  ;;  %v7187_v58 = vmax.f32 %v2381_v35, %v2123_v12  ;;  %v2762_v16 = vsel %vm8503_vm6, %v2667_v2, %v2761_v7  ;;  %v7190_v34 = vmax.f32 %v2377_v61, %v2098_v15 }
 0x203   : > { %8594 = vst [vmem:[#allocation64_spill] sm:$0xff] %v7184_v13  ;;  %v7194_v4 = vmul.f32 %v7056_v18, %v7056_v18  ;;  %v7198_v36 = vmul.f32 %v7170_v14, %v7170_v14  ;;  %v2763_v49 = vsel %vm8502_vm7, %v2671_v0, %v2762_v16  ;;  %v7203_v42 = vmul.f32 %v7180_v31, %v7180_v31 }
 0x204   : > { %8595 = vst [vmem:[#allocation65_spill] sm:$0xff] %v7187_v58  ;;  %8596 = vst [vmem:[#allocation66_spill] sm:$0xff] %v7190_v34  ;;  %v2382_v48 = vmax.f32 %v2123_v12, %v5082_v47  ;;  %v2679_v35 = vrot.slane %v7052_v17, %v6545_v59  ;;  %3050 = vrot.lane.b32.xlu1 %v2763_v49, %s5873_s15  ;;  %2791 = vrot.lane.b32.xlu0 %v2763_v49, %s5874_s16  ;;  %v5083_v7 = vrot.slane %v2131_v53, 9 }
 0x205   : > { %8597 = vst [vmem:[#allocation67_spill] sm:$0xff] %v7194_v4  ;;  %8598 = vst [vmem:[#allocation68_spill] sm:$0xff] %v7198_v36  ;;  %v7211_v15 = vmul.f32 %v7190_v34, %v7190_v34  ;;  %v2683_v12 = vrot.slane %v7184_v13, %v6545_v59  ;;  %v2687_v2 = vrot.slane %v7194_v4, %v6545_v59  ;;  %v5084_v18 = vrot.slane %v2130_v52, 9 }
 0x206   : > { %8599 = vst [vmem:[#allocation69_spill] sm:$0xff] %v7203_v42  ;;  %v2691_v0 = vrot.slane %v7198_v36, %v6545_v59  ;;  %v2695_v61 = vrot.slane %v7203_v42, %v6545_v59  ;;  %v8601_v47 = vrot.slane %v7046_v44, %v6545_v59  ;;  %v2132_v34 = vcombine.high %v2130_v52, %v2130_v52 }
 0x207   : > { %8600 = vst [vmem:[#allocation70_spill] sm:$0xff] %v7211_v15  ;;  %v2699_v31 = vrot.slane %v7211_v15, %v6545_v59  ;;  %v2383_v37 = vmax.f32 %v2131_v53, %v5083_v7  ;;  %v7229_v29 = vmax.f32 %v2382_v48, %v2131_v53  ;;  %v7237_v20 = vmul.f32 %v7187_v58, %v7187_v58  ;;  %v8612_v58 = vld [vmem:[#allocation13_spill] sm:$0xff] }
 0x208   : > { %v2764_v16 = vsel %vm2728_vm2, %v2679_v35, %v8601_v47  ;;  %3568 = vrot.lane.b32.xlu1 %v2763_v49, %s5875_s17  ;;  %3309 = vrot.lane.b32.xlu0 %v2763_v49, %s5876_s18  ;;  %v2707_v48 = vrot.slane %v7100_v40, %v6545_v59 }
 0x209   : > { %v2765_v14 = vsel %vm8510_vm3, %v2683_v12, %v2764_v16  ;;  %8602 = vst [vmem:[#allocation71_spill] sm:$0xff] %v7229_v29  ;;  %8604 = vst [vmem:[#allocation73_spill] sm:$0xff] %v7237_v20  ;;  %v2384_v12 = vmax.f32 %v2130_v52, %v5084_v18  ;;  %v7242_v7 = vmax.f32 %v2383_v37, %v2130_v52 }
 0x20a   : > { %v2766_v11 = vsel %vm8505_vm4, %v2687_v2, %v2765_v14  ;;  %v7247_v53 = vmul.f32 %v7229_v29, %v7229_v29  ;;  %v2711_v2 = vrot.slane %v7233_v24, %v6545_v59  ;;  %v2715_v18 = vrot.slane %v7237_v20, %v6545_v59 }
 0x20b   : > { %v2767_v35 = vsel %vm8504_vm5, %v2691_v0, %v2766_v11  ;;  %8605 = vst [vmem:[#allocation74_spill] sm:$0xff] %v7242_v7  ;;  %v7254_v49 = vmax.f32 %v2384_v12, %v2132_v34  ;;  %v7258_v37 = vmul.f32 %v7242_v7, %v7242_v7  ;;  %v8609_v52 = vrot.slane %v7090_v43, %v6545_v59 }
 0x20c   : > { %v2768_v14 = vsel %vm8503_vm6, %v2695_v61, %v2767_v35  ;;  %8606 = vst [vmem:[#allocation75_spill] sm:$0xff] %v7247_v53  ;;  %v2719_v11 = vrot.slane %v7247_v53, %v6545_v59  ;;  %v8617_v53 = vld [vmem:[#allocation21_spill] sm:$0xff] }
 0x20d   : > { %v2769_v47 = vsel %vm8502_vm7, %v2699_v31, %v2768_v14  ;;  %8607 = vst [vmem:[#allocation76_spill] sm:$0xff] %v7254_v49  ;;  %8608 = vst [vmem:[#allocation77_spill] sm:$0xff] %v7258_v37  ;;  %v2770_v0 = vsel %vm2728_vm2, %v2707_v48, %v8609_v52  ;;  %v7272_v31 = vmul.f32 %v7254_v49, %v7254_v49 }
 0x20e   : > { %2793 = vrot.lane.b32.xlu1 %v2769_v47, %s5874_s16  ;;  %3052 = vrot.lane.b32.xlu0 %v2769_v47, %s5873_s15  ;;  %v2723_v34 = vrot.slane %v7258_v37, %v6545_v59  ;;  %v2771_v61 = vsel %vm8510_vm3, %v2711_v2, %v2770_v0  ;;  %v8615_v37 = vld [vmem:[#allocation12_spill] sm:$0xff] }
 0x20f   : > { %8610 = vst [vmem:[#allocation78_spill] sm:$0xff] %v7272_v31  ;;  %v2772_v16 = vsel %vm8505_vm4, %v2715_v18, %v2771_v61  ;;  %v2727_v35 = vrot.slane %v7272_v31, %v6545_v59 }
 0x210   : > { %v2773_v12 = vsel %vm8504_vm5, %v2719_v11, %v2772_v16 }
 0x211   : > { %v2774_v14 = vsel %vm8503_vm6, %v2723_v34, %v2773_v12 }
 0x212   : > { %3311 = vrot.lane.b32.xlu1 %v2769_v47, %s5876_s18  ;;  %v2775_v48 = vsel %vm8502_vm7, %v2727_v35, %v2774_v14 }
 0x213   : > { %2795 = vrot.lane.b32.xlu0 %v2775_v48, %s5874_s16 }
 0x216   : > { %3054 = vrot.lane.b32.xlu1 %v2775_v48, %s5873_s15 }
 0x217   : > { %3313 = vrot.lane.b32.xlu0 %v2775_v48, %s5876_s18 }
 0x21a   : > { %3572 = vrot.lane.b32.xlu1 %v2775_v48, %s5875_s17 }
 0x21b   : > { %3570 = vrot.lane.b32.xlu0 %v2769_v47, %s5875_s17  ;;  %v8611_v47 = vld [vmem:[#allocation7_spill] sm:$0xff] }
 0x225   : > { %v5521_v13 = vpop.f32.mrb[116].mxu1 }
 0x22b   : > { %v3043_v2 = vpop.permute.xlu1 %3042  ;;  %v2784_v59 = vpop.permute.xlu0 %2783 }
 0x22c   : > { %v3063_v18 = vcombine.high %v3043_v2, %v3043_v2  ;;  %v2804_v11 = vcombine.high %v2784_v59, %v2784_v59  ;;  %v2811_v52 = vrot.slane %v2784_v59, %v6535_v62  ;;  %v3070_v0 = vrot.slane %v3043_v2, %v6535_v62 }
 0x22e   : > { %v2818_v34 = vrot.slane %v2804_v11, %v6535_v62  ;;  %v2819_v61 = vcombine.high %v2811_v52, %v2811_v52  ;;  %v2923_v16 = vrot.slane %v2811_v52, 1  ;;  %v3077_v12 = vrot.slane %v3063_v18, %v6535_v62  ;;  %v8616_v18 = vld [vmem:[#allocation16_spill] sm:$0xff] }
 0x22f   : > { %v3561_v35 = vpop.permute.xlu1 %3560  ;;  %v3078_v49 = vcombine.high %v3070_v0, %v3070_v0  ;;  %v2993_v29 = vadd.f32 %v2811_v52, %v8611_v47  ;;  %v3302_v20 = vpop.permute.xlu0 %3301  ;;  %v3182_v31 = vrot.slane %v3070_v0, 1 }
 0x230   : > { %v2820_v14 = vcombine.high %v2818_v34, %v2818_v34  ;;  %v2924_v48 = vrot.slane %v2819_v61, 1  ;;  %v2925_v7 = vrot.slane %v2818_v34, 1  ;;  %v2997_v41 = vadd.f32 %v2818_v34, %v8612_v58 }
 0x231   : > { %v3581_v45 = vcombine.high %v3561_v35, %v3561_v35  ;;  %v3588_v59 = vrot.slane %v3561_v35, %v6535_v62  ;;  %v2994_v2 = vadd.f32 %v2923_v16, %v8613_v38  ;;  %v2995_v11 = vadd.f32 %v2819_v61, %v8614_v22 }
 0x232   : > { %v2996_v24 = vadd.f32 %v2924_v48, %v8615_v37  ;;  %v2998_v40 = vadd.f32 %v2925_v7, %v8616_v18  ;;  %v2999_v43 = vadd.f32 %v2820_v14, %v8617_v53  ;;  %v3079_v4 = vcombine.high %v3077_v12, %v3077_v12  ;;  %v5573_v37 = vpop.f32.mrb[116].mxu0  ;;  %v1474_v14 = vpop.f32.mrb[117].mxu1 }
 0x233   : > { %v3183_v15 = vrot.slane %v3078_v49, 1  ;;  %v3595_v52 = vrot.slane %v3581_v45, %v6535_v62  ;;  %v3252_v58 = vadd.f32 %v3070_v0, %v2993_v29  ;;  %v3184_v34 = vrot.slane %v3077_v12, 1  ;;  %v1745_v17 = vpop.f32.mrb[117].mxu0 }
 0x234   : > { %v3596_v47 = vcombine.high %v3588_v59, %v3588_v59  ;;  %v3256_v35 = vadd.f32 %v3077_v12, %v2997_v41  ;;  %v3322_v42 = vcombine.high %v3302_v20, %v3302_v20  ;;  %v3700_v38 = vrot.slane %v3588_v59, 1  ;;  %v5522_v41 = vpop.f32.mrb[118].mxu1  ;;  %v5574_v12 = vpop.f32.mrb[118].mxu0 }
 0x235   : > { %v3253_v16 = vadd.f32 %v3182_v31, %v2994_v2  ;;  %v3254_v22 = vadd.f32 %v3078_v49, %v2995_v11  ;;  %v3329_v61 = vrot.slane %v3302_v20, %v6535_v62  ;;  %v3255_v48 = vadd.f32 %v3183_v15, %v2996_v24  ;;  %v1476_v20 = vpop.f32.mrb[119].mxu1  ;;  %v1747_v13 = vpop.f32.mrb[119].mxu0 }
 0x236   : > { %v3257_v7 = vadd.f32 %v3184_v34, %v2998_v40  ;;  %v3258_v18 = vadd.f32 %v3079_v4, %v2999_v43  ;;  %v3336_v53 = vrot.slane %v3322_v42, %v6535_v62  ;;  %v3597_v45 = vcombine.high %v3595_v52, %v3595_v52 }
 0x237   : > { %v3337_v29 = vcombine.high %v3329_v61, %v3329_v61  ;;  %v3441_v0 = vrot.slane %v3329_v61, 1  ;;  %v3511_v36 = vadd.f32 %v3329_v61, %v3252_v58  ;;  %v3701_v44 = vrot.slane %v3596_v47, 1 }
 0x238   : > { %v3338_v31 = vcombine.high %v3336_v53, %v3336_v53  ;;  %v3443_v49 = vrot.slane %v3336_v53, 1  ;;  %v3515_v2 = vadd.f32 %v3336_v53, %v3256_v35  ;;  %v3702_v4 = vrot.slane %v3595_v52, 1 }
 0x239   : > { %v3442_v11 = vrot.slane %v3337_v29, 1  ;;  %v3512_v24 = vadd.f32 %v3441_v0, %v3253_v16  ;;  %v3513_v40 = vadd.f32 %v3337_v29, %v3254_v22  ;;  %v3770_v43 = vadd.f32 %v3588_v59, %v3511_v36 }
 0x23a   : > { %v3516_v42 = vadd.f32 %v3443_v49, %v3257_v7  ;;  %v3517_v15 = vadd.f32 %v3338_v31, %v3258_v18  ;;  %v3774_v17 = vadd.f32 %v3595_v52, %v3515_v2 }
 0x23b   : > { %v3514_v34 = vadd.f32 %v3442_v11, %v3255_v48  ;;  %v3771_v37 = vadd.f32 %v3700_v38, %v3512_v24  ;;  %v3772_v14 = vadd.f32 %v3596_v47, %v3513_v40  ;;  %v3819_v58 = vmul.f32 2e-05, %v3770_v43 }
 0x23c   : > { %v3775_v61 = vadd.f32 %v3702_v4, %v3516_v42  ;;  %v3776_v41 = vadd.f32 %v3597_v45, %v3517_v15  ;;  %v3823_v12 = vmul.f32 2e-05, %v3774_v17 }
 0x23d   : > { %v3773_v39 = vadd.f32 %v3701_v44, %v3514_v34  ;;  %v3820_v27 = vmul.f32 2e-05, %v3771_v37  ;;  %v3821_v35 = vmul.f32 2e-05, %v3772_v14  ;;  %v3868_v53 = vadd.f32 1.0, %v3819_v58 }
 0x23e   : > { %v3824_v20 = vmul.f32 2e-05, %v3775_v61  ;;  %v3825_v13 = vmul.f32 2e-05, %v3776_v41  ;;  %v3872_v16 = vadd.f32 1.0, %v3823_v12  ;;  %v8618_v41 = vld [vmem:[#allocation25_spill] sm:$0xff] }
 0x23f   : > { %v3822_v22 = vmul.f32 2e-05, %v3773_v39  ;;  %v3869_v36 = vadd.f32 1.0, %v3820_v27  ;;  %v3870_v59 = vadd.f32 1.0, %v3821_v35  ;;  %5667 = vrsqrt.f32 %v3868_v53 }
 0x240   : > { %v3873_v7 = vadd.f32 1.0, %v3824_v20  ;;  %5669 = vrsqrt.f32 %v3872_v16  ;;  %v3874_v38 = vadd.f32 1.0, %v3825_v13  ;;  %v8619_v20 = vld [vmem:[#allocation28_spill] sm:$0xff] }
 0x241   : > { %v3871_v52 = vadd.f32 1.0, %v3822_v22  ;;  %5671 = vrsqrt.f32 %v3869_v36 }
 0x242   : > { %5673 = vrsqrt.f32 %v3870_v59 }
 0x243   : > { %5675 = vrsqrt.f32 %v3871_v52 }
 0x244   : > { %5677 = vrsqrt.f32 %v3873_v7 }
 0x245   : > { %5679 = vrsqrt.f32 %v3874_v38 }
 0x246   : > { %v3304_v47 = vpop.permute.xlu1 %3303  ;;  %v2786_v48 = vpop.permute.xlu0 %2785 }
 0x247   : > { %v3339_v18 = vcombine.high %v3304_v47, %v3304_v47  ;;  %v2821_v44 = vcombine.high %v2786_v48, %v2786_v48  ;;  %v7305_v45 = vrot.slane %v3304_v47, %v6535_v62  ;;  %v2828_v29 = vrot.slane %v2786_v48, %v6535_v62 }
 0x249   : > { %v2836_v27 = vcombine.high %v2828_v29, %v2828_v29  ;;  %v7309_v39 = vrot.slane %v3339_v18, %v6535_v62  ;;  %v2835_v0 = vrot.slane %v2821_v44, %v6535_v62  ;;  %v7314_v31 = vcombine.high %v7305_v45, %v7305_v45  ;;  %v7316_v2 = vpop.eup %5667 }
 0x24a   : > { %v2926_v49 = vrot.slane %v2828_v29, 1  ;;  %v7319_v40 = vpop.eup %5669  ;;  %5681 = vrsqrt.f32 %v7316_v2  ;;  %v3045_v15 = vpop.permute.xlu0 %3044  ;;  %v3000_v14 = vadd.f32 %v2828_v29, %v6639_v60  ;;  %vm3968_vm8 = vcmp.eq.f32.partialorder %v7316_v2, inf }
 0x24b   : > { %v2927_v24 = vrot.slane %v2836_v27, 1  ;;  %v2837_v4 = vcombine.high %v2835_v0, %v2835_v0  ;;  %v2928_v42 = vrot.slane %v2835_v0, 1  ;;  %v7324_v17 = vpop.eup %5671  ;;  %5683 = vrsqrt.f32 %v7319_v40 }
 0x24c   : > { %v7330_v58 = vpop.eup %5673  ;;  %5685 = vrsqrt.f32 %v7324_v17  ;;  %v3001_v61 = vadd.f32 %v2926_v49, %v6644_v56  ;;  %v3002_v12 = vadd.f32 %v2836_v27, %v8618_v41  ;;  %v3004_v35 = vadd.f32 %v2835_v0, %v6772_v3  ;;  %v8620_v56 = vld [vmem:[#allocation29_spill] sm:$0xff]  ;;  %v8621_v3 = vld [vmem:[#allocation30_spill] sm:$0xff] }
 0x24d   : > { %v7336_v53 = vpop.eup %5675  ;;  %5687 = vrsqrt.f32 %v7330_v58  ;;  %v7340_v13 = vadd.f32 %v2927_v24, %v8619_v20  ;;  %v3080_v16 = vcombine.high %v3045_v15, %v3045_v15  ;;  %v3087_v60 = vrot.slane %v3045_v15, %v6535_v62 }
 0x24e   : > { %v7343_v22 = vpop.eup %5677  ;;  %5689 = vrsqrt.f32 %v7336_v53  ;;  %v7348_v36 = vadd.f32 %v2928_v42, %v8620_v56  ;;  %v7351_v59 = vadd.f32 %v2837_v4, %v8621_v3  ;;  %vm3970_vm9 = vcmp.eq.f32.partialorder %v7316_v2, 0.0  ;;  %v7374_v0 = vpop.permute.xlu0 %3562 }
 0x24f   : > { %v7353_v7 = vpop.eup %5679  ;;  %v3971_v52 = vand.u32 2147483648, %v7316_v2  ;;  %vm3996_vm10 = vcmp.eq.f32.partialorder %v7319_v40, inf  ;;  %5691 = vrsqrt.f32 %v7343_v22  ;;  %vm3975_vm11 = vcmp.eq.f32.partialorder %v7324_v17, inf }
 0x250   : > { %vm3998_vm12 = vcmp.eq.f32.partialorder %v7319_v40, 0.0  ;;  %v3999_v38 = vand.u32 2147483648, %v7319_v40  ;;  %5693 = vrsqrt.f32 %v7353_v7  ;;  %vm3977_vm13 = vcmp.eq.f32.partialorder %v7324_v17, 0.0  ;;  %v2788_v18 = vpop.permute.xlu1 %2787 }
 0x251   : > { %v3978_v47 = vand.u32 2147483648, %v7324_v17  ;;  %vm3982_vm14 = vcmp.eq.f32.partialorder %v7330_v58, inf  ;;  %v7367_v48 = vrot.slane %v3080_v16, %v6535_v62  ;;  %vm3984_vm15 = vcmp.eq.f32.partialorder %v7330_v58, 0.0 }
 0x252   : > { %v3985_v44 = vand.u32 2147483648, %v7330_v58  ;;  %vm3989_vm0 = vcmp.eq.f32.partialorder %v7336_v53, inf  ;;  %v7372_v29 = vcombine.high %v3087_v60, %v3087_v60  ;;  %v3185_v27 = vrot.slane %v3087_v60, 1 }
 0x253   : > { %vm3991_vm1 = vcmp.eq.f32.partialorder %v7336_v53, 0.0  ;;  %v3992_v49 = vand.u32 2147483648, %v7336_v53  ;;  %vm4003_vm7 = vcmp.eq.f32.partialorder %v7343_v22, inf  ;;  %v4006_v24 = vand.u32 2147483648, %v7343_v22 }
 0x254   : > { %v5682_v4 = vpop.eup %5681  ;;  %vm4005_vm6 = vcmp.eq.f32.partialorder %v7343_v22, 0.0  ;;  %vm4010_vm5 = vcmp.eq.f32.partialorder %v7353_v7, inf  ;;  %v4013_v42 = vand.u32 2147483648, %v7353_v7  ;;  %v7383_v15 = vadd.f32 %v3087_v60, %v3000_v14 }
 0x255   : > { %v2838_v41 = vcombine.high %v2788_v18, %v2788_v18  ;;  %v7386_v20 = vrot.slane %v2788_v18, %v6535_v62  ;;  %v5684_v16 = vpop.eup %5683  ;;  %v3967_v56 = vmul.f32 %v5682_v4, %v7316_v2  ;;  %vm4012_vm4 = vcmp.eq.f32.partialorder %v7353_v7, 0.0 }
 0x256   : > { %v7396_v37 = vrot.slane %v7374_v0, %v6535_v62  ;;  %v5686_v14 = vpop.eup %5685  ;;  %v3995_v60 = vmul.f32 %v5684_v16, %v7319_v40  ;;  %v3186_v18 = vrot.slane %v7372_v29, 1  ;;  %v3187_v34 = vrot.slane %v7367_v48, 1 }
 0x257   : > { %v7401_v4 = vadd.f32 %v3185_v27, %v3001_v61  ;;  %v5688_v11 = vpop.eup %5687  ;;  %v3969_v3 = vsel %vm3968_vm8, %v7316_v2, %v3967_v56  ;;  %v3974_v43 = vmul.f32 %v5686_v14, %v7324_v17  ;;  %v7408_v51 = vadd.f32 %v7372_v29, %v3002_v12 }
 0x258   : > { %v7411_v9 = vadd.f32 %v7367_v48, %v3004_v35  ;;  %v5690_v16 = vpop.eup %5689  ;;  %v3972_v21 = vsel %vm3970_vm9, %v3971_v52, %v3969_v3  ;;  %v3981_v61 = vmul.f32 %v5688_v11, %v7330_v58  ;;  %v3997_v27 = vsel %vm3996_vm10, %v7319_v40, %v3995_v60 }
 0x259   : > { %v7420_v56 = vrot.slane %v2838_v41, %v6535_v62  ;;  %v5692_v14 = vpop.eup %5691  ;;  %v3976_v12 = vsel %vm3975_vm11, %v7324_v17, %v3974_v43  ;;  %v3988_v35 = vmul.f32 %v5690_v16, %v7336_v53  ;;  %v4000_v29 = vsel %vm3998_vm12, %v3999_v38, %v3997_v27 }
 0x25a   : > { %v4309_v52 = vmul.f32 %v7316_v2, %v3972_v21  ;;  %v5694_v11 = vpop.eup %5693  ;;  %v3979_v3 = vsel %vm3977_vm13, %v3978_v47, %v3976_v12  ;;  %v3983_v41 = vsel %vm3982_vm14, %v7330_v58, %v3981_v61  ;;  %v4002_v60 = vmul.f32 %v5692_v14, %v7343_v22  ;;  %v8622_v61 = vld [vmem:[#allocation4_spill] sm:$0xff]  ;;  %v8623_v12 = vld [vmem:[#allocation5_spill] sm:$0xff] }
 0x25b   : > { %v4313_v10 = vmul.f32 %v7319_v40, %v4000_v29  ;;  %v3986_v43 = vsel %vm3984_vm15, %v3985_v44, %v3983_v41  ;;  %v3990_v38 = vsel %vm3989_vm0, %v7336_v53, %v3988_v35  ;;  %v4009_v21 = vmul.f32 %v5694_v11, %v7353_v7  ;;  %v8624_v11 = vld [vmem:[#allocation6_spill] sm:$0xff]  ;;  %v8626_v41 = vld [vmem:[#allocation9_spill] sm:$0xff] }
 0x25c   : > { %v4310_v2 = vmul.f32 %v7324_v17, %v3979_v3  ;;  %v3993_v47 = vsel %vm3991_vm1, %v3992_v49, %v3990_v38  ;;  %v4004_v16 = vsel %vm4003_vm7, %v7343_v22, %v4002_v60  ;;  %v4311_v40 = vmul.f32 %v7330_v58, %v3986_v43  ;;  %v8625_v3 = vld [vmem:[#allocation10_spill] sm:$0xff] }
 0x25d   : > { %v4358_v27 = vmul.f32 %v4309_v52, %v8622_v61  ;;  %v4007_v44 = vsel %vm4005_vm6, %v4006_v24, %v4004_v16  ;;  %v4011_v14 = vsel %vm4010_vm5, %v7353_v7, %v4009_v21  ;;  %v4312_v17 = vmul.f32 %v7336_v53, %v3993_v47  ;;  %v8627_v38 = vld [vmem:[#allocation14_spill] sm:$0xff] }
 0x25e   : > { %v4359_v35 = vmul.f32 %v4310_v2, %v8623_v12  ;;  %v4014_v49 = vsel %vm4012_vm4, %v4013_v42, %v4011_v14  ;;  %v4314_v29 = vmul.f32 %v7343_v22, %v4007_v44  ;;  %v4360_v58 = vmul.f32 %v4311_v40, %v8624_v11  ;;  %v8628_v42 = vld [vmem:[#allocation15_spill] sm:$0xff] }
 0x25f   : > { %v4362_v52 = vmul.f32 %v4313_v10, %v8625_v3  ;;  %vm4750_vm7 = vcmask 1043456   ;;  %vm4751_vm8 = vsmask.f32 3328  ;;  %v4315_v24 = vmul.f32 %v7353_v7, %v4014_v49 }
 0x260   : > { %v4361_v60 = vmul.f32 %v4312_v17, %v8626_v41  ;;  %v5136_v43 = vpack.c.bf16 %v4358_v27, %v4358_v27  ;;  %v5137_v53 = vpack.c.bf16 %v4359_v35, %v4359_v35  ;;  %v4363_v21 = vmul.f32 %v4314_v29, %v8627_v38  ;;  %vm7514_vm9 = vmand %vm4750_vm7, %vm4751_vm8 }
 0x261   : > { %v5138_v2 = vpack.c.bf16 %v4360_v58, %v4360_v58  ;;  %v5140_v47 = vpack.c.bf16 %v4362_v52, %v4362_v52  ;;  %v7467_v22 = vcombine.high %v7386_v20, %v7386_v20  ;;  %v4364_v16 = vmul.f32 %v4315_v24, %v8628_v42 }
 0x262   : > { %v5139_v10 = vpack.c.bf16 %v4361_v60, %v4361_v60  ;;  %v4604_v40 = vunpack.c.l.b16 %v5137_v53  ;;  %v3262_v61 = vadd.f32 %v3186_v18, %v7340_v13  ;;  %v5141_v7 = vpack.c.bf16 %v4363_v21, %v4363_v21 }
 0x263   : > { %v4605_v44 = vunpack.c.l.b16 %v5138_v2  ;;  %v4607_v14 = vunpack.c.l.b16 %v5140_v47  ;;  %v3264_v27 = vadd.f32 %v3187_v34, %v7348_v36  ;;  %v5142_v17 = vpack.c.bf16 %v4364_v16, %v4364_v16 }
 0x264   : > { %v4603_v12 = vunpack.c.l.b16 %v5136_v43  ;;  %v4606_v35 = vunpack.c.l.b16 %v5139_v10  ;;  %v4652_v49 = vrot.slane %v4604_v40, 7  ;;  %v4608_v29 = vunpack.c.l.b16 %v5141_v7 }
 0x265   : > { %v4654_v11 = vrot.slane %v4605_v44, 6  ;;  %v8629_v58 = vcombine.high %v7367_v48, %v7367_v48  ;;  %v2854_v13 = vcombine.high %v7420_v56, %v7420_v56  ;;  %v4609_v18 = vunpack.c.l.b16 %v5142_v17 }
 0x266   : > { %v4653_v52 = vsel %vm2728_vm2, %v4652_v49, %v4603_v12  ;;  %v4656_v24 = vrot.slane %v4606_v35, 5  ;;  %v4658_v34 = vrot.slane %v4607_v14, 4  ;;  %v4660_v41 = vrot.slane %v4608_v29, 3 }
 0x267   : > { %v3265_v3 = vadd.f32 %v8629_v58, %v7351_v59  ;;  %v4655_v36 = vsel %vm8510_vm3, %v4654_v11, %v4653_v52  ;;  %v3518_v60 = vadd.f32 %v7305_v45, %v7383_v15  ;;  %v8630_v43 = vrot.slane %v7305_v45, 1  ;;  %v3047_v15 = vpop.permute.xlu1 %3046 }
 0x268   : > { %vm8631_vm4 = vcmask 1043459   ;;  %v4662_v48 = vrot.slane %v4609_v18, 2  ;;  %v3520_v38 = vadd.f32 %v7314_v31, %v7408_v51  ;;  %v8632_v21 = vrot.slane %v7314_v31, 1 }
 0x269   : > { %v3519_v53 = vadd.f32 %v8630_v43, %v7401_v4  ;;  %v4657_v59 = vsel %vm8631_vm4, %v4656_v24, %v4655_v36  ;;  %vm8633_vm5 = vcmask 1044484   ;;  %v3522_v45 = vadd.f32 %v7309_v39, %v7411_v9 }
 0x26a   : > { %v3521_v2 = vadd.f32 %v8632_v21, %v3262_v61  ;;  %v4659_v47 = vsel %vm8633_vm5, %v4658_v34, %v4657_v59  ;;  %v8634_v4 = vrot.slane %v7309_v39, 1  ;;  %v8635_v16 = vcombine.high %v7309_v39, %v7309_v39  ;;  %v4753_v39 = vld [vmem:[%s7489_s23] sm:$0xf] }
 0x26b   : > { %vm8636_vm6 = vcmask 1045509   ;;  %v8637_v51 = vcombine.high %v7374_v0, %v7374_v0  ;;  %v3613_v61 = vcombine.high %v7396_v37, %v7396_v37  ;;  %v3703_v7 = vrot.slane %v7396_v37, 1 }
 0x26c   : > { %v3523_v42 = vadd.f32 %v8634_v4, %v3264_v27  ;;  %v3524_v10 = vadd.f32 %v8635_v16, %v3265_v3  ;;  %v4661_v40 = vsel %vm8636_vm6, %v4660_v41, %v4659_v47  ;;  %vm8640_vm10 = vcmask 1046534  }
 0x26d   : > { %v3612_v31 = vrot.slane %v8637_v51, %v6535_v62  ;;  %v4663_v44 = vsel %vm8640_vm10, %v4662_v48, %v4661_v40  ;;  %v2929_v14 = vrot.slane %v7386_v20, 1  ;;  %v3777_v0 = vadd.f32 %v7396_v37, %v3518_v60  ;;  %v3306_v51 = vpop.permute.xlu0 %3305 }
 0x26e   : > { %v3097_v27 = vcombine.high %v3047_v15, %v3047_v15  ;;  %v4736_v17 = vpack.c.b16 %v4663_v44, %v4663_v44  ;;  %v3704_v35 = vrot.slane %v3613_v61, 1  ;;  %v3778_v29 = vadd.f32 %v3703_v7, %v3519_v53 }
 0x26f   : > { %v3614_v12 = vcombine.high %v3612_v31, %v3612_v31  ;;  %v3705_v49 = vrot.slane %v3612_v31, 1  ;;  %v3779_v11 = vadd.f32 %v3613_v61, %v3520_v38  ;;  %v3781_v58 = vadd.f32 %v3612_v31, %v3522_v45 }
 0x270   : > { %v3826_v3 = vmul.f32 2e-05, %v3777_v0  ;;  %v4754_v18 = vsel %vm7514_vm9, %v4736_v17, %v4753_v39  ;;  %v3780_v52 = vadd.f32 %v3704_v35, %v3521_v2  ;;  %v3827_v36 = vmul.f32 2e-05, %v3778_v29 }
 0x271   : > { %v3782_v24 = vadd.f32 %v3705_v49, %v3523_v42  ;;  %v3783_v34 = vadd.f32 %v3614_v12, %v3524_v10  ;;  %4755 = vst [vmem:[%s7489_s23] sm:$0xf] %v4754_v18  ;;  %v3828_v41 = vmul.f32 2e-05, %v3779_v11  ;;  %v3830_v43 = vmul.f32 2e-05, %v3781_v58 }
 0x272   : > { %v3104_v37 = vrot.slane %v3047_v15, %v6535_v62  ;;  %v2930_v60 = vrot.slane %v7467_v22, 1  ;;  %v2931_v59 = vrot.slane %v7420_v56, 1  ;;  %v3829_v53 = vmul.f32 2e-05, %v3780_v52 }
 0x273   : > { %v3831_v48 = vmul.f32 2e-05, %v3782_v24  ;;  %v3832_v38 = vmul.f32 2e-05, %v3783_v34  ;;  %v3875_v21 = vadd.f32 1.0, %v3826_v3  ;;  %v3876_v47 = vadd.f32 1.0, %v3827_v36 }
 0x274   : > { %v3877_v45 = vadd.f32 1.0, %v3828_v41  ;;  %v3007_v2 = vadd.f32 %v7386_v20, %v6674_v46  ;;  %v3008_v4 = vadd.f32 %v2929_v14, %v6685_v33  ;;  %v3878_v42 = vadd.f32 1.0, %v3829_v53  ;;  %v3565_v46 = vpop.permute.xlu1 %3564 }
 0x275   : > { %v3111_v16 = vrot.slane %v3097_v27, %v6535_v62  ;;  %v3009_v15 = vadd.f32 %v7467_v22, %v6902_v57  ;;  %v3879_v10 = vadd.f32 1.0, %v3830_v43  ;;  %5695 = vrsqrt.f32 %v3875_v21 }
 0x276   : > { %v3112_v40 = vcombine.high %v3104_v37, %v3104_v37  ;;  %v3010_v31 = vadd.f32 %v2930_v60, %v6908_v26  ;;  %v3011_v61 = vadd.f32 %v7420_v56, %v6912_v32  ;;  %v3880_v7 = vadd.f32 1.0, %v3831_v48 }
 0x277   : > { %5697 = vrsqrt.f32 %v3876_v47  ;;  %v3012_v33 = vadd.f32 %v2931_v59, %v6933_v8  ;;  %v3881_v20 = vadd.f32 1.0, %v3832_v38  ;;  %v3188_v39 = vrot.slane %v3104_v37, 1 }
 0x278   : > { %5699 = vrsqrt.f32 %v3877_v45  ;;  %v3113_v44 = vcombine.high %v3111_v16, %v3111_v16  ;;  %v3356_v57 = vcombine.high %v3306_v51, %v3306_v51  ;;  %v3363_v22 = vrot.slane %v3306_v51, %v6535_v62 }
 0x279   : > { %5701 = vrsqrt.f32 %v3878_v42  ;;  %v3189_v14 = vrot.slane %v3112_v40, 1  ;;  %v3190_v0 = vrot.slane %v3111_v16, 1  ;;  %v3615_v26 = vcombine.high %v3565_v46, %v3565_v46 }
 0x27a   : > { %5703 = vrsqrt.f32 %v3879_v10  ;;  %v3370_v32 = vrot.slane %v3356_v57, %v6535_v62  ;;  %v3371_v27 = vcombine.high %v3363_v22, %v3363_v22  ;;  %v3622_v17 = vrot.slane %v3565_v46, %v6535_v62 }
 0x27b   : > { %5705 = vrsqrt.f32 %v3880_v7  ;;  %v3266_v8 = vadd.f32 %v3104_v37, %v3007_v2  ;;  %v3267_v12 = vadd.f32 %v3188_v39, %v3008_v4  ;;  %v3447_v35 = vrot.slane %v3363_v22, 1  ;;  %v7578_v39 = vpop.permute.xlu1 %2789 }
 0x27c   : > { %5707 = vrsqrt.f32 %v3881_v20  ;;  %v3013_v49 = vadd.f32 %v2854_v13, %v6937_v25  ;;  %v3268_v29 = vadd.f32 %v3112_v40, %v3009_v15  ;;  %v3270_v11 = vadd.f32 %v3111_v16, %v3011_v61 }
 0x27d   : > { %v3269_v58 = vadd.f32 %v3189_v14, %v3010_v31  ;;  %v3271_v3 = vadd.f32 %v3190_v0, %v3012_v33  ;;  %v3448_v18 = vrot.slane %v3371_v27, 1  ;;  %v3629_v52 = vrot.slane %v3615_v26, %v6535_v62 }
 0x27e   : > { %v3272_v24 = vadd.f32 %v3113_v44, %v3013_v49  ;;  %v3372_v34 = vcombine.high %v3370_v32, %v3370_v32  ;;  %v3449_v36 = vrot.slane %v3370_v32, 1  ;;  %v3630_v41 = vcombine.high %v3622_v17, %v3622_v17 }
 0x27f   : > { %v7546_v43 = vpop.eup %5695  ;;  %v3525_v37 = vadd.f32 %v3363_v22, %v3266_v8  ;;  %v3526_v60 = vadd.f32 %v3447_v35, %v3267_v12  ;;  %v3706_v59 = vrot.slane %v3622_v17, 1  ;;  %v3527_v25 = vadd.f32 %v3371_v27, %v3268_v29 }
 0x280   : > { %5709 = vrsqrt.f32 %v7546_v43  ;;  %v3528_v13 = vadd.f32 %v3448_v18, %v3269_v58  ;;  %v3529_v48 = vadd.f32 %v3370_v32, %v3270_v11  ;;  %v3631_v38 = vcombine.high %v3629_v52, %v3629_v52 }
 0x281   : > { %v7548_v53 = vpop.eup %5697  ;;  %v3530_v47 = vadd.f32 %v3449_v36, %v3271_v3  ;;  %v3531_v45 = vadd.f32 %v3372_v34, %v3272_v24  ;;  %v3707_v2 = vrot.slane %v3630_v41, 1  ;;  %v3708_v42 = vrot.slane %v3629_v52, 1 }
 0x282   : > { %v7551_v56 = vpop.eup %5699  ;;  %5711 = vrsqrt.f32 %v7548_v53  ;;  %v3784_v16 = vadd.f32 %v3622_v17, %v3525_v37  ;;  %v3785_v15 = vadd.f32 %v3706_v59, %v3526_v60  ;;  %vm4017_vm11 = vcmp.eq.f32.partialorder %v7546_v43, inf }
 0x283   : > { %v7554_v21 = vpop.eup %5701  ;;  %5713 = vrsqrt.f32 %v7551_v56  ;;  %v4020_v40 = vand.u32 2147483648, %v7546_v43  ;;  %v3786_v51 = vadd.f32 %v3630_v41, %v3527_v25  ;;  %vm4019_vm12 = vcmp.eq.f32.partialorder %v7546_v43, 0.0 }
 0x284   : > { %v7557_v4 = vpop.eup %5703  ;;  %5715 = vrsqrt.f32 %v7554_v21  ;;  %vm4024_vm13 = vcmp.eq.f32.partialorder %v7548_v53, inf  ;;  %v4027_v61 = vand.u32 2147483648, %v7548_v53  ;;  %v4034_v7 = vand.u32 2147483648, %v7551_v56 }
 0x285   : > { %v7560_v10 = vpop.eup %5705  ;;  %5717 = vrsqrt.f32 %v7557_v4  ;;  %vm4026_vm14 = vcmp.eq.f32.partialorder %v7548_v53, 0.0  ;;  %vm4031_vm15 = vcmp.eq.f32.partialorder %v7551_v56, inf  ;;  %v4041_v46 = vand.u32 2147483648, %v7554_v21 }
 0x286   : > { %v7565_v31 = vpop.eup %5707  ;;  %5719 = vrsqrt.f32 %v7560_v10  ;;  %v4048_v33 = vand.u32 2147483648, %v7557_v4  ;;  %v4055_v20 = vand.u32 2147483648, %v7560_v10  ;;  %vm4033_vm0 = vcmp.eq.f32.partialorder %v7551_v56, 0.0 }
 0x287   : > { %5721 = vrsqrt.f32 %v7565_v31  ;;  %vm4038_vm1 = vcmp.eq.f32.partialorder %v7554_v21, inf  ;;  %v3787_v44 = vadd.f32 %v3707_v2, %v3528_v13  ;;  %v3788_v57 = vadd.f32 %v3629_v52, %v3529_v48 }
 0x288   : > { %v3789_v22 = vadd.f32 %v3708_v42, %v3530_v47  ;;  %v3790_v14 = vadd.f32 %v3631_v38, %v3531_v45  ;;  %vm4040_vm7 = vcmp.eq.f32.partialorder %v7554_v21, 0.0  ;;  %vm4045_vm8 = vcmp.eq.f32.partialorder %v7557_v4, inf }
 0x289   : > { %v3833_v0 = vmul.f32 2e-05, %v3784_v16  ;;  %v3834_v26 = vmul.f32 2e-05, %v3785_v15  ;;  %v3835_v32 = vmul.f32 2e-05, %v3786_v51  ;;  %v2855_v12 = vcombine.high %v7578_v39, %v7578_v39 }
 0x28a   : > { %vm4047_vm4 = vcmp.eq.f32.partialorder %v7557_v4, 0.0  ;;  %vm4052_vm5 = vcmp.eq.f32.partialorder %v7560_v10, inf  ;;  %v3836_v27 = vmul.f32 2e-05, %v3787_v44  ;;  %v3837_v17 = vmul.f32 2e-05, %v3788_v57  ;;  %v5710_v35 = vpop.eup %5709 }
 0x28b   : > { %v3838_v8 = vmul.f32 2e-05, %v3789_v22  ;;  %vm4054_vm6 = vcmp.eq.f32.partialorder %v7560_v10, 0.0  ;;  %vm4059_vm10 = vcmp.eq.f32.partialorder %v7565_v31, inf  ;;  %v3839_v49 = vmul.f32 2e-05, %v3790_v14 }
 0x28c   : > { %v3882_v29 = vadd.f32 1.0, %v3833_v0  ;;  %v3883_v11 = vadd.f32 1.0, %v3834_v26  ;;  %v3884_v58 = vadd.f32 1.0, %v3835_v32  ;;  %v5712_v3 = vpop.eup %5711  ;;  %v4016_v18 = vmul.f32 %v5710_v35, %v7546_v43 }
 0x28d   : > { %vm4061_vm3 = vcmp.eq.f32.partialorder %v7565_v31, 0.0  ;;  %v4062_v52 = vand.u32 2147483648, %v7565_v31  ;;  %v3885_v24 = vadd.f32 1.0, %v3836_v27  ;;  %v5714_v34 = vpop.eup %5713  ;;  %v4023_v36 = vmul.f32 %v5712_v3, %v7548_v53 }
 0x28e   : > { %v3886_v41 = vadd.f32 1.0, %v3837_v17  ;;  %v3887_v37 = vadd.f32 1.0, %v3838_v8  ;;  %5723 = vrsqrt.f32 %v3882_v29  ;;  %v5716_v60 = vpop.eup %5715  ;;  %v4018_v59 = vsel %vm4017_vm11, %v7546_v43, %v4016_v18  ;;  %v8643_v29 = vld [vmem:[#allocation19_spill] sm:$0xff] }
 0x28f   : > { %v4030_v25 = vmul.f32 %v5714_v34, %v7551_v56  ;;  %v3888_v13 = vadd.f32 1.0, %v3839_v49  ;;  %5725 = vrsqrt.f32 %v3883_v11  ;;  %v5718_v48 = vpop.eup %5717  ;;  %v4021_v38 = vsel %vm4019_vm12, %v4020_v40, %v4018_v59 }
 0x290   : > { %v4025_v47 = vsel %vm4024_vm13, %v7548_v53, %v4023_v36  ;;  %v4037_v45 = vmul.f32 %v5716_v60, %v7554_v21  ;;  %5727 = vrsqrt.f32 %v3884_v58  ;;  %v5720_v2 = vpop.eup %5719  ;;  %v4044_v15 = vmul.f32 %v5718_v48, %v7557_v4  ;;  %v8644_v58 = vld [vmem:[#allocation20_spill] sm:$0xff] }
 0x291   : > { %v4028_v42 = vsel %vm4026_vm14, %v4027_v61, %v4025_v47  ;;  %v4032_v16 = vsel %vm4031_vm15, %v7551_v56, %v4030_v25  ;;  %v4316_v51 = vmul.f32 %v7546_v43, %v4021_v38  ;;  %v5722_v40 = vpop.eup %5721  ;;  %v4051_v22 = vmul.f32 %v5720_v2, %v7560_v10 }
 0x292   : > { %v4035_v44 = vsel %vm4033_vm0, %v4034_v7, %v4032_v16  ;;  %v4039_v57 = vsel %vm4038_vm1, %v7554_v21, %v4037_v45  ;;  %v4317_v61 = vmul.f32 %v7548_v53, %v4028_v42  ;;  %v4046_v0 = vsel %vm4045_vm8, %v7557_v4, %v4044_v15 }
 0x293   : > { %v4042_v14 = vsel %vm4040_vm7, %v4041_v46, %v4039_v57  ;;  %v4058_v43 = vmul.f32 %v5722_v40, %v7565_v31  ;;  %v4318_v26 = vmul.f32 %v7551_v56, %v4035_v44  ;;  %v4049_v7 = vsel %vm4047_vm4, %v4048_v33, %v4046_v0  ;;  %v8641_v46 = vld [vmem:[#allocation17_spill] sm:$0xff]  ;;  %v8642_v33 = vld [vmem:[#allocation18_spill] sm:$0xff] }
 0x294   : > { %v4053_v53 = vsel %vm4052_vm5, %v7560_v10, %v4051_v22  ;;  %v4319_v32 = vmul.f32 %v7554_v21, %v4042_v14  ;;  %v4365_v27 = vmul.f32 %v4316_v51, %v8641_v46  ;;  %v4320_v8 = vmul.f32 %v7557_v4, %v4049_v7  ;;  %v8646_v4 = vld [vmem:[#allocation26_spill] sm:$0xff] }
 0x295   : > { %v4056_v17 = vsel %vm4054_vm6, %v4055_v20, %v4053_v53  ;;  %v4060_v56 = vsel %vm4059_vm10, %v7565_v31, %v4058_v43  ;;  %v4366_v35 = vmul.f32 %v4317_v61, %v8642_v33  ;;  %v4367_v11 = vmul.f32 %v4318_v26, %v8643_v29  ;;  %v8645_v20 = vld [vmem:[#allocation24_spill] sm:$0xff]  ;;  %v3049_v29 = vpop.permute.xlu0 %3048 }
 0x296   : > { %v4063_v49 = vsel %vm4061_vm3, %v4062_v52, %v4060_v56  ;;  %v4321_v21 = vmul.f32 %v7560_v10, %v4056_v17  ;;  %v4368_v3 = vmul.f32 %v4319_v32, %v8644_v58  ;;  %v4369_v34 = vmul.f32 %v4320_v8, %v8645_v20  ;;  %v8647_v10 = vld [vmem:[#allocation27_spill] sm:$0xff]  ;;  %v4756_v56 = vld [vmem:[%s7489_s23 + $0x4] sm:$0xf] }
 0x297   : > { %v4322_v18 = vmul.f32 %v7565_v31, %v4063_v49  ;;  %v5143_v36 = vpack.c.bf16 %v4365_v27, %v4365_v27  ;;  %v5144_v60 = vpack.c.bf16 %v4366_v35, %v4366_v35  ;;  %v5145_v48 = vpack.c.bf16 %v4367_v11, %v4367_v11 }
 0x298   : > { %v7650_v59 = vpop.eup %5723  ;;  %v4370_v25 = vmul.f32 %v4321_v21, %v8646_v4  ;;  %v5146_v38 = vpack.c.bf16 %v4368_v3, %v4368_v3  ;;  %5729 = vrsqrt.f32 %v3885_v24  ;;  %v5147_v45 = vpack.c.bf16 %v4369_v34, %v4369_v34 }
 0x299   : > { %v7653_v52 = vpop.eup %5725  ;;  %v4371_v47 = vmul.f32 %v4322_v18, %v8647_v10  ;;  %v4610_v2 = vunpack.c.l.b16 %v5143_v36  ;;  %v4611_v42 = vunpack.c.l.b16 %v5144_v60  ;;  %v4612_v15 = vunpack.c.l.b16 %v5145_v48 }
 0x29a   : > { %v7656_v16 = vpop.eup %5727  ;;  %v5148_v31 = vpack.c.bf16 %v4370_v25, %v4370_v25  ;;  %v4613_v51 = vunpack.c.l.b16 %v5146_v38  ;;  %5731 = vrsqrt.f32 %v3886_v41  ;;  %v4614_v44 = vunpack.c.l.b16 %v5147_v45  ;;  %v7712_v45 = vpop.permute.xlu1 %3307 }
 0x29b   : > { %v5149_v40 = vpack.c.bf16 %v4371_v47, %v4371_v47  ;;  %v4664_v57 = vrot.slane %v4611_v42, 7  ;;  %5733 = vrsqrt.f32 %v3887_v37  ;;  %v4666_v61 = vrot.slane %v4612_v15, 6 }
 0x29c   : > { %v4615_v22 = vunpack.c.l.b16 %v5148_v31  ;;  %v4668_v24 = vrot.slane %v4613_v51, 5  ;;  %5735 = vrsqrt.f32 %v3888_v13  ;;  %v2862_v43 = vrot.slane %v7578_v39, %v6535_v62 }
 0x29d   : > { %v4616_v14 = vunpack.c.l.b16 %v5149_v40  ;;  %v4665_v0 = vsel %vm2728_vm2, %v4664_v57, %v4610_v2  ;;  %5737 = vrsqrt.f32 %v7650_v59  ;;  %vm8648_vm3 = vcmask 1042434   ;;  %v7735_v40 = vpop.permute.xlu0 %3566 }
 0x29e   : > { %v4667_v26 = vsel %vm8648_vm3, %v4666_v61, %v4665_v0  ;;  %v4670_v41 = vrot.slane %v4614_v44, 4  ;;  %v7667_v37 = vrot.slane %v2855_v12, %v6535_v62  ;;  %vm8649_vm11 = vcmask 1043459  }
 0x29f   : > { %v4669_v13 = vsel %vm8649_vm11, %v4668_v24, %v4667_v26  ;;  %v4672_v7 = vrot.slane %v4615_v22, 3  ;;  %5739 = vrsqrt.f32 %v7653_v52  ;;  %vm8650_vm12 = vcmask 1044484  }
 0x2a0   : > { %v4671_v53 = vsel %vm8650_vm12, %v4670_v41, %v4669_v13  ;;  %v4674_v32 = vrot.slane %v4616_v14, 2  ;;  %vm8651_vm13 = vcmask 1045509   ;;  %5741 = vrsqrt.f32 %v7656_v16 }
 0x2a1   : > { %v4673_v46 = vsel %vm8651_vm13, %v4672_v7, %v4671_v53  ;;  %v2870_v27 = vcombine.high %v2862_v43, %v2862_v43  ;;  %vm8652_vm14 = vcmask 1046534   ;;  %vm4066_vm15 = vcmp.eq.f32.partialorder %v7650_v59, inf }
 0x2a2   : > { %v7674_v17 = vpop.eup %5729  ;;  %v4675_v39 = vsel %vm8652_vm14, %v4674_v32, %v4673_v46  ;;  %v2871_v12 = vcombine.high %v7667_v37, %v7667_v37  ;;  %vm4068_vm0 = vcmp.eq.f32.partialorder %v7650_v59, 0.0  ;;  %v2932_v33 = vrot.slane %v2862_v43, 1 }
 0x2a3   : > { %v4737_v8 = vpack.c.b16 %v4675_v39, %v4675_v39  ;;  %5743 = vrsqrt.f32 %v7674_v17  ;;  %v4069_v49 = vand.u32 2147483648, %v7650_v59  ;;  %vm4073_vm1 = vcmp.eq.f32.partialorder %v7653_v52, inf }
 0x2a4   : > { %v7683_v35 = vpop.eup %5731  ;;  %vm4075_vm7 = vcmp.eq.f32.partialorder %v7653_v52, 0.0  ;;  %v4076_v21 = vand.u32 2147483648, %v7653_v52  ;;  %vm4080_vm8 = vcmp.eq.f32.partialorder %v7656_v16, inf  ;;  %v2933_v3 = vrot.slane %v2870_v27, 1 }
 0x2a5   : > { %v7689_v11 = vpop.eup %5733  ;;  %v4757_v58 = vsel %vm7514_vm9, %v4737_v8, %v4756_v56  ;;  %5745 = vrsqrt.f32 %v7683_v35  ;;  %vm4082_vm4 = vcmp.eq.f32.partialorder %v7656_v16, 0.0  ;;  %v4083_v20 = vand.u32 2147483648, %v7656_v16 }
 0x2a6   : > { %v7695_v18 = vpop.eup %5735  ;;  %4758 = vst [vmem:[%s7489_s23 + $0x4] sm:$0xf] %v4757_v58  ;;  %5747 = vrsqrt.f32 %v7689_v11  ;;  %v2934_v34 = vrot.slane %v7667_v37, 1  ;;  %vm4087_vm5 = vcmp.eq.f32.partialorder %v7674_v17, inf  ;;  %v4090_v60 = vand.u32 2147483648, %v7674_v17 }
 0x2a7   : > { %v5738_v36 = vpop.eup %5737  ;;  %5749 = vrsqrt.f32 %v7695_v18  ;;  %v3014_v4 = vadd.f32 %v2862_v43, %v6820_v5  ;;  %v3015_v25 = vadd.f32 %v2932_v33, %v6832_v63  ;;  %vm4089_vm6 = vcmp.eq.f32.partialorder %v7674_v17, 0.0 }
 0x2a8   : > { %v4065_v48 = vmul.f32 %v5738_v36, %v7650_v59  ;;  %v4097_v38 = vand.u32 2147483648, %v7683_v35  ;;  %v4104_v10 = vand.u32 2147483648, %v7689_v11  ;;  %v4111_v47 = vand.u32 2147483648, %v7695_v18 }
 0x2a9   : > { %v5740_v2 = vpop.eup %5739  ;;  %vm4094_vm10 = vcmp.eq.f32.partialorder %v7683_v35, inf  ;;  %v7716_v42 = vadd.f32 %v2870_v27, %v6998_v50  ;;  %v7719_v5 = vadd.f32 %v2933_v3, %v7010_v23  ;;  %v7723_v63 = vadd.f32 %v7667_v37, %v7024_v30  ;;  %v8653_v27 = vld [vmem:[#allocation22_spill] sm:$0xff] }
 0x2aa   : > { %v3114_v31 = vcombine.high %v3049_v29, %v3049_v29  ;;  %v4067_v15 = vsel %vm4066_vm15, %v7650_v59, %v4065_v48  ;;  %v4072_v51 = vmul.f32 %v5740_v2, %v7653_v52  ;;  %vm4096_vm3 = vcmp.eq.f32.partialorder %v7683_v35, 0.0  ;;  %v5742_v30 = vpop.eup %5741 }
 0x2ab   : > { %vm4101_vm11 = vcmp.eq.f32.partialorder %v7689_v11, inf  ;;  %v7732_v50 = vadd.f32 %v2934_v34, %v7028_v28  ;;  %v3121_v23 = vrot.slane %v3049_v29, %v6535_v62  ;;  %v4070_v44 = vsel %vm4068_vm0, %v4069_v49, %v4067_v15 }
 0x2ac   : > { %vm4103_vm12 = vcmp.eq.f32.partialorder %v7689_v11, 0.0  ;;  %vm4108_vm13 = vcmp.eq.f32.partialorder %v7695_v18, inf  ;;  %v7742_v57 = vadd.f32 %v2871_v12, %v7060_v54  ;;  %v7745_v22 = vrot.slane %v3114_v31, %v6535_v62 }
 0x2ad   : > { %v3373_v28 = vcombine.high %v7712_v45, %v7712_v45  ;;  %v4074_v61 = vsel %vm4073_vm1, %v7653_v52, %v4072_v51  ;;  %v4079_v24 = vmul.f32 %v5742_v30, %v7656_v16  ;;  %vm4110_vm14 = vcmp.eq.f32.partialorder %v7695_v18, 0.0  ;;  %v5744_v43 = vpop.eup %5743 }
 0x2ae   : > { %v4323_v14 = vmul.f32 %v7650_v59, %v4070_v44  ;;  %v3129_v0 = vcombine.high %v3121_v23, %v3121_v23  ;;  %v4077_v54 = vsel %vm4075_vm7, %v4076_v21, %v4074_v61  ;;  %v3130_v26 = vcombine.high %v7745_v22, %v7745_v22 }
 0x2af   : > { %v7761_v41 = vrot.slane %v7712_v45, %v6535_v62  ;;  %v3632_v37 = vcombine.high %v7735_v40, %v7735_v40  ;;  %v4081_v13 = vsel %vm4080_vm8, %v7656_v16, %v4079_v24  ;;  %v4086_v59 = vmul.f32 %v5744_v43, %v7674_v17  ;;  %v5746_v32 = vpop.eup %5745 }
 0x2b0   : > { %v4324_v7 = vmul.f32 %v7653_v52, %v4077_v54  ;;  %v3191_v53 = vrot.slane %v3121_v23, 1  ;;  %v4084_v46 = vsel %vm4082_vm4, %v4083_v20, %v4081_v13  ;;  %v4372_v56 = vmul.f32 %v4323_v14, %v8653_v27  ;;  %v5748_v8 = vpop.eup %5747  ;;  %v8654_v52 = vld [vmem:[#allocation23_spill] sm:$0xff]  ;;  %v8655_v54 = vld [vmem:[#allocation40_spill] sm:$0xff] }
 0x2b1   : > { %v3192_v39 = vrot.slane %v3129_v0, 1  ;;  %v3193_v12 = vrot.slane %v7745_v22, 1  ;;  %v4088_v33 = vsel %vm4087_vm5, %v7674_v17, %v4086_v59  ;;  %v4093_v49 = vmul.f32 %v5746_v32, %v7683_v35  ;;  %v5750_v58 = vpop.eup %5749 }
 0x2b2   : > { %v4325_v21 = vmul.f32 %v7656_v16, %v4084_v46  ;;  %v4373_v29 = vmul.f32 %v4324_v7, %v8654_v52  ;;  %v4091_v3 = vsel %vm4089_vm6, %v4090_v60, %v4088_v33  ;;  %v4100_v20 = vmul.f32 %v5748_v8, %v7689_v11  ;;  %v8656_v7 = vld [vmem:[#allocation41_spill] sm:$0xff] }
 0x2b3   : > { %v3273_v34 = vadd.f32 %v3121_v23, %v3014_v4  ;;  %v3274_v36 = vadd.f32 %v3191_v53, %v3015_v25  ;;  %v4095_v48 = vsel %vm4094_vm10, %v7683_v35, %v4093_v49  ;;  %v4107_v2 = vmul.f32 %v5750_v58, %v7695_v18 }
 0x2b4   : > { %v4326_v31 = vmul.f32 %v7674_v17, %v4091_v3  ;;  %v4374_v16 = vmul.f32 %v4325_v21, %v6670_v1  ;;  %v4098_v15 = vsel %vm4096_vm3, %v4097_v38, %v4095_v48  ;;  %v4102_v60 = vsel %vm4101_vm11, %v7689_v11, %v4100_v20 }
 0x2b5   : > { %v5150_v51 = vpack.c.bf16 %v4372_v56, %v4372_v56  ;;  %v5151_v4 = vpack.c.bf16 %v4373_v29, %v4373_v29  ;;  %v4105_v25 = vsel %vm4103_vm12, %v4104_v10, %v4102_v60  ;;  %v4109_v23 = vsel %vm4108_vm13, %v7695_v18, %v4107_v2 }
 0x2b6   : > { %v4327_v17 = vmul.f32 %v7683_v35, %v4098_v15  ;;  %v4375_v1 = vmul.f32 %v4326_v31, %v6689_v55  ;;  %v4112_v38 = vsel %vm4110_vm14, %v4111_v47, %v4109_v23  ;;  %v4328_v30 = vmul.f32 %v7689_v11, %v4105_v25 }
 0x2b7   : > { %v5152_v44 = vpack.c.bf16 %v4374_v16, %v4374_v16  ;;  %v4618_v61 = vunpack.c.l.b16 %v5151_v4  ;;  %v4329_v24 = vmul.f32 %v7695_v18, %v4112_v38  ;;  %v3275_v43 = vadd.f32 %v3129_v0, %v7716_v42 }
 0x2b8   : > { %v4376_v10 = vmul.f32 %v4327_v17, %v6893_v6  ;;  %v5153_v14 = vpack.c.bf16 %v4375_v1, %v4375_v1  ;;  %v4377_v35 = vmul.f32 %v4328_v30, %v8655_v54  ;;  %v4617_v13 = vunpack.c.l.b16 %v5150_v51 }
 0x2b9   : > { %v4619_v55 = vunpack.c.l.b16 %v5152_v44  ;;  %v4676_v59 = vrot.slane %v4618_v61, 7  ;;  %v4378_v53 = vmul.f32 %v4329_v24, %v8656_v7  ;;  %v3276_v11 = vadd.f32 %v3192_v39, %v7719_v5  ;;  %v3051_v44 = vpop.permute.xlu1 %3050 }
 0x2ba   : > { %v5154_v32 = vpack.c.bf16 %v4376_v10, %v4376_v10  ;;  %v4620_v47 = vunpack.c.l.b16 %v5153_v14  ;;  %v5155_v46 = vpack.c.bf16 %v4377_v35, %v4377_v35  ;;  %v3277_v6 = vadd.f32 %v7745_v22, %v7723_v63 }
 0x2bb   : > { %v4677_v27 = vsel %vm2728_vm2, %v4676_v59, %v4617_v13  ;;  %v4678_v18 = vrot.slane %v4619_v55, 6  ;;  %v5156_v56 = vpack.c.bf16 %v4378_v53, %v4378_v53  ;;  %v3387_v8 = vrot.slane %v3373_v28, %v6535_v62 }
 0x2bc   : > { %v4621_v42 = vunpack.c.l.b16 %v5154_v32  ;;  %v4680_v0 = vrot.slane %v4620_v47, 5  ;;  %v4622_v33 = vunpack.c.l.b16 %v5155_v46  ;;  %vm8657_vm15 = vcmask 1042434  }
 0x2bd   : > { %v4679_v49 = vsel %vm8657_vm15, %v4678_v18, %v4677_v27  ;;  %v3388_v5 = vcombine.high %v7761_v41, %v7761_v41  ;;  %v3450_v39 = vrot.slane %v7761_v41, 1  ;;  %v4623_v21 = vunpack.c.l.b16 %v5156_v56 }
 0x2be   : > { %vm8658_vm0 = vcmask 1043459   ;;  %v4682_v52 = vrot.slane %v4621_v42, 4  ;;  %v3278_v29 = vadd.f32 %v3193_v12, %v7732_v50  ;;  %v4684_v58 = vrot.slane %v4622_v33, 3  ;;  %v4759_v50 = vld [vmem:[%s7489_s23 + $0x8] sm:$0xf] }
 0x2bf   : > { %v4681_v63 = vsel %vm8658_vm0, %v4680_v0, %v4679_v49  ;;  %v3279_v45 = vadd.f32 %v3130_v26, %v7742_v57  ;;  %v3389_v28 = vcombine.high %v3387_v8, %v3387_v8  ;;  %v3452_v3 = vrot.slane %v3387_v8, 1 }
 0x2c0   : > { %vm8659_vm1 = vcmask 1044484   ;;  %v4686_v48 = vrot.slane %v4623_v21, 2  ;;  %v3451_v2 = vrot.slane %v3388_v5, 1  ;;  %v3532_v31 = vadd.f32 %v7761_v41, %v3273_v34 }
 0x2c1   : > { %v4683_v20 = vsel %vm8659_vm1, %v4682_v52, %v4681_v63  ;;  %vm8660_vm7 = vcmask 1045509   ;;  %v3533_v15 = vadd.f32 %v3450_v39, %v3274_v36  ;;  %v3534_v60 = vadd.f32 %v3388_v5, %v3275_v43 }
 0x2c2   : > { %v4685_v16 = vsel %vm8660_vm7, %v4684_v58, %v4683_v20  ;;  %v3536_v51 = vadd.f32 %v3387_v8, %v3277_v6  ;;  %vm8661_vm8 = vcmask 1046534   ;;  %v3537_v4 = vadd.f32 %v3452_v3, %v3278_v29  ;;  %v3569_v6 = vpop.permute.xlu1 %3568 }
 0x2c3   : > { %v4687_v12 = vsel %vm8661_vm8, %v4686_v48, %v4685_v16  ;;  %v3639_v57 = vrot.slane %v7735_v40, %v6535_v62  ;;  %v3646_v22 = vrot.slane %v3632_v37, %v6535_v62  ;;  %v3538_v41 = vadd.f32 %v3389_v28, %v3279_v45  ;;  %v2792_v40 = vpop.permute.xlu0 %2791  ;;  %v8663_v16 = vld [vmem:[#allocation55_spill] sm:$0xff] }
 0x2c4   : > { %v4738_v26 = vpack.c.b16 %v4687_v12, %v4687_v12  ;;  %v3535_v34 = vadd.f32 %v3451_v2, %v3276_v11  ;;  %v2872_v32 = vcombine.high %v2792_v40, %v2792_v40  ;;  %v3131_v18 = vcombine.high %v3051_v44, %v3051_v44  ;;  %v8662_v2 = vld [vmem:[#allocation39_spill] sm:$0xff]  ;;  %v8665_v12 = vld [vmem:[#allocation57_spill] sm:$0xff] }
 0x2c5   : > { %v3647_v25 = vcombine.high %v3639_v57, %v3639_v57  ;;  %v3709_v36 = vrot.slane %v3639_v57, 1  ;;  %v3711_v23 = vrot.slane %v3646_v22, 1  ;;  %v3648_v1 = vcombine.high %v3646_v22, %v3646_v22 }
 0x2c6   : > { %v4760_v17 = vsel %vm7514_vm9, %v4738_v26, %v4759_v50  ;;  %v3791_v38 = vadd.f32 %v3639_v57, %v3532_v31  ;;  %v3795_v30 = vadd.f32 %v3646_v22, %v3536_v51  ;;  %v2879_v0 = vrot.slane %v2792_v40, %v6535_v62  ;;  %v8664_v51 = vld [vmem:[#allocation56_spill] sm:$0xff] }
 0x2c7   : > { %4761 = vst [vmem:[%s7489_s23 + $0x8] sm:$0xf] %v4760_v17  ;;  %v3710_v61 = vrot.slane %v3647_v25, 1  ;;  %v3792_v24 = vadd.f32 %v3709_v36, %v3533_v15  ;;  %v3793_v10 = vadd.f32 %v3647_v25, %v3534_v60  ;;  %v3796_v14 = vadd.f32 %v3711_v23, %v3537_v4  ;;  %v8667_v25 = vld [vmem:[#allocation61_spill] sm:$0xff] }
 0x2c8   : > { %v3797_v37 = vadd.f32 %v3648_v1, %v3538_v41  ;;  %v3840_v43 = vmul.f32 2e-05, %v3791_v38  ;;  %v3844_v54 = vmul.f32 2e-05, %v3795_v30  ;;  %v3138_v33 = vrot.slane %v3051_v44, %v6535_v62  ;;  %v8666_v41 = vld [vmem:[#allocation60_spill] sm:$0xff]  ;;  %v3310_v30 = vpop.permute.xlu0 %3309 }
 0x2c9   : > { %v3794_v35 = vadd.f32 %v3710_v61, %v3535_v34  ;;  %v3841_v13 = vmul.f32 2e-05, %v3792_v24  ;;  %v3842_v55 = vmul.f32 2e-05, %v3793_v10  ;;  %v3845_v59 = vmul.f32 2e-05, %v3796_v14  ;;  %v7876_v14 = vpop.permute.xlu1 %2793 }
 0x2ca   : > { %v3846_v7 = vmul.f32 2e-05, %v3797_v37  ;;  %v3889_v53 = vadd.f32 1.0, %v3840_v43  ;;  %v3893_v27 = vadd.f32 1.0, %v3844_v54  ;;  %v2886_v49 = vrot.slane %v2872_v32, %v6535_v62 }
 0x2cb   : > { %v3843_v47 = vmul.f32 2e-05, %v3794_v35  ;;  %v3890_v11 = vadd.f32 1.0, %v3841_v13  ;;  %v3891_v46 = vadd.f32 1.0, %v3842_v55  ;;  %v3894_v42 = vadd.f32 1.0, %v3845_v59 }
 0x2cc   : > { %5751 = vrsqrt.f32 %v3889_v53  ;;  %v3895_v8 = vadd.f32 1.0, %v3846_v7  ;;  %v2887_v5 = vcombine.high %v2879_v0, %v2879_v0  ;;  %v3649_v39 = vcombine.high %v3569_v6, %v3569_v6 }
 0x2cd   : > { %v3892_v56 = vadd.f32 1.0, %v3843_v47  ;;  %5753 = vrsqrt.f32 %v3890_v11  ;;  %v3145_v21 = vrot.slane %v3131_v18, %v6535_v62  ;;  %v2935_v63 = vrot.slane %v2879_v0, 1 }
 0x2ce   : > { %5755 = vrsqrt.f32 %v3891_v46  ;;  %v2936_v52 = vrot.slane %v2887_v5, 1  ;;  %v7848_v29 = vrot.slane %v3569_v6, %v6535_v62  ;;  %v3146_v58 = vcombine.high %v3138_v33, %v3138_v33 }
 0x2cf   : > { %5757 = vrsqrt.f32 %v3892_v56  ;;  %v2888_v45 = vcombine.high %v2886_v49, %v2886_v49  ;;  %v2937_v28 = vrot.slane %v2886_v49, 1  ;;  %v3021_v3 = vadd.f32 %v2879_v0, %v6846_v19 }
 0x2d0   : > { %5759 = vrsqrt.f32 %v3893_v27  ;;  %v7852_v20 = vrot.slane %v3649_v39, %v6535_v62  ;;  %v3147_v48 = vcombine.high %v3145_v21, %v3145_v21  ;;  %v3022_v31 = vadd.f32 %v2935_v63, %v8662_v2 }
 0x2d1   : > { %5761 = vrsqrt.f32 %v3894_v42  ;;  %v3023_v15 = vadd.f32 %v2887_v5, %v8663_v16  ;;  %v3194_v60 = vrot.slane %v3138_v33, 1  ;;  %v3024_v50 = vadd.f32 %v2936_v52, %v8664_v51 }
 0x2d2   : > { %5763 = vrsqrt.f32 %v3895_v8  ;;  %v3025_v4 = vadd.f32 %v2886_v49, %v8665_v12  ;;  %v7860_v57 = vcombine.high %v7848_v29, %v7848_v29  ;;  %v3195_v19 = vrot.slane %v3146_v58, 1 }
 0x2d3   : > { %v3196_v26 = vrot.slane %v3145_v21, 1  ;;  %v3026_v34 = vadd.f32 %v2937_v28, %v8666_v41  ;;  %v3027_v36 = vadd.f32 %v2888_v45, %v8667_v25  ;;  %v3665_v17 = vcombine.high %v7852_v20, %v7852_v20 }
 0x2d4   : > { %v3712_v1 = vrot.slane %v7848_v29, 1  ;;  %v3280_v38 = vadd.f32 %v3138_v33, %v3021_v3  ;;  %v3714_v61 = vrot.slane %v7852_v20, 1  ;;  %v3281_v24 = vadd.f32 %v3194_v60, %v3022_v31 }
 0x2d5   : > { %v3282_v10 = vadd.f32 %v3146_v58, %v3023_v15  ;;  %v3713_v37 = vrot.slane %v7860_v57, 1  ;;  %v3283_v43 = vadd.f32 %v3195_v19, %v3024_v50  ;;  %v3284_v54 = vadd.f32 %v3145_v21, %v3025_v4 }
 0x2d6   : > { %v7862_v22 = vpop.eup %5751  ;;  %v3285_v13 = vadd.f32 %v3196_v26, %v3026_v34  ;;  %v3390_v55 = vcombine.high %v3310_v30, %v3310_v30  ;;  %v3397_v59 = vrot.slane %v3310_v30, %v6535_v62  ;;  %v3286_v53 = vadd.f32 %v3147_v48, %v3027_v36 }
 0x2d7   : > { %v7866_v23 = vpop.eup %5753  ;;  %5765 = vrsqrt.f32 %v7862_v22  ;;  %vm4115_vm4 = vcmp.eq.f32.partialorder %v7862_v22, inf  ;;  %v2889_v32 = vcombine.high %v7876_v14, %v7876_v14  ;;  %vm4117_vm5 = vcmp.eq.f32.partialorder %v7862_v22, 0.0 }
 0x2d8   : > { %v7872_v44 = vpop.eup %5755  ;;  %5767 = vrsqrt.f32 %v7866_v23  ;;  %v4118_v11 = vand.u32 2147483648, %v7862_v22  ;;  %vm4122_vm6 = vcmp.eq.f32.partialorder %v7866_v23, inf  ;;  %vm4124_vm10 = vcmp.eq.f32.partialorder %v7866_v23, 0.0 }
 0x2d9   : > { %v7878_v40 = vpop.eup %5757  ;;  %5769 = vrsqrt.f32 %v7872_v44  ;;  %v4125_v46 = vand.u32 2147483648, %v7866_v23  ;;  %vm4129_vm3 = vcmp.eq.f32.partialorder %v7872_v44, inf  ;;  %v4132_v27 = vand.u32 2147483648, %v7872_v44 }
 0x2da   : > { %v7882_v35 = vpop.eup %5759  ;;  %5771 = vrsqrt.f32 %v7878_v40  ;;  %vm4131_vm11 = vcmp.eq.f32.partialorder %v7872_v44, 0.0  ;;  %vm4136_vm12 = vcmp.eq.f32.partialorder %v7878_v40, inf  ;;  %v3404_v18 = vrot.slane %v3390_v55, %v6535_v62 }
 0x2db   : > { %v7886_v7 = vpop.eup %5761  ;;  %5773 = vrsqrt.f32 %v7882_v35  ;;  %v3405_v6 = vcombine.high %v3397_v59, %v3397_v59  ;;  %v3453_v56 = vrot.slane %v3397_v59, 1  ;;  %v3539_v42 = vadd.f32 %v3397_v59, %v3280_v38 }
 0x2dc   : > { %v7892_v47 = vpop.eup %5763  ;;  %5775 = vrsqrt.f32 %v7886_v7  ;;  %vm4138_vm13 = vcmp.eq.f32.partialorder %v7878_v40, 0.0  ;;  %v4139_v0 = vand.u32 2147483648, %v7878_v40  ;;  %vm4143_vm14 = vcmp.eq.f32.partialorder %v7882_v35, inf }
 0x2dd   : > { %5777 = vrsqrt.f32 %v7892_v47  ;;  %v4146_v8 = vand.u32 2147483648, %v7882_v35  ;;  %v4153_v33 = vand.u32 2147483648, %v7886_v7  ;;  %vm4145_vm15 = vcmp.eq.f32.partialorder %v7882_v35, 0.0 }
 0x2de   : > { %vm4150_vm0 = vcmp.eq.f32.partialorder %v7886_v7, inf  ;;  %v3406_v49 = vcombine.high %v3404_v18, %v3404_v18  ;;  %v3454_v5 = vrot.slane %v3405_v6, 1  ;;  %v3455_v39 = vrot.slane %v3404_v18, 1 }
 0x2df   : > { %v3540_v21 = vadd.f32 %v3453_v56, %v3281_v24  ;;  %vm4152_vm1 = vcmp.eq.f32.partialorder %v7886_v7, 0.0  ;;  %vm4157_vm7 = vcmp.eq.f32.partialorder %v7892_v47, inf  ;;  %v4160_v52 = vand.u32 2147483648, %v7892_v47  ;;  %v8669_v56 = vld [vmem:[#allocation33_spill] sm:$0xff] }
 0x2e0   : > { %v3541_v58 = vadd.f32 %v3405_v6, %v3282_v10  ;;  %v3543_v45 = vadd.f32 %v3404_v18, %v3284_v54  ;;  %v3798_v28 = vadd.f32 %v7848_v29, %v3539_v42  ;;  %vm4159_vm8 = vcmp.eq.f32.partialorder %v7892_v47, 0.0 }
 0x2e1   : > { %v5766_v63 = vpop.eup %5765  ;;  %v3542_v2 = vadd.f32 %v3454_v5, %v3283_v43  ;;  %v3544_v31 = vadd.f32 %v3455_v39, %v3285_v13  ;;  %v3545_v16 = vadd.f32 %v3406_v49, %v3286_v53  ;;  %v3799_v51 = vadd.f32 %v3712_v1, %v3540_v21  ;;  %v8670_v49 = vld [vmem:[#allocation34_spill] sm:$0xff]  ;;  %v8671_v5 = vld [vmem:[#allocation36_spill] sm:$0xff] }
 0x2e2   : > { %v5768_v3 = vpop.eup %5767  ;;  %v4114_v48 = vmul.f32 %v5766_v63, %v7862_v22  ;;  %v3800_v50 = vadd.f32 %v7860_v57, %v3541_v58  ;;  %v7924_v12 = vadd.f32 %v7852_v20, %v3543_v45 }
 0x2e3   : > { %v5770_v15 = vpop.eup %5769  ;;  %v4121_v60 = vmul.f32 %v5768_v3, %v7866_v23  ;;  %v3801_v41 = vadd.f32 %v3713_v37, %v3542_v2  ;;  %v3803_v34 = vadd.f32 %v3714_v61, %v3544_v31  ;;  %v3804_v1 = vadd.f32 %v3665_v17, %v3545_v16  ;;  %v8673_v3 = vld [vmem:[#allocation43_spill] sm:$0xff]  ;;  %v8674_v16 = vld [vmem:[#allocation44_spill] sm:$0xff] }
 0x2e4   : > { %v5772_v4 = vpop.eup %5771  ;;  %v4116_v19 = vsel %vm4115_vm4, %v7862_v22, %v4114_v48  ;;  %v4128_v26 = vmul.f32 %v5770_v15, %v7872_v44  ;;  %v3847_v31 = vmul.f32 2e-05, %v3798_v28  ;;  %vm8675_vm4 = vcmask 1042434  }
 0x2e5   : > { %v5774_v25 = vpop.eup %5773  ;;  %v4119_v29 = vsel %vm4117_vm5, %v4118_v11, %v4116_v19  ;;  %v4123_v57 = vsel %vm4122_vm6, %v7866_v23, %v4121_v60  ;;  %v4135_v36 = vmul.f32 %v5772_v4, %v7878_v40  ;;  %vm8676_vm5 = vcmask 1043459  }
 0x2e6   : > { %v5776_v38 = vpop.eup %5775  ;;  %v4126_v30 = vsel %vm4124_vm10, %v4125_v46, %v4123_v57  ;;  %v4130_v61 = vsel %vm4129_vm3, %v7872_v44, %v4128_v26  ;;  %v4142_v24 = vmul.f32 %v5774_v25, %v7882_v35  ;;  %v4330_v10 = vmul.f32 %v7862_v22, %v4119_v29  ;;  %v8668_v46 = vld [vmem:[#allocation32_spill] sm:$0xff] }
 0x2e7   : > { %v5778_v37 = vpop.eup %5777  ;;  %v4133_v43 = vsel %vm4131_vm11, %v4132_v27, %v4130_v61  ;;  %v4137_v20 = vsel %vm4136_vm12, %v7878_v40, %v4135_v36  ;;  %v4149_v17 = vmul.f32 %v5776_v38, %v7886_v7  ;;  %v4331_v54 = vmul.f32 %v7866_v23, %v4126_v30 }
 0x2e8   : > { %v4140_v13 = vsel %vm4138_vm13, %v4139_v0, %v4137_v20  ;;  %v4144_v55 = vsel %vm4143_vm14, %v7882_v35, %v4142_v24  ;;  %v4156_v22 = vmul.f32 %v5778_v37, %v7892_v47  ;;  %v4332_v59 = vmul.f32 %v7872_v44, %v4133_v43 }
 0x2e9   : > { %v4147_v53 = vsel %vm4145_vm15, %v4146_v8, %v4144_v55  ;;  %v4151_v11 = vsel %vm4150_vm0, %v7886_v7, %v4149_v17  ;;  %v4333_v23 = vmul.f32 %v7878_v40, %v4140_v13  ;;  %v4379_v27 = vmul.f32 %v4330_v10, %v8668_v46  ;;  %v3053_v46 = vpop.permute.xlu0 %3052 }
 0x2ea   : > { %v4154_v18 = vsel %vm4152_vm1, %v4153_v33, %v4151_v11  ;;  %v4158_v6 = vsel %vm4157_vm7, %v7892_v47, %v4156_v22  ;;  %v4334_v44 = vmul.f32 %v7882_v35, %v4147_v53  ;;  %v4380_v42 = vmul.f32 %v4331_v54, %v8669_v56  ;;  %v8672_v33 = vld [vmem:[#allocation31_spill] sm:$0xff] }
 0x2eb   : > { %v4161_v0 = vsel %vm4159_vm8, %v4160_v52, %v4158_v6  ;;  %v4335_v8 = vmul.f32 %v7886_v7, %v4154_v18  ;;  %v4381_v40 = vmul.f32 %v4332_v59, %v8670_v49  ;;  %v4382_v39 = vmul.f32 %v4333_v23, %v8671_v5 }
 0x2ec   : > { %v4336_v21 = vmul.f32 %v7892_v47, %v4161_v0  ;;  %v4383_v63 = vmul.f32 %v4334_v44, %v8672_v33  ;;  %v5157_v58 = vpack.c.bf16 %v4379_v27, %v4379_v27  ;;  %v5158_v45 = vpack.c.bf16 %v4380_v42, %v4380_v42  ;;  %v4762_v27 = vld [vmem:[%s7489_s23 + $0xc] sm:$0xf]  ;;  %v8681_v33 = vld [vmem:[#allocation68_spill] sm:$0xff] }
 0x2ed   : > { %v4384_v48 = vmul.f32 %v4335_v8, %v8673_v3  ;;  %v5159_v35 = vpack.c.bf16 %v4381_v40, %v4381_v40  ;;  %v5160_v2 = vpack.c.bf16 %v4382_v39, %v4382_v39  ;;  %v3848_v25 = vmul.f32 2e-05, %v3799_v51 }
 0x2ee   : > { %v4385_v15 = vmul.f32 %v4336_v21, %v8674_v16  ;;  %v5161_v52 = vpack.c.bf16 %v4383_v63, %v4383_v63  ;;  %v4624_v60 = vunpack.c.l.b16 %v5157_v58  ;;  %v4625_v7 = vunpack.c.l.b16 %v5158_v45  ;;  %v3312_v21 = vpop.permute.xlu1 %3311  ;;  %v8682_v45 = vld [vmem:[#allocation49_spill] sm:$0xff] }
 0x2ef   : > { %v5162_v4 = vpack.c.bf16 %v4384_v48, %v4384_v48  ;;  %v4626_v19 = vunpack.c.l.b16 %v5159_v35  ;;  %v4627_v26 = vunpack.c.l.b16 %v5160_v2  ;;  %v3849_v36 = vmul.f32 2e-05, %v3800_v50  ;;  %v8683_v48 = vld [vmem:[#allocation64_spill] sm:$0xff] }
 0x2f0   : > { %v5163_v29 = vpack.c.bf16 %v4385_v15, %v4385_v15  ;;  %v4628_v47 = vunpack.c.l.b16 %v5161_v52  ;;  %v4688_v57 = vrot.slane %v4625_v7, 7  ;;  %v3850_v24 = vmul.f32 2e-05, %v3801_v41  ;;  %v8685_v15 = vld [vmem:[#allocation70_spill] sm:$0xff] }
 0x2f1   : > { %v4629_v38 = vunpack.c.l.b16 %v5162_v4  ;;  %v4690_v30 = vrot.slane %v4626_v19, 6  ;;  %v4692_v61 = vrot.slane %v4627_v26, 5  ;;  %v3851_v37 = vmul.f32 2e-05, %v7924_v12  ;;  %v8686_v4 = vld [vmem:[#allocation67_spill] sm:$0xff] }
 0x2f2   : > { %v4630_v10 = vunpack.c.l.b16 %v5163_v29  ;;  %v4689_v28 = vsel %vm2728_vm2, %v4688_v57, %v4624_v60  ;;  %v2896_v43 = vrot.slane %v7876_v14, %v6535_v62  ;;  %v4694_v51 = vrot.slane %v4628_v47, 4 }
 0x2f3   : > { %v4691_v20 = vsel %vm8675_vm4, %v4690_v30, %v4689_v28  ;;  %v4696_v17 = vrot.slane %v4629_v38, 3  ;;  %v3852_v54 = vmul.f32 2e-05, %v3803_v34  ;;  %v3853_v13 = vmul.f32 2e-05, %v3804_v1  ;;  %v2796_v30 = vpop.permute.xlu0 %2795 }
 0x2f4   : > { %v4693_v50 = vsel %vm8676_vm5, %v4692_v61, %v4691_v20  ;;  %v3896_v55 = vadd.f32 1.0, %v3847_v31  ;;  %v3897_v22 = vadd.f32 1.0, %v3848_v25  ;;  %vm8677_vm6 = vcmask 1044484   ;;  %v8684_v31 = vld [vmem:[#allocation69_spill] sm:$0xff] }
 0x2f5   : > { %v4695_v41 = vsel %vm8677_vm6, %v4694_v51, %v4693_v50  ;;  %v4698_v59 = vrot.slane %v4630_v10, 2  ;;  %v3898_v53 = vadd.f32 1.0, %v3849_v36  ;;  %v3899_v11 = vadd.f32 1.0, %v3850_v24 }
 0x2f6   : > { %vm8678_vm10 = vcmask 1045509   ;;  %v3900_v23 = vadd.f32 1.0, %v3851_v37  ;;  %5779 = vrsqrt.f32 %v3896_v55  ;;  %vm8679_vm3 = vcmask 1046534  }
 0x2f7   : > { %v4697_v12 = vsel %vm8678_vm10, %v4696_v17, %v4695_v41  ;;  %v3901_v34 = vadd.f32 1.0, %v3852_v54  ;;  %5781 = vrsqrt.f32 %v3897_v22  ;;  %v2903_v1 = vrot.slane %v2889_v32, %v6535_v62  ;;  %v8680_v32 = vld [vmem:[#allocation48_spill] sm:$0xff] }
 0x2f8   : > { %v4699_v18 = vsel %vm8679_vm3, %v4698_v59, %v4697_v12  ;;  %v3902_v44 = vadd.f32 1.0, %v3853_v13  ;;  %5783 = vrsqrt.f32 %v3898_v53  ;;  %v2904_v56 = vcombine.high %v2896_v43, %v2896_v43  ;;  %v8065_v12 = vpop.permute.xlu1 %3054 }
 0x2f9   : > { %v4739_v6 = vpack.c.b16 %v4699_v18, %v4699_v18  ;;  %5785 = vrsqrt.f32 %v3899_v11  ;;  %v3148_v42 = vcombine.high %v3053_v46, %v3053_v46  ;;  %v2938_v8 = vrot.slane %v2896_v43, 1 }
 0x2fa   : > { %5787 = vrsqrt.f32 %v3900_v23  ;;  %v3155_v49 = vrot.slane %v3053_v46, %v6535_v62  ;;  %v2905_v40 = vcombine.high %v2903_v1, %v2903_v1  ;;  %v2940_v5 = vrot.slane %v2903_v1, 1 }
 0x2fb   : > { %v4763_v0 = vsel %vm7514_vm9, %v4739_v6, %v4762_v27  ;;  %5789 = vrsqrt.f32 %v3901_v34  ;;  %v2939_v14 = vrot.slane %v2904_v56, 1  ;;  %v3028_v39 = vadd.f32 %v2896_v43, %v8680_v32  ;;  %v8687_v32 = vld [vmem:[#allocation3_spill] sm:$0xff] }
 0x2fc   : > { %4764 = vst [vmem:[%s7489_s23 + $0xc] sm:$0xf] %v4763_v0  ;;  %5791 = vrsqrt.f32 %v3902_v44  ;;  %v3032_v63 = vadd.f32 %v2903_v1, %v8681_v33  ;;  %v3162_v58 = vrot.slane %v3148_v42, %v6535_v62  ;;  %v3029_v3 = vadd.f32 %v2938_v8, %v8682_v45 }
 0x2fd   : > { %v3030_v35 = vadd.f32 %v2904_v56, %v8683_v48  ;;  %v3163_v2 = vcombine.high %v3155_v49, %v3155_v49  ;;  %v3033_v16 = vadd.f32 %v2940_v5, %v8684_v31  ;;  %v3034_v52 = vadd.f32 %v2905_v40, %v8685_v15  ;;  %v8689_v48 = vld [vmem:[#allocation53_spill] sm:$0xff] }
 0x2fe   : > { %v3407_v60 = vcombine.high %v3312_v21, %v3312_v21  ;;  %v3031_v19 = vadd.f32 %v2939_v14, %v8686_v4  ;;  %v3197_v26 = vrot.slane %v3155_v49, 1  ;;  %v3287_v25 = vadd.f32 %v3155_v49, %v3028_v39 }
 0x2ff   : > { %v8014_v29 = vrot.slane %v3312_v21, %v6535_v62  ;;  %v3164_v57 = vcombine.high %v3162_v58, %v3162_v58  ;;  %v3199_v36 = vrot.slane %v3162_v58, 1  ;;  %v8019_v38 = vadd.f32 %v3162_v58, %v3032_v63  ;;  %v8688_v21 = vld [vmem:[#allocation75_spill] sm:$0xff] }
 0x300   : > { %v8010_v7 = vpop.eup %5779  ;;  %v3198_v24 = vrot.slane %v3163_v2, 1  ;;  %v8024_v10 = vadd.f32 %v3197_v26, %v3029_v3  ;;  %v8026_v28 = vadd.f32 %v3163_v2, %v3030_v35  ;;  %v8036_v51 = vrot.slane %v3407_v60, %v6535_v62  ;;  %v8690_v2 = vld [vmem:[#allocation72_spill] sm:$0xff]  ;;  %v8691_v60 = vld [vmem:[#allocation77_spill] sm:$0xff] }
 0x301   : > { %v8016_v47 = vpop.eup %5781  ;;  %5793 = vrsqrt.f32 %v8010_v7  ;;  %v8031_v43 = vadd.f32 %v3199_v36, %v3033_v16  ;;  %v8033_v20 = vadd.f32 %v3164_v57, %v3034_v52  ;;  %v8045_v50 = vcombine.high %v8014_v29, %v8014_v29 }
 0x302   : > { %v8021_v61 = vpop.eup %5783  ;;  %5795 = vrsqrt.f32 %v8016_v47  ;;  %v8041_v54 = vadd.f32 %v3198_v24, %v3031_v19  ;;  %v2906_v13 = vcombine.high %v2796_v30, %v2796_v30  ;;  %vm4164_vm11 = vcmp.eq.f32.partialorder %v8010_v7, inf  ;;  %v8692_v19 = vld [vmem:[#allocation78_spill] sm:$0xff]  ;;  %v8693_v24 = vld [vmem:[#allocation73_spill] sm:$0xff] }
 0x303   : > { %v8028_v37 = vpop.eup %5785  ;;  %5797 = vrsqrt.f32 %v8021_v61  ;;  %v3456_v22 = vrot.slane %v8014_v29, 1  ;;  %v8053_v41 = vadd.f32 %v8014_v29, %v3287_v25  ;;  %vm4166_vm12 = vcmp.eq.f32.partialorder %v8010_v7, 0.0 }
 0x304   : > { %v8038_v17 = vpop.eup %5787  ;;  %5799 = vrsqrt.f32 %v8028_v37  ;;  %v4167_v53 = vand.u32 2147483648, %v8010_v7  ;;  %vm4171_vm13 = vcmp.eq.f32.partialorder %v8016_v47, inf  ;;  %vm4173_vm14 = vcmp.eq.f32.partialorder %v8016_v47, 0.0 }
 0x305   : > { %v8047_v55 = vpop.eup %5789  ;;  %5801 = vrsqrt.f32 %v8038_v17  ;;  %v4174_v11 = vand.u32 2147483648, %v8016_v47  ;;  %vm4178_vm15 = vcmp.eq.f32.partialorder %v8021_v61, inf  ;;  %vm4180_vm0 = vcmp.eq.f32.partialorder %v8021_v61, 0.0 }
 0x306   : > { %v8055_v59 = vpop.eup %5791  ;;  %5803 = vrsqrt.f32 %v8047_v55  ;;  %v4181_v23 = vand.u32 2147483648, %v8021_v61  ;;  %vm4185_vm1 = vcmp.eq.f32.partialorder %v8028_v37, inf  ;;  %v4188_v46 = vand.u32 2147483648, %v8028_v37 }
 0x307   : > { %5805 = vrsqrt.f32 %v8055_v59  ;;  %vm4187_vm7 = vcmp.eq.f32.partialorder %v8028_v37, 0.0  ;;  %vm4192_vm8 = vcmp.eq.f32.partialorder %v8038_v17, inf  ;;  %v4195_v27 = vand.u32 2147483648, %v8038_v17 }
 0x308   : > { %v2913_v18 = vrot.slane %v2796_v30, %v6535_v62  ;;  %v2920_v34 = vrot.slane %v2906_v13, %v6535_v62  ;;  %vm4194_vm4 = vcmp.eq.f32.partialorder %v8038_v17, 0.0  ;;  %vm4199_vm5 = vcmp.eq.f32.partialorder %v8047_v55, inf }
 0x309   : > { %v4202_v1 = vand.u32 2147483648, %v8047_v55  ;;  %v4209_v6 = vand.u32 2147483648, %v8055_v59  ;;  %v3457_v44 = vrot.slane %v8045_v50, 1  ;;  %v3165_v56 = vcombine.high %v8065_v12, %v8065_v12 }
 0x30a   : > { %vm4201_vm6 = vcmp.eq.f32.partialorder %v8047_v55, 0.0  ;;  %vm4206_vm10 = vcmp.eq.f32.partialorder %v8055_v59, inf  ;;  %v2921_v0 = vcombine.high %v2913_v18, %v2913_v18  ;;  %v2922_v8 = vcombine.high %v2920_v34, %v2920_v34 }
 0x30b   : > { %v5794_v42 = vpop.eup %5793  ;;  %v2941_v49 = vrot.slane %v2913_v18, 1  ;;  %v2943_v40 = vrot.slane %v2920_v34, 1  ;;  %vm4208_vm3 = vcmp.eq.f32.partialorder %v8055_v59, 0.0  ;;  %v8088_v39 = vadd.f32 %v2913_v18, %v8687_v32 }
 0x30c   : > { %v5796_v5 = vpop.eup %5795  ;;  %v4163_v14 = vmul.f32 %v5794_v42, %v8010_v7  ;;  %v8091_v33 = vadd.f32 %v2920_v34, %v8688_v21  ;;  %v8095_v63 = vrot.slane %v8065_v12, %v6535_v62  ;;  %v2942_v3 = vrot.slane %v2921_v0, 1 }
 0x30d   : > { %v5798_v58 = vpop.eup %5797  ;;  %v4170_v45 = vmul.f32 %v5796_v5, %v8016_v47  ;;  %v8099_v35 = vadd.f32 %v2941_v49, %v8689_v48  ;;  %v8102_v31 = vadd.f32 %v2921_v0, %v8690_v2  ;;  %v8109_v4 = vadd.f32 %v2943_v40, %v8691_v60  ;;  %v8695_v48 = vld [vmem:[#allocation37_spill] sm:$0xff] }
 0x30e   : > { %v5800_v16 = vpop.eup %5799  ;;  %v4165_v15 = vsel %vm4164_vm11, %v8010_v7, %v4163_v14  ;;  %v4177_v52 = vmul.f32 %v5798_v58, %v8021_v61  ;;  %v8112_v26 = vadd.f32 %v2922_v8, %v8692_v19  ;;  %v8121_v13 = vadd.f32 %v2942_v3, %v8693_v24  ;;  %v8694_v58 = vld [vmem:[#allocation35_spill] sm:$0xff] }
 0x30f   : > { %v5802_v25 = vpop.eup %5801  ;;  %v4168_v57 = vsel %vm4166_vm12, %v4167_v53, %v4165_v15  ;;  %v4172_v36 = vsel %vm4171_vm13, %v8016_v47, %v4170_v45  ;;  %v4184_v30 = vmul.f32 %v5800_v16, %v8028_v37  ;;  %v8696_v15 = vld [vmem:[#allocation38_spill] sm:$0xff]  ;;  %vm8701_vm11 = vcmask 1042434  }
 0x310   : > { %v5804_v12 = vpop.eup %5803  ;;  %v4175_v18 = vsel %vm4173_vm14, %v4174_v11, %v4172_v36  ;;  %v4179_v34 = vsel %vm4178_vm15, %v8021_v61, %v4177_v52  ;;  %v4191_v42 = vmul.f32 %v5802_v25, %v8038_v17  ;;  %v4337_v53 = vmul.f32 %v8010_v7, %v4168_v57  ;;  %v8697_v52 = vld [vmem:[#allocation42_spill] sm:$0xff] }
 0x311   : > { %v5806_v0 = vpop.eup %5805  ;;  %v4182_v8 = vsel %vm4180_vm0, %v4181_v23, %v4179_v34  ;;  %v4186_v49 = vsel %vm4185_vm1, %v8028_v37, %v4184_v30  ;;  %v4198_v40 = vmul.f32 %v5804_v12, %v8047_v55  ;;  %v4338_v11 = vmul.f32 %v8016_v47, %v4175_v18  ;;  %v8699_v30 = vld [vmem:[#allocation58_spill] sm:$0xff]  ;;  %v8700_v34 = vld [vmem:[#allocation59_spill] sm:$0xff] }
 0x312   : > { %v4189_v5 = vsel %vm4187_vm7, %v4188_v46, %v4186_v49  ;;  %v4193_v14 = vsel %vm4192_vm8, %v8038_v17, %v4191_v42  ;;  %v4205_v7 = vmul.f32 %v5806_v0, %v8055_v59  ;;  %v4339_v32 = vmul.f32 %v8021_v61, %v4182_v8  ;;  %v3314_v0 = vpop.permute.xlu0 %3313 }
 0x313   : > { %v4196_v23 = vsel %vm4194_vm4, %v4195_v27, %v4193_v14  ;;  %v4200_v21 = vsel %vm4199_vm5, %v8047_v55, %v4198_v40  ;;  %v4340_v47 = vmul.f32 %v8028_v37, %v4189_v5  ;;  %v4386_v45 = vmul.f32 %v4337_v53, %v8694_v58 }
 0x314   : > { %v4203_v46 = vsel %vm4201_vm6, %v4202_v1, %v4200_v21  ;;  %v4207_v3 = vsel %vm4206_vm10, %v8055_v59, %v4205_v7  ;;  %v4341_v61 = vmul.f32 %v8038_v17, %v4196_v23  ;;  %v4387_v2 = vmul.f32 %v4338_v11, %v8695_v48  ;;  %v8698_v1 = vld [vmem:[#allocation54_spill] sm:$0xff] }
 0x315   : > { %v4210_v27 = vsel %vm4208_vm3, %v4209_v6, %v4207_v3  ;;  %v4342_v16 = vmul.f32 %v8047_v55, %v4203_v46  ;;  %v4388_v37 = vmul.f32 %v4339_v32, %v8696_v15  ;;  %v4389_v60 = vmul.f32 %v4340_v47, %v8697_v52  ;;  %v3573_v52 = vpop.permute.xlu1 %3572 }
 0x316   : > { %v4343_v19 = vmul.f32 %v8055_v59, %v4210_v27  ;;  %v4390_v25 = vmul.f32 %v4341_v61, %v8698_v1  ;;  %v5164_v57 = vpack.c.bf16 %v4386_v45, %v4386_v45  ;;  %v5165_v36 = vpack.c.bf16 %v4387_v2, %v4387_v2 }
 0x317   : > { %v4391_v24 = vmul.f32 %v4342_v16, %v8699_v30  ;;  %v5166_v17 = vpack.c.bf16 %v4388_v37, %v4388_v37  ;;  %v5167_v12 = vpack.c.bf16 %v4389_v60, %v4389_v60  ;;  %v3179_v18 = vrot.slane %v3165_v56, %v6535_v62  ;;  %v3571_v60 = vpop.permute.xlu0 %3570 }
 0x318   : > { %v4392_v6 = vmul.f32 %v4343_v19, %v8700_v34  ;;  %v5168_v42 = vpack.c.bf16 %v4390_v25, %v4390_v25  ;;  %v4631_v55 = vunpack.c.l.b16 %v5164_v57  ;;  %v4632_v53 = vunpack.c.l.b16 %v5165_v36 }
 0x319   : > { %v5169_v8 = vpack.c.bf16 %v4391_v24, %v4391_v24  ;;  %v4633_v49 = vunpack.c.l.b16 %v5166_v17  ;;  %v4634_v40 = vunpack.c.l.b16 %v5167_v12  ;;  %v3180_v59 = vcombine.high %v8095_v63, %v8095_v63 }
 0x31a   : > { %v5170_v11 = vpack.c.bf16 %v4392_v6, %v4392_v6  ;;  %v4635_v5 = vunpack.c.l.b16 %v5168_v42  ;;  %v4700_v14 = vrot.slane %v4632_v53, 7  ;;  %v3181_v7 = vcombine.high %v3179_v18, %v3179_v18 }
 0x31b   : > { %v4636_v32 = vunpack.c.l.b16 %v5169_v8  ;;  %v4702_v23 = vrot.slane %v4633_v49, 6  ;;  %v4704_v21 = vrot.slane %v4634_v40, 5  ;;  %v3200_v56 = vrot.slane %v8095_v63, 1 }
 0x31c   : > { %v4637_v47 = vunpack.c.l.b16 %v5170_v11  ;;  %v4701_v58 = vsel %vm2728_vm2, %v4700_v14, %v4631_v55  ;;  %v4706_v45 = vrot.slane %v4635_v5, 4  ;;  %v3201_v46 = vrot.slane %v3180_v59, 1 }
 0x31d   : > { %v4703_v3 = vsel %vm8701_vm11, %v4702_v23, %v4701_v58  ;;  %v4708_v61 = vrot.slane %v4636_v32, 3  ;;  %v3202_v48 = vrot.slane %v3179_v18, 1  ;;  %v3294_v2 = vadd.f32 %v8095_v63, %v8088_v39 }
 0x31e   : > { %vm8702_vm12 = vcmask 1043459   ;;  %v4710_v16 = vrot.slane %v4637_v47, 2  ;;  %v3295_v15 = vadd.f32 %v3200_v56, %v8099_v35  ;;  %v3296_v37 = vadd.f32 %v3180_v59, %v8102_v31  ;;  %v4765_v35 = vld [vmem:[%s7489_s23 + $0x10] sm:$0xf] }
 0x31f   : > { %v4705_v27 = vsel %vm8702_vm12, %v4704_v21, %v4703_v3  ;;  %vm8703_vm13 = vcmask 1044484   ;;  %v3297_v1 = vadd.f32 %v3201_v46, %v8121_v13  ;;  %v3298_v25 = vadd.f32 %v3179_v18, %v8091_v33 }
 0x320   : > { %v4707_v19 = vsel %vm8703_vm13, %v4706_v45, %v4705_v27  ;;  %v3299_v57 = vadd.f32 %v3202_v48, %v8109_v4  ;;  %vm8704_vm14 = vcmask 1045509   ;;  %v3300_v39 = vadd.f32 %v3181_v7, %v8112_v26 }
 0x321   : > { %v4709_v36 = vsel %vm8704_vm14, %v4708_v61, %v4707_v19  ;;  %v3424_v63 = vcombine.high %v3314_v0, %v3314_v0  ;;  %v3431_v30 = vrot.slane %v3314_v0, %v6535_v62  ;;  %vm8705_vm15 = vcmask 1046534  }
 0x322   : > { %v4711_v31 = vsel %vm8705_vm15, %v4710_v16, %v4709_v36  ;;  %v3683_v24 = vcombine.high %v3573_v52, %v3573_v52  ;;  %v3690_v17 = vrot.slane %v3573_v52, %v6535_v62  ;;  %v3666_v12 = vcombine.high %v3571_v60, %v3571_v60 }
 0x323   : > { %v4740_v13 = vpack.c.b16 %v4711_v31, %v4711_v31  ;;  %v3438_v33 = vrot.slane %v3424_v63, %v6535_v62  ;;  %v3439_v18 = vcombine.high %v3431_v30, %v3431_v30  ;;  %v3459_v4 = vrot.slane %v3431_v30, 1 }
 0x324   : > { %v3553_v34 = vadd.f32 %v3431_v30, %v3294_v2  ;;  %v3697_v6 = vrot.slane %v3683_v24, %v6535_v62  ;;  %v3698_v26 = vcombine.high %v3690_v17, %v3690_v17  ;;  %v3718_v42 = vrot.slane %v3690_v17, 1 }
 0x325   : > { %v4766_v55 = vsel %vm7514_vm9, %v4740_v13, %v4765_v35  ;;  %v3440_v53 = vcombine.high %v3438_v33, %v3438_v33  ;;  %v3460_v0 = vrot.slane %v3439_v18, 1  ;;  %v3461_v8 = vrot.slane %v3438_v33, 1 }
 0x326   : > { %4767 = vst [vmem:[%s7489_s23 + $0x10] sm:$0xf] %v4766_v55  ;;  %v3554_v49 = vadd.f32 %v3459_v4, %v3295_v15  ;;  %v3555_v40 = vadd.f32 %v3439_v18, %v3296_v37  ;;  %v3557_v59 = vadd.f32 %v3438_v33, %v3298_v25  ;;  %v3699_v11 = vcombine.high %v3697_v6, %v3697_v6 }
 0x327   : > { %v3556_v5 = vadd.f32 %v3460_v0, %v3297_v1  ;;  %v3558_v14 = vadd.f32 %v3461_v8, %v3299_v57  ;;  %v3559_v7 = vadd.f32 %v3440_v53, %v3300_v39  ;;  %v3719_v32 = vrot.slane %v3698_v26, 1 }
 0x328   : > { %v3720_v23 = vrot.slane %v3697_v6, 1  ;;  %v3812_v21 = vadd.f32 %v3690_v17, %v3553_v34  ;;  %v3813_v56 = vadd.f32 %v3718_v42, %v3554_v49  ;;  %v3814_v47 = vadd.f32 %v3698_v26, %v3555_v40 }
 0x329   : > { %v3815_v58 = vadd.f32 %v3719_v32, %v3556_v5  ;;  %v3816_v45 = vadd.f32 %v3697_v6, %v3557_v59  ;;  %v3818_v46 = vadd.f32 %v3699_v11, %v3559_v7  ;;  %v3673_v3 = vrot.slane %v3571_v60, %v6535_v62 }
 0x32a   : > { %v3817_v61 = vadd.f32 %v3720_v23, %v3558_v14  ;;  %v3861_v48 = vmul.f32 2e-05, %v3812_v21  ;;  %v3862_v2 = vmul.f32 2e-05, %v3813_v56  ;;  %v3863_v27 = vmul.f32 2e-05, %v3814_v47 }
 0x32b   : > { %v3423_v16 = vcombine.high %v8036_v51, %v8036_v51  ;;  %v3864_v15 = vmul.f32 2e-05, %v3815_v58  ;;  %v3865_v37 = vmul.f32 2e-05, %v3816_v45  ;;  %v3867_v52 = vmul.f32 2e-05, %v3818_v46 }
 0x32c   : > { %v3866_v19 = vmul.f32 2e-05, %v3817_v61  ;;  %v3910_v1 = vadd.f32 1.0, %v3861_v48  ;;  %v3911_v25 = vadd.f32 1.0, %v3862_v2  ;;  %v3912_v57 = vadd.f32 1.0, %v3863_v27 }
 0x32d   : > { %v3547_v36 = vadd.f32 %v3456_v22, %v8024_v10  ;;  %v3913_v39 = vadd.f32 1.0, %v3864_v15  ;;  %v3680_v60 = vrot.slane %v3666_v12, %v6535_v62  ;;  %v3681_v63 = vcombine.high %v3673_v3, %v3673_v3 }
 0x32e   : > { %v3548_v30 = vadd.f32 %v8045_v50, %v8026_v28  ;;  %v3914_v35 = vadd.f32 1.0, %v3865_v37  ;;  %5807 = vrsqrt.f32 %v3910_v1  ;;  %v3715_v31 = vrot.slane %v3673_v3, 1 }
 0x32f   : > { %v3458_v24 = vrot.slane %v8036_v51, 1  ;;  %v3915_v17 = vadd.f32 1.0, %v3866_v19  ;;  %5809 = vrsqrt.f32 %v3911_v25  ;;  %v3805_v13 = vadd.f32 %v3673_v3, %v8053_v41 }
 0x330   : > { %v3916_v33 = vadd.f32 1.0, %v3867_v52  ;;  %5811 = vrsqrt.f32 %v3912_v57  ;;  %v3806_v29 = vadd.f32 %v3715_v31, %v3547_v36  ;;  %v3807_v10 = vadd.f32 %v3681_v63, %v3548_v30 }
 0x331   : > { %5813 = vrsqrt.f32 %v3913_v39  ;;  %v3682_v22 = vcombine.high %v3680_v60, %v3680_v60  ;;  %v3716_v62 = vrot.slane %v3681_v63, 1  ;;  %v3717_v12 = vrot.slane %v3680_v60, 1 }
 0x332   : > { %5815 = vrsqrt.f32 %v3914_v35  ;;  %v3854_v18 = vmul.f32 2e-05, %v3805_v13  ;;  %v3855_v28 = vmul.f32 2e-05, %v3806_v29  ;;  %v3856_v4 = vmul.f32 2e-05, %v3807_v10 }
 0x333   : > { %v3549_v34 = vadd.f32 %v3457_v44, %v8041_v54  ;;  %v3550_v6 = vadd.f32 %v8036_v51, %v8019_v38  ;;  %v3551_v41 = vadd.f32 %v3458_v24, %v8031_v43  ;;  %5817 = vrsqrt.f32 %v3915_v17 }
 0x334   : > { %v3552_v26 = vadd.f32 %v3423_v16, %v8033_v20  ;;  %5819 = vrsqrt.f32 %v3916_v33  ;;  %v3903_v42 = vadd.f32 1.0, %v3854_v18  ;;  %v3904_v55 = vadd.f32 1.0, %v3855_v28 }
 0x335   : > { %v3808_v53 = vadd.f32 %v3716_v62, %v3549_v34  ;;  %v3809_v0 = vadd.f32 %v3680_v60, %v3550_v6  ;;  %v3905_v8 = vadd.f32 1.0, %v3856_v4  ;;  %v3810_v49 = vadd.f32 %v3717_v12, %v3551_v41 }
 0x336   : > { %v3811_v40 = vadd.f32 %v3682_v22, %v3552_v26  ;;  %5821 = vrsqrt.f32 %v3903_v42  ;;  %v8706_v42 = vld [vmem:[#allocation51_spill] sm:$0xff] }
 0x337   : > { %5823 = vrsqrt.f32 %v3904_v55  ;;  %v3857_v38 = vmul.f32 2e-05, %v3808_v53  ;;  %v3858_v43 = vmul.f32 2e-05, %v3809_v0  ;;  %v3859_v51 = vmul.f32 2e-05, %v3810_v49 }
 0x338   : > { %v8211_v50 = vpop.eup %5807  ;;  %5825 = vrsqrt.f32 %v3905_v8  ;;  %v3860_v44 = vmul.f32 2e-05, %v3811_v40  ;;  %v8707_v40 = vld [vmem:[#allocation2_spill] sm:$0xff] }
 0x339   : > { %v8213_v54 = vpop.eup %5809  ;;  %5827 = vrsqrt.f32 %v8211_v50  ;;  %v3906_v14 = vadd.f32 1.0, %v3857_v38  ;;  %v3907_v7 = vadd.f32 1.0, %v3858_v43  ;;  %vm4262_vm0 = vcmp.eq.f32.partialorder %v8211_v50, inf }
 0x33a   : > { %v8216_v20 = vpop.eup %5811  ;;  %5829 = vrsqrt.f32 %v8213_v54  ;;  %v3908_v23 = vadd.f32 1.0, %v3859_v51  ;;  %v3909_v21 = vadd.f32 1.0, %v3860_v44  ;;  %vm4264_vm1 = vcmp.eq.f32.partialorder %v8211_v50, 0.0  ;;  %v8709_v44 = vld [vmem:[#allocation65_spill] sm:$0xff] }
 0x33b   : > { %v8219_v59 = vpop.eup %5813  ;;  %5831 = vrsqrt.f32 %v8216_v20  ;;  %v4265_v56 = vand.u32 2147483648, %v8211_v50  ;;  %vm4269_vm7 = vcmp.eq.f32.partialorder %v8213_v54, inf  ;;  %vm4271_vm8 = vcmp.eq.f32.partialorder %v8213_v54, 0.0 }
 0x33c   : > { %v8222_v11 = vpop.eup %5815  ;;  %5833 = vrsqrt.f32 %v8219_v59  ;;  %v4272_v58 = vand.u32 2147483648, %v8213_v54  ;;  %vm4276_vm4 = vcmp.eq.f32.partialorder %v8216_v20, inf  ;;  %vm4278_vm5 = vcmp.eq.f32.partialorder %v8216_v20, 0.0 }
 0x33d   : > { %v8225_v5 = vpop.eup %5817  ;;  %5835 = vrsqrt.f32 %v8222_v11  ;;  %v4279_v46 = vand.u32 2147483648, %v8216_v20  ;;  %vm4283_vm6 = vcmp.eq.f32.partialorder %v8219_v59, inf  ;;  %vm4285_vm10 = vcmp.eq.f32.partialorder %v8219_v59, 0.0 }
 0x33e   : > { %v8228_v32 = vpop.eup %5819  ;;  %5837 = vrsqrt.f32 %v8225_v5  ;;  %v4286_v61 = vand.u32 2147483648, %v8219_v59  ;;  %vm4290_vm3 = vcmp.eq.f32.partialorder %v8222_v11, inf  ;;  %vm4292_vm11 = vcmp.eq.f32.partialorder %v8222_v11, 0.0 }
 0x33f   : > { %5839 = vrsqrt.f32 %v8228_v32  ;;  %v4293_v2 = vand.u32 2147483648, %v8222_v11  ;;  %vm4297_vm12 = vcmp.eq.f32.partialorder %v8225_v5, inf  ;;  %vm4299_vm13 = vcmp.eq.f32.partialorder %v8225_v5, 0.0 }
 0x340   : > { %v8236_v47 = vpop.eup %5821  ;;  %5841 = vrsqrt.f32 %v3906_v14  ;;  %v4300_v15 = vand.u32 2147483648, %v8225_v5  ;;  %vm4304_vm14 = vcmp.eq.f32.partialorder %v8228_v32, inf  ;;  %vm4306_vm15 = vcmp.eq.f32.partialorder %v8228_v32, 0.0 }
 0x341   : > { %v8242_v45 = vpop.eup %5823  ;;  %5843 = vrsqrt.f32 %v3907_v7  ;;  %v4307_v19 = vand.u32 2147483648, %v8228_v32  ;;  %v4216_v36 = vand.u32 2147483648, %v8236_v47 }
 0x342   : > { %v8247_v3 = vpop.eup %5825  ;;  %5845 = vrsqrt.f32 %v3908_v23  ;;  %v8710_v23 = vld [vmem:[#allocation71_spill] sm:$0xff] }
 0x343   : > { %v5828_v48 = vpop.eup %5827  ;;  %5847 = vrsqrt.f32 %v8236_v47 }
 0x344   : > { %v5830_v27 = vpop.eup %5829  ;;  %v4261_v16 = vmul.f32 %v5828_v48, %v8211_v50  ;;  %5849 = vrsqrt.f32 %v3909_v21 }
 0x345   : > { %v5832_v37 = vpop.eup %5831  ;;  %v4268_v52 = vmul.f32 %v5830_v27, %v8213_v54  ;;  %5851 = vrsqrt.f32 %v8242_v45  ;;  %v8712_v27 = vld [vmem:[#allocation76_spill] sm:$0xff] }
 0x346   : > { %v5834_v1 = vpop.eup %5833  ;;  %v4263_v25 = vsel %vm4262_vm0, %v8211_v50, %v4261_v16  ;;  %v4275_v57 = vmul.f32 %v5832_v37, %v8216_v20  ;;  %5853 = vrsqrt.f32 %v8247_v3  ;;  %vm4213_vm0 = vcmp.eq.f32.partialorder %v8236_v47, inf }
 0x347   : > { %v5836_v39 = vpop.eup %5835  ;;  %v4266_v60 = vsel %vm4264_vm1, %v4265_v56, %v4263_v25  ;;  %v4270_v63 = vsel %vm4269_vm7, %v8213_v54, %v4268_v52  ;;  %v4282_v30 = vmul.f32 %v5834_v1, %v8219_v59  ;;  %vm4215_vm1 = vcmp.eq.f32.partialorder %v8236_v47, 0.0 }
 0x348   : > { %v5838_v35 = vpop.eup %5837  ;;  %v4273_v31 = vsel %vm4271_vm8, %v4272_v58, %v4270_v63  ;;  %v4277_v24 = vsel %vm4276_vm4, %v8216_v20, %v4275_v57  ;;  %v4289_v17 = vmul.f32 %v5836_v39, %v8222_v11  ;;  %v4351_v13 = vmul.f32 %v8211_v50, %v4266_v60 }
 0x349   : > { %v5840_v33 = vpop.eup %5839  ;;  %v4280_v29 = vsel %vm4278_vm5, %v4279_v46, %v4277_v24  ;;  %v4284_v10 = vsel %vm4283_vm6, %v8219_v59, %v4282_v30  ;;  %v4296_v22 = vmul.f32 %v5838_v35, %v8225_v5  ;;  %v4352_v62 = vmul.f32 %v8213_v54, %v4273_v31  ;;  %v8711_v46 = vld [vmem:[#allocation74_spill] sm:$0xff] }
 0x34a   : > { %v4287_v12 = vsel %vm4285_vm10, %v4286_v61, %v4284_v10  ;;  %v4291_v18 = vsel %vm4290_vm3, %v8222_v11, %v4289_v17  ;;  %v4303_v28 = vmul.f32 %v5840_v33, %v8228_v32  ;;  %v4353_v4 = vmul.f32 %v8216_v20, %v4280_v29  ;;  %v8296_v34 = vpop.eup %5841  ;;  %v8708_v20 = vld [vmem:[#allocation52_spill] sm:$0xff] }
 0x34b   : > { %v4294_v6 = vsel %vm4292_vm11, %v4293_v2, %v4291_v18  ;;  %v4298_v41 = vsel %vm4297_vm12, %v8225_v5, %v4296_v22  ;;  %v4354_v26 = vmul.f32 %v8219_v59, %v4287_v12  ;;  %v4400_v55 = vmul.f32 %v4351_v13, %v8706_v42  ;;  %v8305_v53 = vpop.eup %5843 }
 0x34c   : > { %v4301_v0 = vsel %vm4299_vm13, %v4300_v15, %v4298_v41  ;;  %v4305_v8 = vsel %vm4304_vm14, %v8228_v32, %v4303_v28  ;;  %v4355_v49 = vmul.f32 %v8222_v11, %v4294_v6  ;;  %v4401_v50 = vmul.f32 %v4352_v62, %v8707_v40  ;;  %v8315_v54 = vpop.eup %5845 }
 0x34d   : > { %v4308_v38 = vsel %vm4306_vm15, %v4307_v19, %v4305_v8  ;;  %v4356_v43 = vmul.f32 %v8225_v5, %v4301_v0  ;;  %v4402_v51 = vmul.f32 %v4353_v4, %v8708_v20  ;;  %v4403_v59 = vmul.f32 %v4354_v26, %v8709_v44  ;;  %v5848_v14 = vpop.eup %5847  ;;  %v4771_v0 = vld [vmem:[%s7489_s23 + $0x18] sm:$0xf] }
 0x34e   : > { %v4357_v7 = vmul.f32 %v8228_v32, %v4308_v38  ;;  %v4404_v11 = vmul.f32 %v4355_v49, %v8710_v23  ;;  %v5178_v21 = vpack.c.bf16 %v4400_v55, %v4400_v55  ;;  %v5179_v56 = vpack.c.bf16 %v4401_v50, %v4401_v50  ;;  %v8324_v58 = vpop.eup %5849 }
 0x34f   : > { %v4405_v61 = vmul.f32 %v4356_v43, %v8711_v46  ;;  %v5180_v48 = vpack.c.bf16 %v4402_v51, %v4402_v51  ;;  %v5181_v2 = vpack.c.bf16 %v4403_v59, %v4403_v59  ;;  %vm4220_vm7 = vcmp.eq.f32.partialorder %v8242_v45, inf  ;;  %v5852_v5 = vpop.eup %5851  ;;  %v8718_v51 = vld [vmem:[#allocation45_spill] sm:$0xff]  ;;  %v8719_v59 = vld [vmem:[#allocation46_spill] sm:$0xff] }
 0x350   : > { %v4406_v16 = vmul.f32 %v4357_v7, %v8712_v27  ;;  %v5182_v15 = vpack.c.bf16 %v4404_v11, %v4404_v11  ;;  %v4646_v37 = vunpack.c.l.b16 %v5179_v56  ;;  %vm4222_vm8 = vcmp.eq.f32.partialorder %v8242_v45, 0.0  ;;  %v5854_v32 = vpop.eup %5853  ;;  %v8720_v7 = vld [vmem:[#allocation47_spill] sm:$0xff] }
 0x351   : > { %v5183_v52 = vpack.c.bf16 %v4405_v61, %v4405_v61  ;;  %v4647_v19 = vunpack.c.l.b16 %v5180_v48  ;;  %v4648_v1 = vunpack.c.l.b16 %v5181_v2  ;;  %v4212_v25 = vmul.f32 %v5848_v14, %v8236_v47 }
 0x352   : > { %v5184_v57 = vpack.c.bf16 %v4406_v16, %v4406_v16  ;;  %v4645_v39 = vunpack.c.l.b16 %v5178_v21  ;;  %v4649_v60 = vunpack.c.l.b16 %v5182_v15  ;;  %v4724_v63 = vrot.slane %v4646_v37, 7 }
 0x353   : > { %v4650_v30 = vunpack.c.l.b16 %v5183_v52  ;;  %v4726_v35 = vrot.slane %v4647_v19, 6  ;;  %v4728_v31 = vrot.slane %v4648_v1, 5  ;;  %v4219_v24 = vmul.f32 %v5852_v5, %v8242_v45 }
 0x354   : > { %v4651_v17 = vunpack.c.l.b16 %v5184_v57  ;;  %v4725_v13 = vsel %vm2728_vm2, %v4724_v63, %v4645_v39  ;;  %v4226_v33 = vmul.f32 %v5854_v32, %v8247_v3  ;;  %vm4227_vm4 = vcmp.eq.f32.partialorder %v8247_v3, inf  ;;  %v8721_v63 = vld [vmem:[#allocation50_spill] sm:$0xff] }
 0x355   : > { %vm8713_vm5 = vcmask 1042434   ;;  %v4730_v10 = vrot.slane %v4649_v60, 4  ;;  %v4214_v22 = vsel %vm4213_vm0, %v8236_v47, %v4212_v25  ;;  %5855 = vrsqrt.f32 %v8296_v34 }
 0x356   : > { %v4727_v29 = vsel %vm8713_vm5, %v4726_v35, %v4725_v13  ;;  %vm8714_vm6 = vcmask 1043459   ;;  %v4732_v12 = vrot.slane %v4650_v30, 3  ;;  %v4221_v18 = vsel %vm4220_vm7, %v8242_v45, %v4219_v24 }
 0x357   : > { %v4729_v62 = vsel %vm8714_vm6, %v4728_v31, %v4727_v29  ;;  %v4228_v28 = vsel %vm4227_vm4, %v8247_v3, %v4226_v33  ;;  %vm8715_vm10 = vcmask 1044484   ;;  %v4734_v6 = vrot.slane %v4651_v17, 2 }
 0x358   : > { %v4731_v4 = vsel %vm8715_vm10, %v4730_v10, %v4729_v62  ;;  %v4223_v41 = vand.u32 2147483648, %v8242_v45  ;;  %v4230_v26 = vand.u32 2147483648, %v8247_v3  ;;  %vm8716_vm3 = vcmask 1045509   ;;  %v8722_v62 = vld [vmem:[#allocation62_spill] sm:$0xff] }
 0x359   : > { %v4733_v42 = vsel %vm8716_vm3, %v4732_v12, %v4731_v4  ;;  %v4217_v55 = vsel %vm4215_vm1, %v4216_v36, %v4214_v22  ;;  %vm4229_vm11 = vcmp.eq.f32.partialorder %v8247_v3, 0.0  ;;  %5857 = vrsqrt.f32 %v8305_v53 }
 0x35a   : > { %vm8717_vm12 = vcmask 1046534   ;;  %v4224_v49 = vsel %vm4222_vm8, %v4223_v41, %v4221_v18  ;;  %v4231_v40 = vsel %vm4229_vm11, %v4230_v26, %v4228_v28  ;;  %5859 = vrsqrt.f32 %v8315_v54  ;;  %v8723_v28 = vld [vmem:[#allocation63_spill] sm:$0xff]  ;;  %v8724_v26 = vld [vmem:[#allocation66_spill] sm:$0xff] }
 0x35b   : > { %v4735_v8 = vsel %vm8717_vm12, %v4734_v6, %v4733_v42  ;;  %5861 = vrsqrt.f32 %v8324_v58  ;;  %v4344_v36 = vmul.f32 %v8236_v47, %v4217_v55  ;;  %v4345_v43 = vmul.f32 %v8242_v45, %v4224_v49 }
 0x35c   : > { %v4742_v50 = vpack.c.b16 %v4735_v8, %v4735_v8  ;;  %v4346_v20 = vmul.f32 %v8247_v3, %v4231_v40  ;;  %vm4234_vm13 = vcmp.eq.f32.partialorder %v8296_v34, inf  ;;  %vm4236_vm14 = vcmp.eq.f32.partialorder %v8296_v34, 0.0 }
 0x35d   : > { %v4393_v44 = vmul.f32 %v4344_v36, %v8718_v51  ;;  %v4394_v14 = vmul.f32 %v4345_v43, %v8719_v59  ;;  %v4237_v45 = vand.u32 2147483648, %v8296_v34  ;;  %vm4241_vm15 = vcmp.eq.f32.partialorder %v8305_v53, inf  ;;  %v4768_v51 = vld [vmem:[%s7489_s23 + $0x14] sm:$0xf] }
 0x35e   : > { %v4772_v38 = vsel %vm7514_vm9, %v4742_v50, %v4771_v0  ;;  %v4395_v23 = vmul.f32 %v4346_v20, %v8720_v7  ;;  %vm4243_vm0 = vcmp.eq.f32.partialorder %v8305_v53, 0.0  ;;  %v4244_v48 = vand.u32 2147483648, %v8305_v53 }
 0x35f   : > { %4773 = vst [vmem:[%s7489_s23 + $0x18] sm:$0xf] %v4772_v38  ;;  %v5856_v11 = vpop.eup %5855  ;;  %v5172_v56 = vpack.c.bf16 %v4394_v14, %v4394_v14  ;;  %v5171_v3 = vpack.c.bf16 %v4393_v44, %v4393_v44  ;;  %vm4248_vm1 = vcmp.eq.f32.partialorder %v8315_v54, inf  ;;  %vm4250_vm7 = vcmp.eq.f32.partialorder %v8315_v54, 0.0 }
 0x360   : > { %v4233_v21 = vmul.f32 %v5856_v11, %v8296_v34  ;;  %v5173_v47 = vpack.c.bf16 %v4395_v23, %v4395_v23  ;;  %v4251_v32 = vand.u32 2147483648, %v8315_v54  ;;  %vm4255_vm8 = vcmp.eq.f32.partialorder %v8324_v58, inf }
 0x361   : > { %v4639_v2 = vunpack.c.l.b16 %v5172_v56  ;;  %vm4257_vm4 = vcmp.eq.f32.partialorder %v8324_v58, 0.0  ;;  %v4638_v57 = vunpack.c.l.b16 %v5171_v3  ;;  %v4258_v31 = vand.u32 2147483648, %v8324_v58 }
 0x362   : > { %v4235_v61 = vsel %vm4234_vm13, %v8296_v34, %v4233_v21  ;;  %v4640_v15 = vunpack.c.l.b16 %v5173_v47 }
 0x363   : > { %v5858_v46 = vpop.eup %5857  ;;  %v4238_v27 = vsel %vm4236_vm14, %v4237_v45, %v4235_v61  ;;  %v4712_v19 = vrot.slane %v4639_v2, 7 }
 0x364   : > { %v5860_v5 = vpop.eup %5859  ;;  %v4240_v16 = vmul.f32 %v5858_v46, %v8305_v53  ;;  %v4347_v52 = vmul.f32 %v8296_v34, %v4238_v27  ;;  %v4714_v17 = vrot.slane %v4640_v15, 6 }
 0x365   : > { %v4247_v37 = vmul.f32 %v5860_v5, %v8315_v54  ;;  %v5862_v1 = vpop.eup %5861  ;;  %v4713_v10 = vsel %vm2728_vm2, %v4712_v19, %v4638_v57  ;;  %vm8725_vm2 = vmmov %vm8714_vm6 }
 0x366   : > { %v4242_v25 = vsel %vm4241_vm15, %v8305_v53, %v4240_v16  ;;  %v4254_v34 = vmul.f32 %v5862_v1, %v8324_v58  ;;  %v4396_v30 = vmul.f32 %v4347_v52, %v8721_v63  ;;  %vm8726_vm6 = vmmov %vm8715_vm10 }
 0x367   : > { %v4245_v39 = vsel %vm4243_vm0, %v4244_v48, %v4242_v25  ;;  %v4249_v60 = vsel %vm4248_vm1, %v8315_v54, %v4247_v37  ;;  %vm8727_vm10 = vmmov %vm8716_vm3 }
 0x368   : > { %v4252_v35 = vsel %vm4250_vm7, %v4251_v32, %v4249_v60  ;;  %v4348_v24 = vmul.f32 %v8305_v53, %v4245_v39  ;;  %v4256_v13 = vsel %vm4255_vm8, %v8324_v58, %v4254_v34  ;;  %v5174_v29 = vpack.c.bf16 %v4396_v30, %v4396_v30  ;;  %vm8728_vm3 = vmmov %vm8717_vm12 }
 0x369   : > { %v4349_v33 = vmul.f32 %v8315_v54, %v4252_v35  ;;  %v4259_v22 = vsel %vm4257_vm4, %v4258_v31, %v4256_v13  ;;  %v4715_v53 = vsel %vm8713_vm5, %v4714_v17, %v4713_v10 }
 0x36a   : > { %v4397_v12 = vmul.f32 %v4348_v24, %v8722_v62  ;;  %v4350_v18 = vmul.f32 %v8324_v58, %v4259_v22  ;;  %v4641_v6 = vunpack.c.l.b16 %v5174_v29 }
 0x36b   : > { %v4398_v4 = vmul.f32 %v4349_v33, %v8723_v28 }
 0x36c   : > { %v5175_v41 = vpack.c.bf16 %v4397_v12, %v4397_v12  ;;  %v4399_v42 = vmul.f32 %v4350_v18, %v8724_v26  ;;  %v4716_v54 = vrot.slane %v4641_v6, 5 }
 0x36d   : > { %v5176_v55 = vpack.c.bf16 %v4398_v4, %v4398_v4 }
 0x36e   : > { %v4642_v0 = vunpack.c.l.b16 %v5175_v41  ;;  %v5177_v8 = vpack.c.bf16 %v4399_v42, %v4399_v42  ;;  %v4717_v40 = vsel %vm8725_vm2, %v4716_v54, %v4715_v53 }
 0x36f   : > { %v4643_v49 = vunpack.c.l.b16 %v5176_v55 }
 0x370   : > { %v4718_v50 = vrot.slane %v4642_v0, 4  ;;  %v4644_v38 = vunpack.c.l.b16 %v5177_v8 }
 0x371   : > { %v4720_v58 = vrot.slane %v4643_v49, 3 }
 0x372   : > { %v4719_v36 = vsel %vm8726_vm6, %v4718_v50, %v4717_v40  ;;  %v4722_v20 = vrot.slane %v4644_v38, 2 }
 0x373   : > { %v4721_v43 = vsel %vm8727_vm10, %v4720_v58, %v4719_v36 }
 0x374   : > { %v4723_v44 = vsel %vm8728_vm3, %v4722_v20, %v4721_v43 }
 0x375   : > { %v4741_v59 = vpack.c.b16 %v4723_v44, %v4723_v44 }
 0x377   : > { %v4769_v14 = vsel %vm7514_vm9, %v4741_v59, %v4768_v51 }
 0x378   : > { %4770 = vst [vmem:[%s7489_s23 + $0x14] sm:$0xf] %v4769_v14 }
 0x379 PF: > { %s13_s12 = sadd.s32 1, %s5870_s12  }
 0x37a   : > { %p10_p4 = scmp.ge.s32.totalorder %s13_s12, 4  }
 0x37c   :  { %12 = sbr.rel (!%p10_p4) target bundleno = 1 (0x1), region = 66 }

</bundles_post_ra>
